<compile_context>
chip_gen: v7x
topology: tpu7x:2x2x1
jax: 0.10.0
libtpu: 0.0.40
codegen_flags: <defaults>
</compile_context>

<pallas_src>
import functools

import jax
import jax.numpy as jnp
from jax import lax
from jax.experimental import pallas as pl
from jax.experimental.pallas import tpu as pltpu

# ------------------------------------------------------------------ config
N_CLASSES = 11
VOCAB_PAD = 16                     # padded one-hot width for in-kernel embed
D_MODEL = 32
N_HEADS = 4
HEAD_DIM = D_MODEL // N_HEADS
D_FF = 64
LN_EPS = 1e-5
OUT_PAD = 128                      # lane-dense padded logits width
ATTN_SCALE = 1.0 / (HEAD_DIM ** 0.5)


# ------------------------------------------------------------------ in-kernel helpers
def _embed_lookup(ids_ref, table_ref, n):
    """In-kernel embedding gather as a one-hot matmul (exact for f32 tables).

    ids_ref: (n, 1) int32 VMEM ref.  table_ref: (VOCAB_PAD, D_MODEL)."""
    ids = ids_ref[...]                                            # (n, 1)
    iota = lax.broadcasted_iota(jnp.int32, (n, VOCAB_PAD), 1)
    onehot = (ids == iota).astype(jnp.float32)                    # (n, VOCAB_PAD)
    return jnp.dot(onehot, table_ref[...],
                   preferred_element_type=jnp.float32)            # (n, D)


def _layer_norm(x, g, b):
    """Row-wise layernorm of a (N, D) value with (1, D) affine params."""
    mean = jnp.mean(x, axis=-1, keepdims=True)
    xc = x - mean
    var = jnp.mean(xc * xc, axis=-1, keepdims=True)
    return xc * lax.rsqrt(var + LN_EPS) * g + b


def _sdpa_head(q, k, v):
    """Single-head attention, batched over B.  q:(B,T,dh) k/v:(B,S,dh)."""
    s = jnp.einsum("bqd,bkd->bqk", q, k,
                   preferred_element_type=jnp.float32) * ATTN_SCALE
    s = s - jnp.max(s, axis=-1, keepdims=True)
    p = jnp.exp(s)
    p = p * pl.reciprocal(jnp.sum(p, axis=-1, keepdims=True), approx=True)
    return jnp.einsum("bqk,bkd->bqd", p, v, preferred_element_type=jnp.float32)


def _self_attention(x2d, B, N, wqkv_ref, bqkv_ref, wo_ref, bo_ref, qkv_scr):
    """x2d: (B*N, D).  Fused QKV matmul into VMEM scratch; per-head slices are
    static ref slices; output projection accumulated per head."""
    qkv_scr[...] = (jnp.dot(x2d, wqkv_ref[...],
                            preferred_element_type=jnp.float32)
                    + bqkv_ref[...])                              # (B*N, 3D)
    out = None
    for h in range(N_HEADS):
        lo = h * HEAD_DIM
        q = qkv_scr[:, lo:lo + HEAD_DIM].reshape(B, N, HEAD_DIM)
        k = qkv_scr[:, D_MODEL + lo:D_MODEL + lo + HEAD_DIM].reshape(B, N, HEAD_DIM)
        v = qkv_scr[:, 2 * D_MODEL + lo:2 * D_MODEL + lo + HEAD_DIM].reshape(B, N, HEAD_DIM)
        o_h = _sdpa_head(q, k, v)                                 # (B, N, dh)
        w_h = wo_ref[lo:lo + HEAD_DIM, :]                         # (dh, D)
        contrib = jnp.dot(o_h.reshape(B * N, HEAD_DIM), w_h,
                          preferred_element_type=jnp.float32)
        out = contrib if out is None else out + contrib
    return out + bo_ref[...]


def _cross_attention(y2d, mem2d, B, T, S, wq_ref, bq_ref, wkv_ref, bkv_ref,
                     wo_ref, bo_ref, q_scr, kv_scr):
    """y2d: (B*T, D) queries, mem2d: (B*S, D) keys/values (encoder memory)."""
    q_scr[...] = (jnp.dot(y2d, wq_ref[...],
                          preferred_element_type=jnp.float32) + bq_ref[...])
    kv_scr[...] = (jnp.dot(mem2d, wkv_ref[...],
                           preferred_element_type=jnp.float32) + bkv_ref[...])
    out = None
    for h in range(N_HEADS):
        lo = h * HEAD_DIM
        q = q_scr[:, lo:lo + HEAD_DIM].reshape(B, T, HEAD_DIM)
        k = kv_scr[:, lo:lo + HEAD_DIM].reshape(B, S, HEAD_DIM)
        v = kv_scr[:, D_MODEL + lo:D_MODEL + lo + HEAD_DIM].reshape(B, S, HEAD_DIM)
        o_h = _sdpa_head(q, k, v)                                 # (B, T, dh)
        w_h = wo_ref[lo:lo + HEAD_DIM, :]
        contrib = jnp.dot(o_h.reshape(B * T, HEAD_DIM), w_h,
                          preferred_element_type=jnp.float32)
        out = contrib if out is None else out + contrib
    return out + bo_ref[...]


def _ffn(x2d, w1_ref, b1_ref, w2_ref, b2_ref):
    h = jnp.dot(x2d, w1_ref[...], preferred_element_type=jnp.float32) + b1_ref[...]
    h = jnp.maximum(h, 0.0)
    return jnp.dot(h, w2_ref[...], preferred_element_type=jnp.float32) + b2_ref[...]


# ------------------------------------------------------------------ fused kernel
def _fused_model_kernel(
    # token ids
    src_ids_ref, tgt_ids_ref,
    # embedding tables (vocab-padded)
    embed_src, embed_tgt,
    # encoder layer weights
    e_sa_wqkv, e_sa_bqkv, e_sa_wo, e_sa_bo, e_ln1_g, e_ln1_b,
    e_ff_w1, e_ff_b1, e_ff_w2, e_ff_b2, e_ln2_g, e_ln2_b,
    # decoder layer weights
    d_sa_wqkv, d_sa_bqkv, d_sa_wo, d_sa_bo, d_ln1_g, d_ln1_b,
    d_ca_wq, d_ca_bq, d_ca_wkv, d_ca_bkv, d_ca_wo, d_ca_bo, d_ln2_g, d_ln2_b,
    d_ff_w1, d_ff_b1, d_ff_w2, d_ff_b2, d_ln3_g, d_ln3_b,
    # lane-padded output head
    w_out, b_out,
    # output
    o_ref,
    # VMEM scratch
    qkv_e_scr, qkv_d_scr, q_scr, kv_scr,
    *, B, S, T):
    # ---------------- in-kernel embeddings (one-hot MXU gather) ----------
    x = _embed_lookup(src_ids_ref, embed_src, B * S)              # (B*S, D)
    y = _embed_lookup(tgt_ids_ref, embed_tgt, B * T)              # (B*T, D)

    # ---------------- encoder layer (post-norm) ---------------------------
    attn = _self_attention(x, B, S, e_sa_wqkv, e_sa_bqkv, e_sa_wo, e_sa_bo,
                           qkv_e_scr)
    x = _layer_norm(x + attn, e_ln1_g[...], e_ln1_b[...])
    ff = _ffn(x, e_ff_w1, e_ff_b1, e_ff_w2, e_ff_b2)
    mem = _layer_norm(x + ff, e_ln2_g[...], e_ln2_b[...])         # (B*S, D)

    # ---------------- decoder layer (post-norm) ---------------------------
    # TODO(synk): no causal tgt mask — matches the reference forward() which
    # calls transformer(src, target) without tgt_mask.
    attn = _self_attention(y, B, T, d_sa_wqkv, d_sa_bqkv, d_sa_wo, d_sa_bo,
                           qkv_d_scr)
    y = _layer_norm(y + attn, d_ln1_g[...], d_ln1_b[...])
    attn = _cross_attention(y, mem, B, T, S, d_ca_wq, d_ca_bq, d_ca_wkv,
                            d_ca_bkv, d_ca_wo, d_ca_bo, q_scr, kv_scr)
    y = _layer_norm(y + attn, d_ln2_g[...], d_ln2_b[...])
    ff = _ffn(y, d_ff_w1, d_ff_b1, d_ff_w2, d_ff_b2)
    y = _layer_norm(y + ff, d_ln3_g[...], d_ln3_b[...])

    # ---------------- final projection (lane-dense 128-wide store) --------
    o_ref[...] = (jnp.dot(y, w_out[...], preferred_element_type=jnp.float32)
                  + b_out[...])


# ------------------------------------------------------------------ wrapper
_PARAM_ORDER = (
    "e_sa_wqkv", "e_sa_bqkv", "e_sa_wo", "e_sa_bo", "e_ln1_g", "e_ln1_b",
    "e_ff_w1", "e_ff_b1", "e_ff_w2", "e_ff_b2", "e_ln2_g", "e_ln2_b",
    "d_sa_wqkv", "d_sa_bqkv", "d_sa_wo", "d_sa_bo", "d_ln1_g", "d_ln1_b",
    "d_ca_wq", "d_ca_bq", "d_ca_wkv", "d_ca_bkv", "d_ca_wo", "d_ca_bo",
    "d_ln2_g", "d_ln2_b",
    "d_ff_w1", "d_ff_b1", "d_ff_w2", "d_ff_b2", "d_ln3_g", "d_ln3_b",
)


def model_forward(params, src_tokens, tgt_tokens):
    B, S = src_tokens.shape
    T = tgt_tokens.shape[1]

    # Token ids as (N, 1) int32 so the kernel can compare against a lane iota.
    src_ids = src_tokens.astype(jnp.int32).reshape(B * S, 1)
    tgt_ids = tgt_tokens.astype(jnp.int32).reshape(B * T, 1)

    # Vocab-padded embedding tables (rows >= N_CLASSES are never selected).
    embed_src = jnp.pad(params["embed"], ((0, VOCAB_PAD - N_CLASSES), (0, 0)))
    embed_tgt = jnp.pad(params["embed2"], ((0, VOCAB_PAD - N_CLASSES), (0, 0)))

    # Lane-dense output head: pad N_CLASSES -> 128 columns; slice after call.
    w_out_pad = jnp.pad(params["w_out"], ((0, 0), (0, OUT_PAD - N_CLASSES)))
    b_out_pad = jnp.pad(params["b_out"].reshape(1, N_CLASSES),
                        ((0, 0), (0, OUT_PAD - N_CLASSES)))

    inputs = [src_ids, tgt_ids, embed_src, embed_tgt]
    inputs += [params[name] for name in _PARAM_ORDER]
    inputs += [w_out_pad, b_out_pad]

    kernel = functools.partial(_fused_model_kernel, B=B, S=S, T=T)
    logits_pad = pl.pallas_call(
        kernel,
        out_shape=jax.ShapeDtypeStruct((B * T, OUT_PAD), jnp.float32),
        scratch_shapes=[
            pltpu.VMEM((B * S, 3 * D_MODEL), jnp.float32),   # encoder fused QKV
            pltpu.VMEM((B * T, 3 * D_MODEL), jnp.float32),   # decoder fused QKV
            pltpu.VMEM((B * T, D_MODEL), jnp.float32),       # cross-attn Q
            pltpu.VMEM((B * S, 2 * D_MODEL), jnp.float32),   # cross-attn fused KV
        ],
    )(*inputs)
    return logits_pad[:, :N_CLASSES].reshape(B, T, N_CLASSES)


# ------------------------------------------------------------------ deterministic params
def _init_params(key):
    keys = iter(jax.random.split(key, 64))
    sd = D_MODEL ** -0.5

    def nrm(shape, scale):
        return (scale * jax.random.normal(next(keys), shape)).astype(jnp.float32)

    def zeros(shape):
        return jnp.zeros(shape, jnp.float32)

    def ones(shape):
        return jnp.ones(shape, jnp.float32)

    return {
        "embed": nrm((N_CLASSES, D_MODEL), 1.0),
        "embed2": nrm((N_CLASSES, D_MODEL), 1.0),
        # encoder layer
        "e_sa_wqkv": nrm((D_MODEL, 3 * D_MODEL), sd),
        "e_sa_bqkv": zeros((1, 3 * D_MODEL)),
        "e_sa_wo": nrm((D_MODEL, D_MODEL), sd),
        "e_sa_bo": zeros((1, D_MODEL)),
        "e_ln1_g": ones((1, D_MODEL)), "e_ln1_b": zeros((1, D_MODEL)),
        "e_ff_w1": nrm((D_MODEL, D_FF), sd),
        "e_ff_b1": zeros((1, D_FF)),
        "e_ff_w2": nrm((D_FF, D_MODEL), D_FF ** -0.5),
        "e_ff_b2": zeros((1, D_MODEL)),
        "e_ln2_g": ones((1, D_MODEL)), "e_ln2_b": zeros((1, D_MODEL)),
        # decoder layer
        "d_sa_wqkv": nrm((D_MODEL, 3 * D_MODEL), sd),
        "d_sa_bqkv": zeros((1, 3 * D_MODEL)),
        "d_sa_wo": nrm((D_MODEL, D_MODEL), sd),
        "d_sa_bo": zeros((1, D_MODEL)),
        "d_ln1_g": ones((1, D_MODEL)), "d_ln1_b": zeros((1, D_MODEL)),
        "d_ca_wq": nrm((D_MODEL, D_MODEL), sd),
        "d_ca_bq": zeros((1, D_MODEL)),
        "d_ca_wkv": nrm((D_MODEL, 2 * D_MODEL), sd),
        "d_ca_bkv": zeros((1, 2 * D_MODEL)),
        "d_ca_wo": nrm((D_MODEL, D_MODEL), sd),
        "d_ca_bo": zeros((1, D_MODEL)),
        "d_ln2_g": ones((1, D_MODEL)), "d_ln2_b": zeros((1, D_MODEL)),
        "d_ff_w1": nrm((D_MODEL, D_FF), sd),
        "d_ff_b1": zeros((1, D_FF)),
        "d_ff_w2": nrm((D_FF, D_MODEL), D_FF ** -0.5),
        "d_ff_b2": zeros((1, D_MODEL)),
        "d_ln3_g": ones((1, D_MODEL)), "d_ln3_b": zeros((1, D_MODEL)),
        # output head (unpadded; wrapper pads to 128 lanes)
        "w_out": nrm((D_MODEL, N_CLASSES), sd),
        "b_out": zeros((N_CLASSES,)),
    }


# ------------------------------------------------------------------ main
if __name__ == "__main__":
    key = jax.random.PRNGKey(0)
    k_src, k_tgt, k_params = jax.random.split(key, 3)

    B, S, T = 2, 8, 8
    # Tokens in [1, 10) matching torch.randint(low=1, high=10, ...)
    src_tokens = jax.random.randint(k_src, (B, S), 1, 10, dtype=jnp.int32)
    tgt_tokens = jax.random.randint(k_tgt, (B, T), 1, 10, dtype=jnp.int32)

    params = _init_params(k_params)

    fwd = jax.jit(model_forward)
    out = fwd(params, src_tokens, tgt_tokens)
    out = jax.block_until_ready(out)
    assert out.shape == (B, T, N_CLASSES) and out.dtype == jnp.float32
    assert bool(jnp.all(jnp.isfinite(out)))
    # TODO(synk): dropout layers of the transformer are omitted (eval semantics).
    print("KERNEL_OK")
</pallas_src>

<mosaic_0001>
module attributes {stable_mosaic.version = 11 : i64} {
  func.func @_fused_model_kernel(%arg0: memref<16x1xi32, #tpu.memory_space<vmem>>, %arg1: memref<16x1xi32, #tpu.memory_space<vmem>>, %arg2: memref<16x32xf32, #tpu.memory_space<vmem>>, %arg3: memref<16x32xf32, #tpu.memory_space<vmem>>, %arg4: memref<32x96xf32, #tpu.memory_space<vmem>>, %arg5: memref<1x96xf32, #tpu.memory_space<vmem>>, %arg6: memref<32x32xf32, #tpu.memory_space<vmem>>, %arg7: memref<1x32xf32, #tpu.memory_space<vmem>>, %arg8: memref<1x32xf32, #tpu.memory_space<vmem>>, %arg9: memref<1x32xf32, #tpu.memory_space<vmem>>, %arg10: memref<32x64xf32, #tpu.memory_space<vmem>>, %arg11: memref<1x64xf32, #tpu.memory_space<vmem>>, %arg12: memref<64x32xf32, #tpu.memory_space<vmem>>, %arg13: memref<1x32xf32, #tpu.memory_space<vmem>>, %arg14: memref<1x32xf32, #tpu.memory_space<vmem>>, %arg15: memref<1x32xf32, #tpu.memory_space<vmem>>, %arg16: memref<32x96xf32, #tpu.memory_space<vmem>>, %arg17: memref<1x96xf32, #tpu.memory_space<vmem>>, %arg18: memref<32x32xf32, #tpu.memory_space<vmem>>, %arg19: memref<1x32xf32, #tpu.memory_space<vmem>>, %arg20: memref<1x32xf32, #tpu.memory_space<vmem>>, %arg21: memref<1x32xf32, #tpu.memory_space<vmem>>, %arg22: memref<32x32xf32, #tpu.memory_space<vmem>>, %arg23: memref<1x32xf32, #tpu.memory_space<vmem>>, %arg24: memref<32x64xf32, #tpu.memory_space<vmem>>, %arg25: memref<1x64xf32, #tpu.memory_space<vmem>>, %arg26: memref<32x32xf32, #tpu.memory_space<vmem>>, %arg27: memref<1x32xf32, #tpu.memory_space<vmem>>, %arg28: memref<1x32xf32, #tpu.memory_space<vmem>>, %arg29: memref<1x32xf32, #tpu.memory_space<vmem>>, %arg30: memref<32x64xf32, #tpu.memory_space<vmem>>, %arg31: memref<1x64xf32, #tpu.memory_space<vmem>>, %arg32: memref<64x32xf32, #tpu.memory_space<vmem>>, %arg33: memref<1x32xf32, #tpu.memory_space<vmem>>, %arg34: memref<1x32xf32, #tpu.memory_space<vmem>>, %arg35: memref<1x32xf32, #tpu.memory_space<vmem>>, %arg36: memref<32x128xf32, #tpu.memory_space<vmem>>, %arg37: memref<1x128xf32, #tpu.memory_space<vmem>>, %arg38: memref<16x128xf32, #tpu.memory_space<vmem>>, %arg39: memref<16x96xf32, #tpu.memory_space<vmem>>, %arg40: memref<16x96xf32, #tpu.memory_space<vmem>>, %arg41: memref<16x32xf32, #tpu.memory_space<vmem>>, %arg42: memref<16x64xf32, #tpu.memory_space<vmem>>) attributes {dimension_semantics = [], scalar_prefetch = 0 : i64, scratch_operands = 4 : i64, tpu.core_type = #tpu.core_type<tc>} {
    %c0 = arith.constant 0 : index
    %c0_0 = arith.constant 0 : index
    %0 = vector.load %arg0[%c0, %c0_0] : memref<16x1xi32, #tpu.memory_space<vmem>>, vector<16x1xi32>
    %1 = tpu.iota {dimensions = array<i32: 1>} : vector<16x16xi32>
    %2 = vector.broadcast %0 : vector<16x1xi32> to vector<16x16xi32>
    %3 = arith.cmpi eq, %2, %1 : vector<16x16xi32>
    %4 = arith.extui %3 : vector<16x16xi1> to vector<16x16xi32>
    %5 = arith.sitofp %4 : vector<16x16xi32> to vector<16x16xf32>
    %c0_1 = arith.constant 0 : index
    %c0_2 = arith.constant 0 : index
    %6 = vector.load %arg2[%c0_1, %c0_2] : memref<16x32xf32, #tpu.memory_space<vmem>>, vector<16x32xf32>
    %cst = arith.constant dense<0.000000e+00> : vector<16x32xf32>
    %7 = tpu.matmul %5, %6, %cst {dimension_numbers = #tpu.dot_dimension_numbers<[1], [0], [0], [1], [0, 0, 1, 1], [], []>} : vector<16x16xf32>, vector<16x32xf32>, vector<16x32xf32> -> vector<16x32xf32>
    %c0_3 = arith.constant 0 : index
    %c0_4 = arith.constant 0 : index
    %8 = vector.load %arg1[%c0_3, %c0_4] : memref<16x1xi32, #tpu.memory_space<vmem>>, vector<16x1xi32>
    %9 = tpu.iota {dimensions = array<i32: 1>} : vector<16x16xi32>
    %10 = vector.broadcast %8 : vector<16x1xi32> to vector<16x16xi32>
    %11 = arith.cmpi eq, %10, %9 : vector<16x16xi32>
    %12 = arith.extui %11 : vector<16x16xi1> to vector<16x16xi32>
    %13 = arith.sitofp %12 : vector<16x16xi32> to vector<16x16xf32>
    %c0_5 = arith.constant 0 : index
    %c0_6 = arith.constant 0 : index
    %14 = vector.load %arg3[%c0_5, %c0_6] : memref<16x32xf32, #tpu.memory_space<vmem>>, vector<16x32xf32>
    %cst_7 = arith.constant dense<0.000000e+00> : vector<16x32xf32>
    %15 = tpu.matmul %13, %14, %cst_7 {dimension_numbers = #tpu.dot_dimension_numbers<[1], [0], [0], [1], [0, 0, 1, 1], [], []>} : vector<16x16xf32>, vector<16x32xf32>, vector<16x32xf32> -> vector<16x32xf32>
    %c0_8 = arith.constant 0 : index
    %c0_9 = arith.constant 0 : index
    %16 = vector.load %arg4[%c0_8, %c0_9] : memref<32x96xf32, #tpu.memory_space<vmem>>, vector<32x96xf32>
    %cst_10 = arith.constant dense<0.000000e+00> : vector<16x96xf32>
    %17 = tpu.matmul %7, %16, %cst_10 {dimension_numbers = #tpu.dot_dimension_numbers<[1], [0], [0], [1], [0, 0, 1, 1], [], []>} : vector<16x32xf32>, vector<32x96xf32>, vector<16x96xf32> -> vector<16x96xf32>
    %c0_11 = arith.constant 0 : index
    %c0_12 = arith.constant 0 : index
    %18 = vector.load %arg5[%c0_11, %c0_12] : memref<1x96xf32, #tpu.memory_space<vmem>>, vector<1x96xf32>
    %19 = vector.broadcast %18 : vector<1x96xf32> to vector<16x96xf32>
    %20 = arith.addf %17, %19 : vector<16x96xf32>
    %c0_13 = arith.constant 0 : index
    %c0_14 = arith.constant 0 : index
    %21 = vector.load %arg39[%c0_13, %c0_14] : memref<16x96xf32, #tpu.memory_space<vmem>>, vector<16x96xf32>
    tpu.vector_store %arg39[%c0_13, %c0_14], %20 {strides = array<i32>} : memref<16x96xf32, #tpu.memory_space<vmem>>, vector<16x96xf32>,
    %c0_15 = arith.constant 0 : index
    %c0_16 = arith.constant 0 : index
    %22 = vector.load %arg39[%c0_15, %c0_16] : memref<16x96xf32, #tpu.memory_space<vmem>>, vector<16x8xf32>
    %23 = vector.shape_cast %22 : vector<16x8xf32> to vector<2x8x8xf32>
    %c0_17 = arith.constant 0 : index
    %c32 = arith.constant 32 : index
    %24 = vector.load %arg39[%c0_17, %c32] : memref<16x96xf32, #tpu.memory_space<vmem>>, vector<16x8xf32>
    %25 = vector.shape_cast %24 : vector<16x8xf32> to vector<2x8x8xf32>
    %c0_18 = arith.constant 0 : index
    %c64 = arith.constant 64 : index
    %26 = vector.load %arg39[%c0_18, %c64] : memref<16x96xf32, #tpu.memory_space<vmem>>, vector<16x8xf32>
    %27 = vector.shape_cast %26 : vector<16x8xf32> to vector<2x8x8xf32>
    "tpu.trace_start"() <{level = 10 : i32, message = "bqd,bkd->bqk"}> : () -> ()
    %cst_19 = arith.constant dense<0.000000e+00> : vector<2x8x8xf32>
    %28 = tpu.matmul %23, %25, %cst_19 {dimension_numbers = #tpu.dot_dimension_numbers<[2], [2], [1], [1], [0, 0, 0, 1, 1, 1], [0], [0]>} : vector<2x8x8xf32>, vector<2x8x8xf32>, vector<2x8x8xf32> -> vector<2x8x8xf32>
    "tpu.trace_stop"() : () -> ()
    %cst_20 = arith.constant 0.353553385 : f32
    %29 = vector.broadcast %cst_20 : f32 to vector<2x8x8xf32>
    %30 = arith.mulf %28, %29 : vector<2x8x8xf32>
    %cst_21 = arith.constant dense<0xFF800000> : vector<2x8xf32>
    %31 = vector.multi_reduction <maximumf>, %30, %cst_21 [2] : vector<2x8x8xf32> to vector<2x8xf32>
    %32 = vector.shape_cast %31 : vector<2x8xf32> to vector<2x8x1xf32>
    %33 = vector.broadcast %32 : vector<2x8x1xf32> to vector<2x8x8xf32>
    %34 = arith.subf %30, %33 : vector<2x8x8xf32>
    %35 = math.exp %34 : vector<2x8x8xf32>
    %cst_22 = arith.constant dense<0.000000e+00> : vector<2x8xf32>
    %36 = vector.multi_reduction <add>, %35, %cst_22 [2] : vector<2x8x8xf32> to vector<2x8xf32>
    %37 = vector.shape_cast %36 : vector<2x8xf32> to vector<2x8x1xf32>
    %38 = tpu.reciprocal %37 {approx = true} : vector<2x8x1xf32> -> vector<2x8x1xf32>
    %39 = vector.broadcast %38 : vector<2x8x1xf32> to vector<2x8x8xf32>
    %40 = arith.mulf %35, %39 : vector<2x8x8xf32>
    "tpu.trace_start"() <{level = 10 : i32, message = "bqk,bkd->bqd"}> : () -> ()
    %cst_23 = arith.constant dense<0.000000e+00> : vector<2x8x8xf32>
    %41 = tpu.matmul %40, %27, %cst_23 {dimension_numbers = #tpu.dot_dimension_numbers<[2], [1], [1], [2], [0, 0, 0, 1, 1, 2], [0], [0]>} : vector<2x8x8xf32>, vector<2x8x8xf32>, vector<2x8x8xf32> -> vector<2x8x8xf32>
    "tpu.trace_stop"() : () -> ()
    %c0_24 = arith.constant 0 : index
    %c0_25 = arith.constant 0 : index
    %42 = vector.load %arg6[%c0_24, %c0_25] : memref<32x32xf32, #tpu.memory_space<vmem>>, vector<8x32xf32>
    %43 = vector.shape_cast %41 : vector<2x8x8xf32> to vector<16x8xf32>
    %cst_26 = arith.constant dense<0.000000e+00> : vector<16x32xf32>
    %44 = tpu.matmul %43, %42, %cst_26 {dimension_numbers = #tpu.dot_dimension_numbers<[1], [0], [0], [1], [0, 0, 1, 1], [], []>} : vector<16x8xf32>, vector<8x32xf32>, vector<16x32xf32> -> vector<16x32xf32>
    %c0_27 = arith.constant 0 : index
    %c8 = arith.constant 8 : index
    %45 = vector.load %arg39[%c0_27, %c8] : memref<16x96xf32, #tpu.memory_space<vmem>>, vector<16x8xf32>
    %46 = vector.shape_cast %45 : vector<16x8xf32> to vector<2x8x8xf32>
    %c0_28 = arith.constant 0 : index
    %c40 = arith.constant 40 : index
    %47 = vector.load %arg39[%c0_28, %c40] : memref<16x96xf32, #tpu.memory_space<vmem>>, vector<16x8xf32>
    %48 = vector.shape_cast %47 : vector<16x8xf32> to vector<2x8x8xf32>
    %c0_29 = arith.constant 0 : index
    %c72 = arith.constant 72 : index
    %49 = vector.load %arg39[%c0_29, %c72] : memref<16x96xf32, #tpu.memory_space<vmem>>, vector<16x8xf32>
    %50 = vector.shape_cast %49 : vector<16x8xf32> to vector<2x8x8xf32>
    "tpu.trace_start"() <{level = 10 : i32, message = "bqd,bkd->bqk"}> : () -> ()
    %cst_30 = arith.constant dense<0.000000e+00> : vector<2x8x8xf32>
    %51 = tpu.matmul %46, %48, %cst_30 {dimension_numbers = #tpu.dot_dimension_numbers<[2], [2], [1], [1], [0, 0, 0, 1, 1, 1], [0], [0]>} : vector<2x8x8xf32>, vector<2x8x8xf32>, vector<2x8x8xf32> -> vector<2x8x8xf32>
    "tpu.trace_stop"() : () -> ()
    %cst_31 = arith.constant 0.353553385 : f32
    %52 = vector.broadcast %cst_31 : f32 to vector<2x8x8xf32>
    %53 = arith.mulf %51, %52 : vector<2x8x8xf32>
    %cst_32 = arith.constant dense<0xFF800000> : vector<2x8xf32>
    %54 = vector.multi_reduction <maximumf>, %53, %cst_32 [2] : vector<2x8x8xf32> to vector<2x8xf32>
    %55 = vector.shape_cast %54 : vector<2x8xf32> to vector<2x8x1xf32>
    %56 = vector.broadcast %55 : vector<2x8x1xf32> to vector<2x8x8xf32>
    %57 = arith.subf %53, %56 : vector<2x8x8xf32>
    %58 = math.exp %57 : vector<2x8x8xf32>
    %cst_33 = arith.constant dense<0.000000e+00> : vector<2x8xf32>
    %59 = vector.multi_reduction <add>, %58, %cst_33 [2] : vector<2x8x8xf32> to vector<2x8xf32>
    %60 = vector.shape_cast %59 : vector<2x8xf32> to vector<2x8x1xf32>
    %61 = tpu.reciprocal %60 {approx = true} : vector<2x8x1xf32> -> vector<2x8x1xf32>
    %62 = vector.broadcast %61 : vector<2x8x1xf32> to vector<2x8x8xf32>
    %63 = arith.mulf %58, %62 : vector<2x8x8xf32>
    "tpu.trace_start"() <{level = 10 : i32, message = "bqk,bkd->bqd"}> : () -> ()
    %cst_34 = arith.constant dense<0.000000e+00> : vector<2x8x8xf32>
    %64 = tpu.matmul %63, %50, %cst_34 {dimension_numbers = #tpu.dot_dimension_numbers<[2], [1], [1], [2], [0, 0, 0, 1, 1, 2], [0], [0]>} : vector<2x8x8xf32>, vector<2x8x8xf32>, vector<2x8x8xf32> -> vector<2x8x8xf32>
    "tpu.trace_stop"() : () -> ()
    %c8_35 = arith.constant 8 : index
    %c0_36 = arith.constant 0 : index
    %65 = vector.load %arg6[%c8_35, %c0_36] : memref<32x32xf32, #tpu.memory_space<vmem>>, vector<8x32xf32>
    %66 = vector.shape_cast %64 : vector<2x8x8xf32> to vector<16x8xf32>
    %cst_37 = arith.constant dense<0.000000e+00> : vector<16x32xf32>
    %67 = tpu.matmul %66, %65, %cst_37 {dimension_numbers = #tpu.dot_dimension_numbers<[1], [0], [0], [1], [0, 0, 1, 1], [], []>} : vector<16x8xf32>, vector<8x32xf32>, vector<16x32xf32> -> vector<16x32xf32>
    %68 = arith.addf %44, %67 : vector<16x32xf32>
    %c0_38 = arith.constant 0 : index
    %c16 = arith.constant 16 : index
    %69 = vector.load %arg39[%c0_38, %c16] : memref<16x96xf32, #tpu.memory_space<vmem>>, vector<16x8xf32>
    %70 = vector.shape_cast %69 : vector<16x8xf32> to vector<2x8x8xf32>
    %c0_39 = arith.constant 0 : index
    %c48 = arith.constant 48 : index
    %71 = vector.load %arg39[%c0_39, %c48] : memref<16x96xf32, #tpu.memory_space<vmem>>, vector<16x8xf32>
    %72 = vector.shape_cast %71 : vector<16x8xf32> to vector<2x8x8xf32>
    %c0_40 = arith.constant 0 : index
    %c80 = arith.constant 80 : index
    %73 = vector.load %arg39[%c0_40, %c80] : memref<16x96xf32, #tpu.memory_space<vmem>>, vector<16x8xf32>
    %74 = vector.shape_cast %73 : vector<16x8xf32> to vector<2x8x8xf32>
    "tpu.trace_start"() <{level = 10 : i32, message = "bqd,bkd->bqk"}> : () -> ()
    %cst_41 = arith.constant dense<0.000000e+00> : vector<2x8x8xf32>
    %75 = tpu.matmul %70, %72, %cst_41 {dimension_numbers = #tpu.dot_dimension_numbers<[2], [2], [1], [1], [0, 0, 0, 1, 1, 1], [0], [0]>} : vector<2x8x8xf32>, vector<2x8x8xf32>, vector<2x8x8xf32> -> vector<2x8x8xf32>
    "tpu.trace_stop"() : () -> ()
    %cst_42 = arith.constant 0.353553385 : f32
    %76 = vector.broadcast %cst_42 : f32 to vector<2x8x8xf32>
    %77 = arith.mulf %75, %76 : vector<2x8x8xf32>
    %cst_43 = arith.constant dense<0xFF800000> : vector<2x8xf32>
    %78 = vector.multi_reduction <maximumf>, %77, %cst_43 [2] : vector<2x8x8xf32> to vector<2x8xf32>
    %79 = vector.shape_cast %78 : vector<2x8xf32> to vector<2x8x1xf32>
    %80 = vector.broadcast %79 : vector<2x8x1xf32> to vector<2x8x8xf32>
    %81 = arith.subf %77, %80 : vector<2x8x8xf32>
    %82 = math.exp %81 : vector<2x8x8xf32>
    %cst_44 = arith.constant dense<0.000000e+00> : vector<2x8xf32>
    %83 = vector.multi_reduction <add>, %82, %cst_44 [2] : vector<2x8x8xf32> to vector<2x8xf32>
    %84 = vector.shape_cast %83 : vector<2x8xf32> to vector<2x8x1xf32>
    %85 = tpu.reciprocal %84 {approx = true} : vector<2x8x1xf32> -> vector<2x8x1xf32>
    %86 = vector.broadcast %85 : vector<2x8x1xf32> to vector<2x8x8xf32>
    %87 = arith.mulf %82, %86 : vector<2x8x8xf32>
    "tpu.trace_start"() <{level = 10 : i32, message = "bqk,bkd->bqd"}> : () -> ()
    %cst_45 = arith.constant dense<0.000000e+00> : vector<2x8x8xf32>
    %88 = tpu.matmul %87, %74, %cst_45 {dimension_numbers = #tpu.dot_dimension_numbers<[2], [1], [1], [2], [0, 0, 0, 1, 1, 2], [0], [0]>} : vector<2x8x8xf32>, vector<2x8x8xf32>, vector<2x8x8xf32> -> vector<2x8x8xf32>
    "tpu.trace_stop"() : () -> ()
    %c16_46 = arith.constant 16 : index
    %c0_47 = arith.constant 0 : index
    %89 = vector.load %arg6[%c16_46, %c0_47] : memref<32x32xf32, #tpu.memory_space<vmem>>, vector<8x32xf32>
    %90 = vector.shape_cast %88 : vector<2x8x8xf32> to vector<16x8xf32>
    %cst_48 = arith.constant dense<0.000000e+00> : vector<16x32xf32>
    %91 = tpu.matmul %90, %89, %cst_48 {dimension_numbers = #tpu.dot_dimension_numbers<[1], [0], [0], [1], [0, 0, 1, 1], [], []>} : vector<16x8xf32>, vector<8x32xf32>, vector<16x32xf32> -> vector<16x32xf32>
    %92 = arith.addf %68, %91 : vector<16x32xf32>
    %c0_49 = arith.constant 0 : index
    %c24 = arith.constant 24 : index
    %93 = vector.load %arg39[%c0_49, %c24] : memref<16x96xf32, #tpu.memory_space<vmem>>, vector<16x8xf32>
    %94 = vector.shape_cast %93 : vector<16x8xf32> to vector<2x8x8xf32>
    %c0_50 = arith.constant 0 : index
    %c56 = arith.constant 56 : index
    %95 = vector.load %arg39[%c0_50, %c56] : memref<16x96xf32, #tpu.memory_space<vmem>>, vector<16x8xf32>
    %96 = vector.shape_cast %95 : vector<16x8xf32> to vector<2x8x8xf32>
    %c0_51 = arith.constant 0 : index
    %c88 = arith.constant 88 : index
    %97 = vector.load %arg39[%c0_51, %c88] : memref<16x96xf32, #tpu.memory_space<vmem>>, vector<16x8xf32>
    %98 = vector.shape_cast %97 : vector<16x8xf32> to vector<2x8x8xf32>
    "tpu.trace_start"() <{level = 10 : i32, message = "bqd,bkd->bqk"}> : () -> ()
    %cst_52 = arith.constant dense<0.000000e+00> : vector<2x8x8xf32>
    %99 = tpu.matmul %94, %96, %cst_52 {dimension_numbers = #tpu.dot_dimension_numbers<[2], [2], [1], [1], [0, 0, 0, 1, 1, 1], [0], [0]>} : vector<2x8x8xf32>, vector<2x8x8xf32>, vector<2x8x8xf32> -> vector<2x8x8xf32>
    "tpu.trace_stop"() : () -> ()
    %cst_53 = arith.constant 0.353553385 : f32
    %100 = vector.broadcast %cst_53 : f32 to vector<2x8x8xf32>
    %101 = arith.mulf %99, %100 : vector<2x8x8xf32>
    %cst_54 = arith.constant dense<0xFF800000> : vector<2x8xf32>
    %102 = vector.multi_reduction <maximumf>, %101, %cst_54 [2] : vector<2x8x8xf32> to vector<2x8xf32>
    %103 = vector.shape_cast %102 : vector<2x8xf32> to vector<2x8x1xf32>
    %104 = vector.broadcast %103 : vector<2x8x1xf32> to vector<2x8x8xf32>
    %105 = arith.subf %101, %104 : vector<2x8x8xf32>
    %106 = math.exp %105 : vector<2x8x8xf32>
    %cst_55 = arith.constant dense<0.000000e+00> : vector<2x8xf32>
    %107 = vector.multi_reduction <add>, %106, %cst_55 [2] : vector<2x8x8xf32> to vector<2x8xf32>
    %108 = vector.shape_cast %107 : vector<2x8xf32> to vector<2x8x1xf32>
    %109 = tpu.reciprocal %108 {approx = true} : vector<2x8x1xf32> -> vector<2x8x1xf32>
    %110 = vector.broadcast %109 : vector<2x8x1xf32> to vector<2x8x8xf32>
    %111 = arith.mulf %106, %110 : vector<2x8x8xf32>
    "tpu.trace_start"() <{level = 10 : i32, message = "bqk,bkd->bqd"}> : () -> ()
    %cst_56 = arith.constant dense<0.000000e+00> : vector<2x8x8xf32>
    %112 = tpu.matmul %111, %98, %cst_56 {dimension_numbers = #tpu.dot_dimension_numbers<[2], [1], [1], [2], [0, 0, 0, 1, 1, 2], [0], [0]>} : vector<2x8x8xf32>, vector<2x8x8xf32>, vector<2x8x8xf32> -> vector<2x8x8xf32>
    "tpu.trace_stop"() : () -> ()
    %c24_57 = arith.constant 24 : index
    %c0_58 = arith.constant 0 : index
    %113 = vector.load %arg6[%c24_57, %c0_58] : memref<32x32xf32, #tpu.memory_space<vmem>>, vector<8x32xf32>
    %114 = vector.shape_cast %112 : vector<2x8x8xf32> to vector<16x8xf32>
    %cst_59 = arith.constant dense<0.000000e+00> : vector<16x32xf32>
    %115 = tpu.matmul %114, %113, %cst_59 {dimension_numbers = #tpu.dot_dimension_numbers<[1], [0], [0], [1], [0, 0, 1, 1], [], []>} : vector<16x8xf32>, vector<8x32xf32>, vector<16x32xf32> -> vector<16x32xf32>
    %116 = arith.addf %92, %115 : vector<16x32xf32>
    %c0_60 = arith.constant 0 : index
    %c0_61 = arith.constant 0 : index
    %117 = vector.load %arg7[%c0_60, %c0_61] : memref<1x32xf32, #tpu.memory_space<vmem>>, vector<1x32xf32>
    %118 = vector.broadcast %117 : vector<1x32xf32> to vector<16x32xf32>
    %119 = arith.addf %116, %118 : vector<16x32xf32>
    %120 = arith.addf %7, %119 : vector<16x32xf32>
    %c0_62 = arith.constant 0 : index
    %c0_63 = arith.constant 0 : index
    %121 = vector.load %arg8[%c0_62, %c0_63] : memref<1x32xf32, #tpu.memory_space<vmem>>, vector<1x32xf32>
    %c0_64 = arith.constant 0 : index
    %c0_65 = arith.constant 0 : index
    %122 = vector.load %arg9[%c0_64, %c0_65] : memref<1x32xf32, #tpu.memory_space<vmem>>, vector<1x32xf32>
    %cst_66 = arith.constant dense<0.000000e+00> : vector<16xf32>
    %123 = vector.multi_reduction <add>, %120, %cst_66 [1] : vector<16x32xf32> to vector<16xf32>
    %124 = vector.shape_cast %123 : vector<16xf32> to vector<16x1xf32>
    %cst_67 = arith.constant 3.200000e+01 : f32
    %125 = vector.broadcast %cst_67 : f32 to vector<16x1xf32>
    %126 = arith.divf %124, %125 : vector<16x1xf32>
    %127 = vector.broadcast %126 : vector<16x1xf32> to vector<16x32xf32>
    %128 = arith.subf %120, %127 : vector<16x32xf32>
    %129 = arith.mulf %128, %128 : vector<16x32xf32>
    %cst_68 = arith.constant dense<0.000000e+00> : vector<16xf32>
    %130 = vector.multi_reduction <add>, %129, %cst_68 [1] : vector<16x32xf32> to vector<16xf32>
    %131 = vector.shape_cast %130 : vector<16xf32> to vector<16x1xf32>
    %cst_69 = arith.constant 3.200000e+01 : f32
    %132 = vector.broadcast %cst_69 : f32 to vector<16x1xf32>
    %133 = arith.divf %131, %132 : vector<16x1xf32>
    %cst_70 = arith.constant 9.99999974E-6 : f32
    %134 = vector.broadcast %cst_70 : f32 to vector<16x1xf32>
    %135 = arith.addf %133, %134 : vector<16x1xf32>
    %136 = math.rsqrt %135 : vector<16x1xf32>
    %137 = vector.broadcast %136 : vector<16x1xf32> to vector<16x32xf32>
    %138 = arith.mulf %128, %137 : vector<16x32xf32>
    %139 = vector.broadcast %121 : vector<1x32xf32> to vector<16x32xf32>
    %140 = arith.mulf %138, %139 : vector<16x32xf32>
    %141 = vector.broadcast %122 : vector<1x32xf32> to vector<16x32xf32>
    %142 = arith.addf %140, %141 : vector<16x32xf32>
    %c0_71 = arith.constant 0 : index
    %c0_72 = arith.constant 0 : index
    %143 = vector.load %arg10[%c0_71, %c0_72] : memref<32x64xf32, #tpu.memory_space<vmem>>, vector<32x64xf32>
    %cst_73 = arith.constant dense<0.000000e+00> : vector<16x64xf32>
    %144 = tpu.matmul %142, %143, %cst_73 {dimension_numbers = #tpu.dot_dimension_numbers<[1], [0], [0], [1], [0, 0, 1, 1], [], []>} : vector<16x32xf32>, vector<32x64xf32>, vector<16x64xf32> -> vector<16x64xf32>
    %c0_74 = arith.constant 0 : index
    %c0_75 = arith.constant 0 : index
    %145 = vector.load %arg11[%c0_74, %c0_75] : memref<1x64xf32, #tpu.memory_space<vmem>>, vector<1x64xf32>
    %146 = vector.broadcast %145 : vector<1x64xf32> to vector<16x64xf32>
    %147 = arith.addf %144, %146 : vector<16x64xf32>
    %cst_76 = arith.constant 0.000000e+00 : f32
    %148 = vector.broadcast %cst_76 : f32 to vector<16x64xf32>
    %149 = arith.maximumf %147, %148 : vector<16x64xf32>
    %c0_77 = arith.constant 0 : index
    %c0_78 = arith.constant 0 : index
    %150 = vector.load %arg12[%c0_77, %c0_78] : memref<64x32xf32, #tpu.memory_space<vmem>>, vector<64x32xf32>
    %cst_79 = arith.constant dense<0.000000e+00> : vector<16x32xf32>
    %151 = tpu.matmul %149, %150, %cst_79 {dimension_numbers = #tpu.dot_dimension_numbers<[1], [0], [0], [1], [0, 0, 1, 1], [], []>} : vector<16x64xf32>, vector<64x32xf32>, vector<16x32xf32> -> vector<16x32xf32>
    %c0_80 = arith.constant 0 : index
    %c0_81 = arith.constant 0 : index
    %152 = vector.load %arg13[%c0_80, %c0_81] : memref<1x32xf32, #tpu.memory_space<vmem>>, vector<1x32xf32>
    %153 = vector.broadcast %152 : vector<1x32xf32> to vector<16x32xf32>
    %154 = arith.addf %151, %153 : vector<16x32xf32>
    %155 = arith.addf %142, %154 : vector<16x32xf32>
    %c0_82 = arith.constant 0 : index
    %c0_83 = arith.constant 0 : index
    %156 = vector.load %arg14[%c0_82, %c0_83] : memref<1x32xf32, #tpu.memory_space<vmem>>, vector<1x32xf32>
    %c0_84 = arith.constant 0 : index
    %c0_85 = arith.constant 0 : index
    %157 = vector.load %arg15[%c0_84, %c0_85] : memref<1x32xf32, #tpu.memory_space<vmem>>, vector<1x32xf32>
    %cst_86 = arith.constant dense<0.000000e+00> : vector<16xf32>
    %158 = vector.multi_reduction <add>, %155, %cst_86 [1] : vector<16x32xf32> to vector<16xf32>
    %159 = vector.shape_cast %158 : vector<16xf32> to vector<16x1xf32>
    %cst_87 = arith.constant 3.200000e+01 : f32
    %160 = vector.broadcast %cst_87 : f32 to vector<16x1xf32>
    %161 = arith.divf %159, %160 : vector<16x1xf32>
    %162 = vector.broadcast %161 : vector<16x1xf32> to vector<16x32xf32>
    %163 = arith.subf %155, %162 : vector<16x32xf32>
    %164 = arith.mulf %163, %163 : vector<16x32xf32>
    %cst_88 = arith.constant dense<0.000000e+00> : vector<16xf32>
    %165 = vector.multi_reduction <add>, %164, %cst_88 [1] : vector<16x32xf32> to vector<16xf32>
    %166 = vector.shape_cast %165 : vector<16xf32> to vector<16x1xf32>
    %cst_89 = arith.constant 3.200000e+01 : f32
    %167 = vector.broadcast %cst_89 : f32 to vector<16x1xf32>
    %168 = arith.divf %166, %167 : vector<16x1xf32>
    %cst_90 = arith.constant 9.99999974E-6 : f32
    %169 = vector.broadcast %cst_90 : f32 to vector<16x1xf32>
    %170 = arith.addf %168, %169 : vector<16x1xf32>
    %171 = math.rsqrt %170 : vector<16x1xf32>
    %172 = vector.broadcast %171 : vector<16x1xf32> to vector<16x32xf32>
    %173 = arith.mulf %163, %172 : vector<16x32xf32>
    %174 = vector.broadcast %156 : vector<1x32xf32> to vector<16x32xf32>
    %175 = arith.mulf %173, %174 : vector<16x32xf32>
    %176 = vector.broadcast %157 : vector<1x32xf32> to vector<16x32xf32>
    %177 = arith.addf %175, %176 : vector<16x32xf32>
    %c0_91 = arith.constant 0 : index
    %c0_92 = arith.constant 0 : index
    %178 = vector.load %arg16[%c0_91, %c0_92] : memref<32x96xf32, #tpu.memory_space<vmem>>, vector<32x96xf32>
    %cst_93 = arith.constant dense<0.000000e+00> : vector<16x96xf32>
    %179 = tpu.matmul %15, %178, %cst_93 {dimension_numbers = #tpu.dot_dimension_numbers<[1], [0], [0], [1], [0, 0, 1, 1], [], []>} : vector<16x32xf32>, vector<32x96xf32>, vector<16x96xf32> -> vector<16x96xf32>
    %c0_94 = arith.constant 0 : index
    %c0_95 = arith.constant 0 : index
    %180 = vector.load %arg17[%c0_94, %c0_95] : memref<1x96xf32, #tpu.memory_space<vmem>>, vector<1x96xf32>
    %181 = vector.broadcast %180 : vector<1x96xf32> to vector<16x96xf32>
    %182 = arith.addf %179, %181 : vector<16x96xf32>
    %c0_96 = arith.constant 0 : index
    %c0_97 = arith.constant 0 : index
    %183 = vector.load %arg40[%c0_96, %c0_97] : memref<16x96xf32, #tpu.memory_space<vmem>>, vector<16x96xf32>
    tpu.vector_store %arg40[%c0_96, %c0_97], %182 {strides = array<i32>} : memref<16x96xf32, #tpu.memory_space<vmem>>, vector<16x96xf32>,
    %c0_98 = arith.constant 0 : index
    %c0_99 = arith.constant 0 : index
    %184 = vector.load %arg40[%c0_98, %c0_99] : memref<16x96xf32, #tpu.memory_space<vmem>>, vector<16x8xf32>
    %185 = vector.shape_cast %184 : vector<16x8xf32> to vector<2x8x8xf32>
    %c0_100 = arith.constant 0 : index
    %c32_101 = arith.constant 32 : index
    %186 = vector.load %arg40[%c0_100, %c32_101] : memref<16x96xf32, #tpu.memory_space<vmem>>, vector<16x8xf32>
    %187 = vector.shape_cast %186 : vector<16x8xf32> to vector<2x8x8xf32>
    %c0_102 = arith.constant 0 : index
    %c64_103 = arith.constant 64 : index
    %188 = vector.load %arg40[%c0_102, %c64_103] : memref<16x96xf32, #tpu.memory_space<vmem>>, vector<16x8xf32>
    %189 = vector.shape_cast %188 : vector<16x8xf32> to vector<2x8x8xf32>
    "tpu.trace_start"() <{level = 10 : i32, message = "bqd,bkd->bqk"}> : () -> ()
    %cst_104 = arith.constant dense<0.000000e+00> : vector<2x8x8xf32>
    %190 = tpu.matmul %185, %187, %cst_104 {dimension_numbers = #tpu.dot_dimension_numbers<[2], [2], [1], [1], [0, 0, 0, 1, 1, 1], [0], [0]>} : vector<2x8x8xf32>, vector<2x8x8xf32>, vector<2x8x8xf32> -> vector<2x8x8xf32>
    "tpu.trace_stop"() : () -> ()
    %cst_105 = arith.constant 0.353553385 : f32
    %191 = vector.broadcast %cst_105 : f32 to vector<2x8x8xf32>
    %192 = arith.mulf %190, %191 : vector<2x8x8xf32>
    %cst_106 = arith.constant dense<0xFF800000> : vector<2x8xf32>
    %193 = vector.multi_reduction <maximumf>, %192, %cst_106 [2] : vector<2x8x8xf32> to vector<2x8xf32>
    %194 = vector.shape_cast %193 : vector<2x8xf32> to vector<2x8x1xf32>
    %195 = vector.broadcast %194 : vector<2x8x1xf32> to vector<2x8x8xf32>
    %196 = arith.subf %192, %195 : vector<2x8x8xf32>
    %197 = math.exp %196 : vector<2x8x8xf32>
    %cst_107 = arith.constant dense<0.000000e+00> : vector<2x8xf32>
    %198 = vector.multi_reduction <add>, %197, %cst_107 [2] : vector<2x8x8xf32> to vector<2x8xf32>
    %199 = vector.shape_cast %198 : vector<2x8xf32> to vector<2x8x1xf32>
    %200 = tpu.reciprocal %199 {approx = true} : vector<2x8x1xf32> -> vector<2x8x1xf32>
    %201 = vector.broadcast %200 : vector<2x8x1xf32> to vector<2x8x8xf32>
    %202 = arith.mulf %197, %201 : vector<2x8x8xf32>
    "tpu.trace_start"() <{level = 10 : i32, message = "bqk,bkd->bqd"}> : () -> ()
    %cst_108 = arith.constant dense<0.000000e+00> : vector<2x8x8xf32>
    %203 = tpu.matmul %202, %189, %cst_108 {dimension_numbers = #tpu.dot_dimension_numbers<[2], [1], [1], [2], [0, 0, 0, 1, 1, 2], [0], [0]>} : vector<2x8x8xf32>, vector<2x8x8xf32>, vector<2x8x8xf32> -> vector<2x8x8xf32>
    "tpu.trace_stop"() : () -> ()
    %c0_109 = arith.constant 0 : index
    %c0_110 = arith.constant 0 : index
    %204 = vector.load %arg18[%c0_109, %c0_110] : memref<32x32xf32, #tpu.memory_space<vmem>>, vector<8x32xf32>
    %205 = vector.shape_cast %203 : vector<2x8x8xf32> to vector<16x8xf32>
    %cst_111 = arith.constant dense<0.000000e+00> : vector<16x32xf32>
    %206 = tpu.matmul %205, %204, %cst_111 {dimension_numbers = #tpu.dot_dimension_numbers<[1], [0], [0], [1], [0, 0, 1, 1], [], []>} : vector<16x8xf32>, vector<8x32xf32>, vector<16x32xf32> -> vector<16x32xf32>
    %c0_112 = arith.constant 0 : index
    %c8_113 = arith.constant 8 : index
    %207 = vector.load %arg40[%c0_112, %c8_113] : memref<16x96xf32, #tpu.memory_space<vmem>>, vector<16x8xf32>
    %208 = vector.shape_cast %207 : vector<16x8xf32> to vector<2x8x8xf32>
    %c0_114 = arith.constant 0 : index
    %c40_115 = arith.constant 40 : index
    %209 = vector.load %arg40[%c0_114, %c40_115] : memref<16x96xf32, #tpu.memory_space<vmem>>, vector<16x8xf32>
    %210 = vector.shape_cast %209 : vector<16x8xf32> to vector<2x8x8xf32>
    %c0_116 = arith.constant 0 : index
    %c72_117 = arith.constant 72 : index
    %211 = vector.load %arg40[%c0_116, %c72_117] : memref<16x96xf32, #tpu.memory_space<vmem>>, vector<16x8xf32>
    %212 = vector.shape_cast %211 : vector<16x8xf32> to vector<2x8x8xf32>
    "tpu.trace_start"() <{level = 10 : i32, message = "bqd,bkd->bqk"}> : () -> ()
    %cst_118 = arith.constant dense<0.000000e+00> : vector<2x8x8xf32>
    %213 = tpu.matmul %208, %210, %cst_118 {dimension_numbers = #tpu.dot_dimension_numbers<[2], [2], [1], [1], [0, 0, 0, 1, 1, 1], [0], [0]>} : vector<2x8x8xf32>, vector<2x8x8xf32>, vector<2x8x8xf32> -> vector<2x8x8xf32>
    "tpu.trace_stop"() : () -> ()
    %cst_119 = arith.constant 0.353553385 : f32
    %214 = vector.broadcast %cst_119 : f32 to vector<2x8x8xf32>
    %215 = arith.mulf %213, %214 : vector<2x8x8xf32>
    %cst_120 = arith.constant dense<0xFF800000> : vector<2x8xf32>
    %216 = vector.multi_reduction <maximumf>, %215, %cst_120 [2] : vector<2x8x8xf32> to vector<2x8xf32>
    %217 = vector.shape_cast %216 : vector<2x8xf32> to vector<2x8x1xf32>
    %218 = vector.broadcast %217 : vector<2x8x1xf32> to vector<2x8x8xf32>
    %219 = arith.subf %215, %218 : vector<2x8x8xf32>
    %220 = math.exp %219 : vector<2x8x8xf32>
    %cst_121 = arith.constant dense<0.000000e+00> : vector<2x8xf32>
    %221 = vector.multi_reduction <add>, %220, %cst_121 [2] : vector<2x8x8xf32> to vector<2x8xf32>
    %222 = vector.shape_cast %221 : vector<2x8xf32> to vector<2x8x1xf32>
    %223 = tpu.reciprocal %222 {approx = true} : vector<2x8x1xf32> -> vector<2x8x1xf32>
    %224 = vector.broadcast %223 : vector<2x8x1xf32> to vector<2x8x8xf32>
    %225 = arith.mulf %220, %224 : vector<2x8x8xf32>
    "tpu.trace_start"() <{level = 10 : i32, message = "bqk,bkd->bqd"}> : () -> ()
    %cst_122 = arith.constant dense<0.000000e+00> : vector<2x8x8xf32>
    %226 = tpu.matmul %225, %212, %cst_122 {dimension_numbers = #tpu.dot_dimension_numbers<[2], [1], [1], [2], [0, 0, 0, 1, 1, 2], [0], [0]>} : vector<2x8x8xf32>, vector<2x8x8xf32>, vector<2x8x8xf32> -> vector<2x8x8xf32>
    "tpu.trace_stop"() : () -> ()
    %c8_123 = arith.constant 8 : index
    %c0_124 = arith.constant 0 : index
    %227 = vector.load %arg18[%c8_123, %c0_124] : memref<32x32xf32, #tpu.memory_space<vmem>>, vector<8x32xf32>
    %228 = vector.shape_cast %226 : vector<2x8x8xf32> to vector<16x8xf32>
    %cst_125 = arith.constant dense<0.000000e+00> : vector<16x32xf32>
    %229 = tpu.matmul %228, %227, %cst_125 {dimension_numbers = #tpu.dot_dimension_numbers<[1], [0], [0], [1], [0, 0, 1, 1], [], []>} : vector<16x8xf32>, vector<8x32xf32>, vector<16x32xf32> -> vector<16x32xf32>
    %230 = arith.addf %206, %229 : vector<16x32xf32>
    %c0_126 = arith.constant 0 : index
    %c16_127 = arith.constant 16 : index
    %231 = vector.load %arg40[%c0_126, %c16_127] : memref<16x96xf32, #tpu.memory_space<vmem>>, vector<16x8xf32>
    %232 = vector.shape_cast %231 : vector<16x8xf32> to vector<2x8x8xf32>
    %c0_128 = arith.constant 0 : index
    %c48_129 = arith.constant 48 : index
    %233 = vector.load %arg40[%c0_128, %c48_129] : memref<16x96xf32, #tpu.memory_space<vmem>>, vector<16x8xf32>
    %234 = vector.shape_cast %233 : vector<16x8xf32> to vector<2x8x8xf32>
    %c0_130 = arith.constant 0 : index
    %c80_131 = arith.constant 80 : index
    %235 = vector.load %arg40[%c0_130, %c80_131] : memref<16x96xf32, #tpu.memory_space<vmem>>, vector<16x8xf32>
    %236 = vector.shape_cast %235 : vector<16x8xf32> to vector<2x8x8xf32>
    "tpu.trace_start"() <{level = 10 : i32, message = "bqd,bkd->bqk"}> : () -> ()
    %cst_132 = arith.constant dense<0.000000e+00> : vector<2x8x8xf32>
    %237 = tpu.matmul %232, %234, %cst_132 {dimension_numbers = #tpu.dot_dimension_numbers<[2], [2], [1], [1], [0, 0, 0, 1, 1, 1], [0], [0]>} : vector<2x8x8xf32>, vector<2x8x8xf32>, vector<2x8x8xf32> -> vector<2x8x8xf32>
    "tpu.trace_stop"() : () -> ()
    %cst_133 = arith.constant 0.353553385 : f32
    %238 = vector.broadcast %cst_133 : f32 to vector<2x8x8xf32>
    %239 = arith.mulf %237, %238 : vector<2x8x8xf32>
    %cst_134 = arith.constant dense<0xFF800000> : vector<2x8xf32>
    %240 = vector.multi_reduction <maximumf>, %239, %cst_134 [2] : vector<2x8x8xf32> to vector<2x8xf32>
    %241 = vector.shape_cast %240 : vector<2x8xf32> to vector<2x8x1xf32>
    %242 = vector.broadcast %241 : vector<2x8x1xf32> to vector<2x8x8xf32>
    %243 = arith.subf %239, %242 : vector<2x8x8xf32>
    %244 = math.exp %243 : vector<2x8x8xf32>
    %cst_135 = arith.constant dense<0.000000e+00> : vector<2x8xf32>
    %245 = vector.multi_reduction <add>, %244, %cst_135 [2] : vector<2x8x8xf32> to vector<2x8xf32>
    %246 = vector.shape_cast %245 : vector<2x8xf32> to vector<2x8x1xf32>
    %247 = tpu.reciprocal %246 {approx = true} : vector<2x8x1xf32> -> vector<2x8x1xf32>
    %248 = vector.broadcast %247 : vector<2x8x1xf32> to vector<2x8x8xf32>
    %249 = arith.mulf %244, %248 : vector<2x8x8xf32>
    "tpu.trace_start"() <{level = 10 : i32, message = "bqk,bkd->bqd"}> : () -> ()
    %cst_136 = arith.constant dense<0.000000e+00> : vector<2x8x8xf32>
    %250 = tpu.matmul %249, %236, %cst_136 {dimension_numbers = #tpu.dot_dimension_numbers<[2], [1], [1], [2], [0, 0, 0, 1, 1, 2], [0], [0]>} : vector<2x8x8xf32>, vector<2x8x8xf32>, vector<2x8x8xf32> -> vector<2x8x8xf32>
    "tpu.trace_stop"() : () -> ()
    %c16_137 = arith.constant 16 : index
    %c0_138 = arith.constant 0 : index
    %251 = vector.load %arg18[%c16_137, %c0_138] : memref<32x32xf32, #tpu.memory_space<vmem>>, vector<8x32xf32>
    %252 = vector.shape_cast %250 : vector<2x8x8xf32> to vector<16x8xf32>
    %cst_139 = arith.constant dense<0.000000e+00> : vector<16x32xf32>
    %253 = tpu.matmul %252, %251, %cst_139 {dimension_numbers = #tpu.dot_dimension_numbers<[1], [0], [0], [1], [0, 0, 1, 1], [], []>} : vector<16x8xf32>, vector<8x32xf32>, vector<16x32xf32> -> vector<16x32xf32>
    %254 = arith.addf %230, %253 : vector<16x32xf32>
    %c0_140 = arith.constant 0 : index
    %c24_141 = arith.constant 24 : index
    %255 = vector.load %arg40[%c0_140, %c24_141] : memref<16x96xf32, #tpu.memory_space<vmem>>, vector<16x8xf32>
    %256 = vector.shape_cast %255 : vector<16x8xf32> to vector<2x8x8xf32>
    %c0_142 = arith.constant 0 : index
    %c56_143 = arith.constant 56 : index
    %257 = vector.load %arg40[%c0_142, %c56_143] : memref<16x96xf32, #tpu.memory_space<vmem>>, vector<16x8xf32>
    %258 = vector.shape_cast %257 : vector<16x8xf32> to vector<2x8x8xf32>
    %c0_144 = arith.constant 0 : index
    %c88_145 = arith.constant 88 : index
    %259 = vector.load %arg40[%c0_144, %c88_145] : memref<16x96xf32, #tpu.memory_space<vmem>>, vector<16x8xf32>
    %260 = vector.shape_cast %259 : vector<16x8xf32> to vector<2x8x8xf32>
    "tpu.trace_start"() <{level = 10 : i32, message = "bqd,bkd->bqk"}> : () -> ()
    %cst_146 = arith.constant dense<0.000000e+00> : vector<2x8x8xf32>
    %261 = tpu.matmul %256, %258, %cst_146 {dimension_numbers = #tpu.dot_dimension_numbers<[2], [2], [1], [1], [0, 0, 0, 1, 1, 1], [0], [0]>} : vector<2x8x8xf32>, vector<2x8x8xf32>, vector<2x8x8xf32> -> vector<2x8x8xf32>
    "tpu.trace_stop"() : () -> ()
    %cst_147 = arith.constant 0.353553385 : f32
    %262 = vector.broadcast %cst_147 : f32 to vector<2x8x8xf32>
    %263 = arith.mulf %261, %262 : vector<2x8x8xf32>
    %cst_148 = arith.constant dense<0xFF800000> : vector<2x8xf32>
    %264 = vector.multi_reduction <maximumf>, %263, %cst_148 [2] : vector<2x8x8xf32> to vector<2x8xf32>
    %265 = vector.shape_cast %264 : vector<2x8xf32> to vector<2x8x1xf32>
    %266 = vector.broadcast %265 : vector<2x8x1xf32> to vector<2x8x8xf32>
    %267 = arith.subf %263, %266 : vector<2x8x8xf32>
    %268 = math.exp %267 : vector<2x8x8xf32>
    %cst_149 = arith.constant dense<0.000000e+00> : vector<2x8xf32>
    %269 = vector.multi_reduction <add>, %268, %cst_149 [2] : vector<2x8x8xf32> to vector<2x8xf32>
    %270 = vector.shape_cast %269 : vector<2x8xf32> to vector<2x8x1xf32>
    %271 = tpu.reciprocal %270 {approx = true} : vector<2x8x1xf32> -> vector<2x8x1xf32>
    %272 = vector.broadcast %271 : vector<2x8x1xf32> to vector<2x8x8xf32>
    %273 = arith.mulf %268, %272 : vector<2x8x8xf32>
    "tpu.trace_start"() <{level = 10 : i32, message = "bqk,bkd->bqd"}> : () -> ()
    %cst_150 = arith.constant dense<0.000000e+00> : vector<2x8x8xf32>
    %274 = tpu.matmul %273, %260, %cst_150 {dimension_numbers = #tpu.dot_dimension_numbers<[2], [1], [1], [2], [0, 0, 0, 1, 1, 2], [0], [0]>} : vector<2x8x8xf32>, vector<2x8x8xf32>, vector<2x8x8xf32> -> vector<2x8x8xf32>
    "tpu.trace_stop"() : () -> ()
    %c24_151 = arith.constant 24 : index
    %c0_152 = arith.constant 0 : index
    %275 = vector.load %arg18[%c24_151, %c0_152] : memref<32x32xf32, #tpu.memory_space<vmem>>, vector<8x32xf32>
    %276 = vector.shape_cast %274 : vector<2x8x8xf32> to vector<16x8xf32>
    %cst_153 = arith.constant dense<0.000000e+00> : vector<16x32xf32>
    %277 = tpu.matmul %276, %275, %cst_153 {dimension_numbers = #tpu.dot_dimension_numbers<[1], [0], [0], [1], [0, 0, 1, 1], [], []>} : vector<16x8xf32>, vector<8x32xf32>, vector<16x32xf32> -> vector<16x32xf32>
    %278 = arith.addf %254, %277 : vector<16x32xf32>
    %c0_154 = arith.constant 0 : index
    %c0_155 = arith.constant 0 : index
    %279 = vector.load %arg19[%c0_154, %c0_155] : memref<1x32xf32, #tpu.memory_space<vmem>>, vector<1x32xf32>
    %280 = vector.broadcast %279 : vector<1x32xf32> to vector<16x32xf32>
    %281 = arith.addf %278, %280 : vector<16x32xf32>
    %282 = arith.addf %15, %281 : vector<16x32xf32>
    %c0_156 = arith.constant 0 : index
    %c0_157 = arith.constant 0 : index
    %283 = vector.load %arg20[%c0_156, %c0_157] : memref<1x32xf32, #tpu.memory_space<vmem>>, vector<1x32xf32>
    %c0_158 = arith.constant 0 : index
    %c0_159 = arith.constant 0 : index
    %284 = vector.load %arg21[%c0_158, %c0_159] : memref<1x32xf32, #tpu.memory_space<vmem>>, vector<1x32xf32>
    %cst_160 = arith.constant dense<0.000000e+00> : vector<16xf32>
    %285 = vector.multi_reduction <add>, %282, %cst_160 [1] : vector<16x32xf32> to vector<16xf32>
    %286 = vector.shape_cast %285 : vector<16xf32> to vector<16x1xf32>
    %cst_161 = arith.constant 3.200000e+01 : f32
    %287 = vector.broadcast %cst_161 : f32 to vector<16x1xf32>
    %288 = arith.divf %286, %287 : vector<16x1xf32>
    %289 = vector.broadcast %288 : vector<16x1xf32> to vector<16x32xf32>
    %290 = arith.subf %282, %289 : vector<16x32xf32>
    %291 = arith.mulf %290, %290 : vector<16x32xf32>
    %cst_162 = arith.constant dense<0.000000e+00> : vector<16xf32>
    %292 = vector.multi_reduction <add>, %291, %cst_162 [1] : vector<16x32xf32> to vector<16xf32>
    %293 = vector.shape_cast %292 : vector<16xf32> to vector<16x1xf32>
    %cst_163 = arith.constant 3.200000e+01 : f32
    %294 = vector.broadcast %cst_163 : f32 to vector<16x1xf32>
    %295 = arith.divf %293, %294 : vector<16x1xf32>
    %cst_164 = arith.constant 9.99999974E-6 : f32
    %296 = vector.broadcast %cst_164 : f32 to vector<16x1xf32>
    %297 = arith.addf %295, %296 : vector<16x1xf32>
    %298 = math.rsqrt %297 : vector<16x1xf32>
    %299 = vector.broadcast %298 : vector<16x1xf32> to vector<16x32xf32>
    %300 = arith.mulf %290, %299 : vector<16x32xf32>
    %301 = vector.broadcast %283 : vector<1x32xf32> to vector<16x32xf32>
    %302 = arith.mulf %300, %301 : vector<16x32xf32>
    %303 = vector.broadcast %284 : vector<1x32xf32> to vector<16x32xf32>
    %304 = arith.addf %302, %303 : vector<16x32xf32>
    %c0_165 = arith.constant 0 : index
    %c0_166 = arith.constant 0 : index
    %305 = vector.load %arg22[%c0_165, %c0_166] : memref<32x32xf32, #tpu.memory_space<vmem>>, vector<32x32xf32>
    %cst_167 = arith.constant dense<0.000000e+00> : vector<16x32xf32>
    %306 = tpu.matmul %304, %305, %cst_167 {dimension_numbers = #tpu.dot_dimension_numbers<[1], [0], [0], [1], [0, 0, 1, 1], [], []>} : vector<16x32xf32>, vector<32x32xf32>, vector<16x32xf32> -> vector<16x32xf32>
    %c0_168 = arith.constant 0 : index
    %c0_169 = arith.constant 0 : index
    %307 = vector.load %arg23[%c0_168, %c0_169] : memref<1x32xf32, #tpu.memory_space<vmem>>, vector<1x32xf32>
    %308 = vector.broadcast %307 : vector<1x32xf32> to vector<16x32xf32>
    %309 = arith.addf %306, %308 : vector<16x32xf32>
    %c0_170 = arith.constant 0 : index
    %c0_171 = arith.constant 0 : index
    %310 = vector.load %arg41[%c0_170, %c0_171] : memref<16x32xf32, #tpu.memory_space<vmem>>, vector<16x32xf32>
    tpu.vector_store %arg41[%c0_170, %c0_171], %309 {strides = array<i32>} : memref<16x32xf32, #tpu.memory_space<vmem>>, vector<16x32xf32>,
    %c0_172 = arith.constant 0 : index
    %c0_173 = arith.constant 0 : index
    %311 = vector.load %arg24[%c0_172, %c0_173] : memref<32x64xf32, #tpu.memory_space<vmem>>, vector<32x64xf32>
    %cst_174 = arith.constant dense<0.000000e+00> : vector<16x64xf32>
    %312 = tpu.matmul %177, %311, %cst_174 {dimension_numbers = #tpu.dot_dimension_numbers<[1], [0], [0], [1], [0, 0, 1, 1], [], []>} : vector<16x32xf32>, vector<32x64xf32>, vector<16x64xf32> -> vector<16x64xf32>
    %c0_175 = arith.constant 0 : index
    %c0_176 = arith.constant 0 : index
    %313 = vector.load %arg25[%c0_175, %c0_176] : memref<1x64xf32, #tpu.memory_space<vmem>>, vector<1x64xf32>
    %314 = vector.broadcast %313 : vector<1x64xf32> to vector<16x64xf32>
    %315 = arith.addf %312, %314 : vector<16x64xf32>
    %c0_177 = arith.constant 0 : index
    %c0_178 = arith.constant 0 : index
    %316 = vector.load %arg42[%c0_177, %c0_178] : memref<16x64xf32, #tpu.memory_space<vmem>>, vector<16x64xf32>
    tpu.vector_store %arg42[%c0_177, %c0_178], %315 {strides = array<i32>} : memref<16x64xf32, #tpu.memory_space<vmem>>, vector<16x64xf32>,
    %c0_179 = arith.constant 0 : index
    %c0_180 = arith.constant 0 : index
    %317 = vector.load %arg41[%c0_179, %c0_180] : memref<16x32xf32, #tpu.memory_space<vmem>>, vector<16x8xf32>
    %318 = vector.shape_cast %317 : vector<16x8xf32> to vector<2x8x8xf32>
    %c0_181 = arith.constant 0 : index
    %c0_182 = arith.constant 0 : index
    %319 = vector.load %arg42[%c0_181, %c0_182] : memref<16x64xf32, #tpu.memory_space<vmem>>, vector<16x8xf32>
    %320 = vector.shape_cast %319 : vector<16x8xf32> to vector<2x8x8xf32>
    %c0_183 = arith.constant 0 : index
    %c32_184 = arith.constant 32 : index
    %321 = vector.load %arg42[%c0_183, %c32_184] : memref<16x64xf32, #tpu.memory_space<vmem>>, vector<16x8xf32>
    %322 = vector.shape_cast %321 : vector<16x8xf32> to vector<2x8x8xf32>
    "tpu.trace_start"() <{level = 10 : i32, message = "bqd,bkd->bqk"}> : () -> ()
    %cst_185 = arith.constant dense<0.000000e+00> : vector<2x8x8xf32>
    %323 = tpu.matmul %318, %320, %cst_185 {dimension_numbers = #tpu.dot_dimension_numbers<[2], [2], [1], [1], [0, 0, 0, 1, 1, 1], [0], [0]>} : vector<2x8x8xf32>, vector<2x8x8xf32>, vector<2x8x8xf32> -> vector<2x8x8xf32>
    "tpu.trace_stop"() : () -> ()
    %cst_186 = arith.constant 0.353553385 : f32
    %324 = vector.broadcast %cst_186 : f32 to vector<2x8x8xf32>
    %325 = arith.mulf %323, %324 : vector<2x8x8xf32>
    %cst_187 = arith.constant dense<0xFF800000> : vector<2x8xf32>
    %326 = vector.multi_reduction <maximumf>, %325, %cst_187 [2] : vector<2x8x8xf32> to vector<2x8xf32>
    %327 = vector.shape_cast %326 : vector<2x8xf32> to vector<2x8x1xf32>
    %328 = vector.broadcast %327 : vector<2x8x1xf32> to vector<2x8x8xf32>
    %329 = arith.subf %325, %328 : vector<2x8x8xf32>
    %330 = math.exp %329 : vector<2x8x8xf32>
    %cst_188 = arith.constant dense<0.000000e+00> : vector<2x8xf32>
    %331 = vector.multi_reduction <add>, %330, %cst_188 [2] : vector<2x8x8xf32> to vector<2x8xf32>
    %332 = vector.shape_cast %331 : vector<2x8xf32> to vector<2x8x1xf32>
    %333 = tpu.reciprocal %332 {approx = true} : vector<2x8x1xf32> -> vector<2x8x1xf32>
    %334 = vector.broadcast %333 : vector<2x8x1xf32> to vector<2x8x8xf32>
    %335 = arith.mulf %330, %334 : vector<2x8x8xf32>
    "tpu.trace_start"() <{level = 10 : i32, message = "bqk,bkd->bqd"}> : () -> ()
    %cst_189 = arith.constant dense<0.000000e+00> : vector<2x8x8xf32>
    %336 = tpu.matmul %335, %322, %cst_189 {dimension_numbers = #tpu.dot_dimension_numbers<[2], [1], [1], [2], [0, 0, 0, 1, 1, 2], [0], [0]>} : vector<2x8x8xf32>, vector<2x8x8xf32>, vector<2x8x8xf32> -> vector<2x8x8xf32>
    "tpu.trace_stop"() : () -> ()
    %c0_190 = arith.constant 0 : index
    %c0_191 = arith.constant 0 : index
    %337 = vector.load %arg26[%c0_190, %c0_191] : memref<32x32xf32, #tpu.memory_space<vmem>>, vector<8x32xf32>
    %338 = vector.shape_cast %336 : vector<2x8x8xf32> to vector<16x8xf32>
    %cst_192 = arith.constant dense<0.000000e+00> : vector<16x32xf32>
    %339 = tpu.matmul %338, %337, %cst_192 {dimension_numbers = #tpu.dot_dimension_numbers<[1], [0], [0], [1], [0, 0, 1, 1], [], []>} : vector<16x8xf32>, vector<8x32xf32>, vector<16x32xf32> -> vector<16x32xf32>
    %c0_193 = arith.constant 0 : index
    %c8_194 = arith.constant 8 : index
    %340 = vector.load %arg41[%c0_193, %c8_194] : memref<16x32xf32, #tpu.memory_space<vmem>>, vector<16x8xf32>
    %341 = vector.shape_cast %340 : vector<16x8xf32> to vector<2x8x8xf32>
    %c0_195 = arith.constant 0 : index
    %c8_196 = arith.constant 8 : index
    %342 = vector.load %arg42[%c0_195, %c8_196] : memref<16x64xf32, #tpu.memory_space<vmem>>, vector<16x8xf32>
    %343 = vector.shape_cast %342 : vector<16x8xf32> to vector<2x8x8xf32>
    %c0_197 = arith.constant 0 : index
    %c40_198 = arith.constant 40 : index
    %344 = vector.load %arg42[%c0_197, %c40_198] : memref<16x64xf32, #tpu.memory_space<vmem>>, vector<16x8xf32>
    %345 = vector.shape_cast %344 : vector<16x8xf32> to vector<2x8x8xf32>
    "tpu.trace_start"() <{level = 10 : i32, message = "bqd,bkd->bqk"}> : () -> ()
    %cst_199 = arith.constant dense<0.000000e+00> : vector<2x8x8xf32>
    %346 = tpu.matmul %341, %343, %cst_199 {dimension_numbers = #tpu.dot_dimension_numbers<[2], [2], [1], [1], [0, 0, 0, 1, 1, 1], [0], [0]>} : vector<2x8x8xf32>, vector<2x8x8xf32>, vector<2x8x8xf32> -> vector<2x8x8xf32>
    "tpu.trace_stop"() : () -> ()
    %cst_200 = arith.constant 0.353553385 : f32
    %347 = vector.broadcast %cst_200 : f32 to vector<2x8x8xf32>
    %348 = arith.mulf %346, %347 : vector<2x8x8xf32>
    %cst_201 = arith.constant dense<0xFF800000> : vector<2x8xf32>
    %349 = vector.multi_reduction <maximumf>, %348, %cst_201 [2] : vector<2x8x8xf32> to vector<2x8xf32>
    %350 = vector.shape_cast %349 : vector<2x8xf32> to vector<2x8x1xf32>
    %351 = vector.broadcast %350 : vector<2x8x1xf32> to vector<2x8x8xf32>
    %352 = arith.subf %348, %351 : vector<2x8x8xf32>
    %353 = math.exp %352 : vector<2x8x8xf32>
    %cst_202 = arith.constant dense<0.000000e+00> : vector<2x8xf32>
    %354 = vector.multi_reduction <add>, %353, %cst_202 [2] : vector<2x8x8xf32> to vector<2x8xf32>
    %355 = vector.shape_cast %354 : vector<2x8xf32> to vector<2x8x1xf32>
    %356 = tpu.reciprocal %355 {approx = true} : vector<2x8x1xf32> -> vector<2x8x1xf32>
    %357 = vector.broadcast %356 : vector<2x8x1xf32> to vector<2x8x8xf32>
    %358 = arith.mulf %353, %357 : vector<2x8x8xf32>
    "tpu.trace_start"() <{level = 10 : i32, message = "bqk,bkd->bqd"}> : () -> ()
    %cst_203 = arith.constant dense<0.000000e+00> : vector<2x8x8xf32>
    %359 = tpu.matmul %358, %345, %cst_203 {dimension_numbers = #tpu.dot_dimension_numbers<[2], [1], [1], [2], [0, 0, 0, 1, 1, 2], [0], [0]>} : vector<2x8x8xf32>, vector<2x8x8xf32>, vector<2x8x8xf32> -> vector<2x8x8xf32>
    "tpu.trace_stop"() : () -> ()
    %c8_204 = arith.constant 8 : index
    %c0_205 = arith.constant 0 : index
    %360 = vector.load %arg26[%c8_204, %c0_205] : memref<32x32xf32, #tpu.memory_space<vmem>>, vector<8x32xf32>
    %361 = vector.shape_cast %359 : vector<2x8x8xf32> to vector<16x8xf32>
    %cst_206 = arith.constant dense<0.000000e+00> : vector<16x32xf32>
    %362 = tpu.matmul %361, %360, %cst_206 {dimension_numbers = #tpu.dot_dimension_numbers<[1], [0], [0], [1], [0, 0, 1, 1], [], []>} : vector<16x8xf32>, vector<8x32xf32>, vector<16x32xf32> -> vector<16x32xf32>
    %363 = arith.addf %339, %362 : vector<16x32xf32>
    %c0_207 = arith.constant 0 : index
    %c16_208 = arith.constant 16 : index
    %364 = vector.load %arg41[%c0_207, %c16_208] : memref<16x32xf32, #tpu.memory_space<vmem>>, vector<16x8xf32>
    %365 = vector.shape_cast %364 : vector<16x8xf32> to vector<2x8x8xf32>
    %c0_209 = arith.constant 0 : index
    %c16_210 = arith.constant 16 : index
    %366 = vector.load %arg42[%c0_209, %c16_210] : memref<16x64xf32, #tpu.memory_space<vmem>>, vector<16x8xf32>
    %367 = vector.shape_cast %366 : vector<16x8xf32> to vector<2x8x8xf32>
    %c0_211 = arith.constant 0 : index
    %c48_212 = arith.constant 48 : index
    %368 = vector.load %arg42[%c0_211, %c48_212] : memref<16x64xf32, #tpu.memory_space<vmem>>, vector<16x8xf32>
    %369 = vector.shape_cast %368 : vector<16x8xf32> to vector<2x8x8xf32>
    "tpu.trace_start"() <{level = 10 : i32, message = "bqd,bkd->bqk"}> : () -> ()
    %cst_213 = arith.constant dense<0.000000e+00> : vector<2x8x8xf32>
    %370 = tpu.matmul %365, %367, %cst_213 {dimension_numbers = #tpu.dot_dimension_numbers<[2], [2], [1], [1], [0, 0, 0, 1, 1, 1], [0], [0]>} : vector<2x8x8xf32>, vector<2x8x8xf32>, vector<2x8x8xf32> -> vector<2x8x8xf32>
    "tpu.trace_stop"() : () -> ()
    %cst_214 = arith.constant 0.353553385 : f32
    %371 = vector.broadcast %cst_214 : f32 to vector<2x8x8xf32>
    %372 = arith.mulf %370, %371 : vector<2x8x8xf32>
    %cst_215 = arith.constant dense<0xFF800000> : vector<2x8xf32>
    %373 = vector.multi_reduction <maximumf>, %372, %cst_215 [2] : vector<2x8x8xf32> to vector<2x8xf32>
    %374 = vector.shape_cast %373 : vector<2x8xf32> to vector<2x8x1xf32>
    %375 = vector.broadcast %374 : vector<2x8x1xf32> to vector<2x8x8xf32>
    %376 = arith.subf %372, %375 : vector<2x8x8xf32>
    %377 = math.exp %376 : vector<2x8x8xf32>
    %cst_216 = arith.constant dense<0.000000e+00> : vector<2x8xf32>
    %378 = vector.multi_reduction <add>, %377, %cst_216 [2] : vector<2x8x8xf32> to vector<2x8xf32>
    %379 = vector.shape_cast %378 : vector<2x8xf32> to vector<2x8x1xf32>
    %380 = tpu.reciprocal %379 {approx = true} : vector<2x8x1xf32> -> vector<2x8x1xf32>
    %381 = vector.broadcast %380 : vector<2x8x1xf32> to vector<2x8x8xf32>
    %382 = arith.mulf %377, %381 : vector<2x8x8xf32>
    "tpu.trace_start"() <{level = 10 : i32, message = "bqk,bkd->bqd"}> : () -> ()
    %cst_217 = arith.constant dense<0.000000e+00> : vector<2x8x8xf32>
    %383 = tpu.matmul %382, %369, %cst_217 {dimension_numbers = #tpu.dot_dimension_numbers<[2], [1], [1], [2], [0, 0, 0, 1, 1, 2], [0], [0]>} : vector<2x8x8xf32>, vector<2x8x8xf32>, vector<2x8x8xf32> -> vector<2x8x8xf32>
    "tpu.trace_stop"() : () -> ()
    %c16_218 = arith.constant 16 : index
    %c0_219 = arith.constant 0 : index
    %384 = vector.load %arg26[%c16_218, %c0_219] : memref<32x32xf32, #tpu.memory_space<vmem>>, vector<8x32xf32>
    %385 = vector.shape_cast %383 : vector<2x8x8xf32> to vector<16x8xf32>
    %cst_220 = arith.constant dense<0.000000e+00> : vector<16x32xf32>
    %386 = tpu.matmul %385, %384, %cst_220 {dimension_numbers = #tpu.dot_dimension_numbers<[1], [0], [0], [1], [0, 0, 1, 1], [], []>} : vector<16x8xf32>, vector<8x32xf32>, vector<16x32xf32> -> vector<16x32xf32>
    %387 = arith.addf %363, %386 : vector<16x32xf32>
    %c0_221 = arith.constant 0 : index
    %c24_222 = arith.constant 24 : index
    %388 = vector.load %arg41[%c0_221, %c24_222] : memref<16x32xf32, #tpu.memory_space<vmem>>, vector<16x8xf32>
    %389 = vector.shape_cast %388 : vector<16x8xf32> to vector<2x8x8xf32>
    %c0_223 = arith.constant 0 : index
    %c24_224 = arith.constant 24 : index
    %390 = vector.load %arg42[%c0_223, %c24_224] : memref<16x64xf32, #tpu.memory_space<vmem>>, vector<16x8xf32>
    %391 = vector.shape_cast %390 : vector<16x8xf32> to vector<2x8x8xf32>
    %c0_225 = arith.constant 0 : index
    %c56_226 = arith.constant 56 : index
    %392 = vector.load %arg42[%c0_225, %c56_226] : memref<16x64xf32, #tpu.memory_space<vmem>>, vector<16x8xf32>
    %393 = vector.shape_cast %392 : vector<16x8xf32> to vector<2x8x8xf32>
    "tpu.trace_start"() <{level = 10 : i32, message = "bqd,bkd->bqk"}> : () -> ()
    %cst_227 = arith.constant dense<0.000000e+00> : vector<2x8x8xf32>
    %394 = tpu.matmul %389, %391, %cst_227 {dimension_numbers = #tpu.dot_dimension_numbers<[2], [2], [1], [1], [0, 0, 0, 1, 1, 1], [0], [0]>} : vector<2x8x8xf32>, vector<2x8x8xf32>, vector<2x8x8xf32> -> vector<2x8x8xf32>
    "tpu.trace_stop"() : () -> ()
    %cst_228 = arith.constant 0.353553385 : f32
    %395 = vector.broadcast %cst_228 : f32 to vector<2x8x8xf32>
    %396 = arith.mulf %394, %395 : vector<2x8x8xf32>
    %cst_229 = arith.constant dense<0xFF800000> : vector<2x8xf32>
    %397 = vector.multi_reduction <maximumf>, %396, %cst_229 [2] : vector<2x8x8xf32> to vector<2x8xf32>
    %398 = vector.shape_cast %397 : vector<2x8xf32> to vector<2x8x1xf32>
    %399 = vector.broadcast %398 : vector<2x8x1xf32> to vector<2x8x8xf32>
    %400 = arith.subf %396, %399 : vector<2x8x8xf32>
    %401 = math.exp %400 : vector<2x8x8xf32>
    %cst_230 = arith.constant dense<0.000000e+00> : vector<2x8xf32>
    %402 = vector.multi_reduction <add>, %401, %cst_230 [2] : vector<2x8x8xf32> to vector<2x8xf32>
    %403 = vector.shape_cast %402 : vector<2x8xf32> to vector<2x8x1xf32>
    %404 = tpu.reciprocal %403 {approx = true} : vector<2x8x1xf32> -> vector<2x8x1xf32>
    %405 = vector.broadcast %404 : vector<2x8x1xf32> to vector<2x8x8xf32>
    %406 = arith.mulf %401, %405 : vector<2x8x8xf32>
    "tpu.trace_start"() <{level = 10 : i32, message = "bqk,bkd->bqd"}> : () -> ()
    %cst_231 = arith.constant dense<0.000000e+00> : vector<2x8x8xf32>
    %407 = tpu.matmul %406, %393, %cst_231 {dimension_numbers = #tpu.dot_dimension_numbers<[2], [1], [1], [2], [0, 0, 0, 1, 1, 2], [0], [0]>} : vector<2x8x8xf32>, vector<2x8x8xf32>, vector<2x8x8xf32> -> vector<2x8x8xf32>
    "tpu.trace_stop"() : () -> ()
    %c24_232 = arith.constant 24 : index
    %c0_233 = arith.constant 0 : index
    %408 = vector.load %arg26[%c24_232, %c0_233] : memref<32x32xf32, #tpu.memory_space<vmem>>, vector<8x32xf32>
    %409 = vector.shape_cast %407 : vector<2x8x8xf32> to vector<16x8xf32>
    %cst_234 = arith.constant dense<0.000000e+00> : vector<16x32xf32>
    %410 = tpu.matmul %409, %408, %cst_234 {dimension_numbers = #tpu.dot_dimension_numbers<[1], [0], [0], [1], [0, 0, 1, 1], [], []>} : vector<16x8xf32>, vector<8x32xf32>, vector<16x32xf32> -> vector<16x32xf32>
    %411 = arith.addf %387, %410 : vector<16x32xf32>
    %c0_235 = arith.constant 0 : index
    %c0_236 = arith.constant 0 : index
    %412 = vector.load %arg27[%c0_235, %c0_236] : memref<1x32xf32, #tpu.memory_space<vmem>>, vector<1x32xf32>
    %413 = vector.broadcast %412 : vector<1x32xf32> to vector<16x32xf32>
    %414 = arith.addf %411, %413 : vector<16x32xf32>
    %415 = arith.addf %304, %414 : vector<16x32xf32>
    %c0_237 = arith.constant 0 : index
    %c0_238 = arith.constant 0 : index
    %416 = vector.load %arg28[%c0_237, %c0_238] : memref<1x32xf32, #tpu.memory_space<vmem>>, vector<1x32xf32>
    %c0_239 = arith.constant 0 : index
    %c0_240 = arith.constant 0 : index
    %417 = vector.load %arg29[%c0_239, %c0_240] : memref<1x32xf32, #tpu.memory_space<vmem>>, vector<1x32xf32>
    %cst_241 = arith.constant dense<0.000000e+00> : vector<16xf32>
    %418 = vector.multi_reduction <add>, %415, %cst_241 [1] : vector<16x32xf32> to vector<16xf32>
    %419 = vector.shape_cast %418 : vector<16xf32> to vector<16x1xf32>
    %cst_242 = arith.constant 3.200000e+01 : f32
    %420 = vector.broadcast %cst_242 : f32 to vector<16x1xf32>
    %421 = arith.divf %419, %420 : vector<16x1xf32>
    %422 = vector.broadcast %421 : vector<16x1xf32> to vector<16x32xf32>
    %423 = arith.subf %415, %422 : vector<16x32xf32>
    %424 = arith.mulf %423, %423 : vector<16x32xf32>
    %cst_243 = arith.constant dense<0.000000e+00> : vector<16xf32>
    %425 = vector.multi_reduction <add>, %424, %cst_243 [1] : vector<16x32xf32> to vector<16xf32>
    %426 = vector.shape_cast %425 : vector<16xf32> to vector<16x1xf32>
    %cst_244 = arith.constant 3.200000e+01 : f32
    %427 = vector.broadcast %cst_244 : f32 to vector<16x1xf32>
    %428 = arith.divf %426, %427 : vector<16x1xf32>
    %cst_245 = arith.constant 9.99999974E-6 : f32
    %429 = vector.broadcast %cst_245 : f32 to vector<16x1xf32>
    %430 = arith.addf %428, %429 : vector<16x1xf32>
    %431 = math.rsqrt %430 : vector<16x1xf32>
    %432 = vector.broadcast %431 : vector<16x1xf32> to vector<16x32xf32>
    %433 = arith.mulf %423, %432 : vector<16x32xf32>
    %434 = vector.broadcast %416 : vector<1x32xf32> to vector<16x32xf32>
    %435 = arith.mulf %433, %434 : vector<16x32xf32>
    %436 = vector.broadcast %417 : vector<1x32xf32> to vector<16x32xf32>
    %437 = arith.addf %435, %436 : vector<16x32xf32>
    %c0_246 = arith.constant 0 : index
    %c0_247 = arith.constant 0 : index
    %438 = vector.load %arg30[%c0_246, %c0_247] : memref<32x64xf32, #tpu.memory_space<vmem>>, vector<32x64xf32>
    %cst_248 = arith.constant dense<0.000000e+00> : vector<16x64xf32>
    %439 = tpu.matmul %437, %438, %cst_248 {dimension_numbers = #tpu.dot_dimension_numbers<[1], [0], [0], [1], [0, 0, 1, 1], [], []>} : vector<16x32xf32>, vector<32x64xf32>, vector<16x64xf32> -> vector<16x64xf32>
    %c0_249 = arith.constant 0 : index
    %c0_250 = arith.constant 0 : index
    %440 = vector.load %arg31[%c0_249, %c0_250] : memref<1x64xf32, #tpu.memory_space<vmem>>, vector<1x64xf32>
    %441 = vector.broadcast %440 : vector<1x64xf32> to vector<16x64xf32>
    %442 = arith.addf %439, %441 : vector<16x64xf32>
    %cst_251 = arith.constant 0.000000e+00 : f32
    %443 = vector.broadcast %cst_251 : f32 to vector<16x64xf32>
    %444 = arith.maximumf %442, %443 : vector<16x64xf32>
    %c0_252 = arith.constant 0 : index
    %c0_253 = arith.constant 0 : index
    %445 = vector.load %arg32[%c0_252, %c0_253] : memref<64x32xf32, #tpu.memory_space<vmem>>, vector<64x32xf32>
    %cst_254 = arith.constant dense<0.000000e+00> : vector<16x32xf32>
    %446 = tpu.matmul %444, %445, %cst_254 {dimension_numbers = #tpu.dot_dimension_numbers<[1], [0], [0], [1], [0, 0, 1, 1], [], []>} : vector<16x64xf32>, vector<64x32xf32>, vector<16x32xf32> -> vector<16x32xf32>
    %c0_255 = arith.constant 0 : index
    %c0_256 = arith.constant 0 : index
    %447 = vector.load %arg33[%c0_255, %c0_256] : memref<1x32xf32, #tpu.memory_space<vmem>>, vector<1x32xf32>
    %448 = vector.broadcast %447 : vector<1x32xf32> to vector<16x32xf32>
    %449 = arith.addf %446, %448 : vector<16x32xf32>
    %450 = arith.addf %437, %449 : vector<16x32xf32>
    %c0_257 = arith.constant 0 : index
    %c0_258 = arith.constant 0 : index
    %451 = vector.load %arg34[%c0_257, %c0_258] : memref<1x32xf32, #tpu.memory_space<vmem>>, vector<1x32xf32>
    %c0_259 = arith.constant 0 : index
    %c0_260 = arith.constant 0 : index
    %452 = vector.load %arg35[%c0_259, %c0_260] : memref<1x32xf32, #tpu.memory_space<vmem>>, vector<1x32xf32>
    %cst_261 = arith.constant dense<0.000000e+00> : vector<16xf32>
    %453 = vector.multi_reduction <add>, %450, %cst_261 [1] : vector<16x32xf32> to vector<16xf32>
    %454 = vector.shape_cast %453 : vector<16xf32> to vector<16x1xf32>
    %cst_262 = arith.constant 3.200000e+01 : f32
    %455 = vector.broadcast %cst_262 : f32 to vector<16x1xf32>
    %456 = arith.divf %454, %455 : vector<16x1xf32>
    %457 = vector.broadcast %456 : vector<16x1xf32> to vector<16x32xf32>
    %458 = arith.subf %450, %457 : vector<16x32xf32>
    %459 = arith.mulf %458, %458 : vector<16x32xf32>
    %cst_263 = arith.constant dense<0.000000e+00> : vector<16xf32>
    %460 = vector.multi_reduction <add>, %459, %cst_263 [1] : vector<16x32xf32> to vector<16xf32>
    %461 = vector.shape_cast %460 : vector<16xf32> to vector<16x1xf32>
    %cst_264 = arith.constant 3.200000e+01 : f32
    %462 = vector.broadcast %cst_264 : f32 to vector<16x1xf32>
    %463 = arith.divf %461, %462 : vector<16x1xf32>
    %cst_265 = arith.constant 9.99999974E-6 : f32
    %464 = vector.broadcast %cst_265 : f32 to vector<16x1xf32>
    %465 = arith.addf %463, %464 : vector<16x1xf32>
    %466 = math.rsqrt %465 : vector<16x1xf32>
    %467 = vector.broadcast %466 : vector<16x1xf32> to vector<16x32xf32>
    %468 = arith.mulf %458, %467 : vector<16x32xf32>
    %469 = vector.broadcast %451 : vector<1x32xf32> to vector<16x32xf32>
    %470 = arith.mulf %468, %469 : vector<16x32xf32>
    %471 = vector.broadcast %452 : vector<1x32xf32> to vector<16x32xf32>
    %472 = arith.addf %470, %471 : vector<16x32xf32>
    %c0_266 = arith.constant 0 : index
    %c0_267 = arith.constant 0 : index
    %473 = vector.load %arg36[%c0_266, %c0_267] : memref<32x128xf32, #tpu.memory_space<vmem>>, vector<32x128xf32>
    %cst_268 = arith.constant dense<0.000000e+00> : vector<16x128xf32>
    %474 = tpu.matmul %472, %473, %cst_268 {dimension_numbers = #tpu.dot_dimension_numbers<[1], [0], [0], [1], [0, 0, 1, 1], [], []>} : vector<16x32xf32>, vector<32x128xf32>, vector<16x128xf32> -> vector<16x128xf32>
    %c0_269 = arith.constant 0 : index
    %c0_270 = arith.constant 0 : index
    %475 = vector.load %arg37[%c0_269, %c0_270] : memref<1x128xf32, #tpu.memory_space<vmem>>, vector<1x128xf32>
    %476 = vector.broadcast %475 : vector<1x128xf32> to vector<16x128xf32>
    %477 = arith.addf %474, %476 : vector<16x128xf32>
    %c0_271 = arith.constant 0 : index
    %c0_272 = arith.constant 0 : index
    %478 = vector.load %arg38[%c0_271, %c0_272] : memref<16x128xf32, #tpu.memory_space<vmem>>, vector<16x128xf32>
    tpu.vector_store %arg38[%c0_271, %c0_272], %477 {strides = array<i32>} : memref<16x128xf32, #tpu.memory_space<vmem>>, vector<16x128xf32>,
    return
  }
}

</mosaic_0001>

<bundles_post_ra>
// kernel: model_forward.1
= control target key start
LH: loop header
LB: loop body
LE: loop exit
PB: predicated region body
PF: predicated region fallthrough
CT: control target
= control target key end

     0   :  { %v7596_v0 = vmov 0   ;;  %s7597_s6 = smov 2   ;;  %s7598_s10 = smov 4   ;;  %v7599_v12 = vmov 0.0   ;;  %v160_v13 = vlaneseq  ;;  %vm176_vm0 = vcmask 130048   ;;  %s8368_s0 = inlined_call_operand.smem [shape: u32[39], index: -1, kind: input, shape index: {}] }
   0x1   :  { %7478 = vset.pattern.permute.xlu0 %v7596_v0  ;;  %s1_s5 = sld [smem:[%s8368_s0]]   ;;  %7479 = vset.pattern.permute.xlu1 %v7596_v0  ;;  %s7600_s14 = smov 1   ;;  %vm366_vm3 = vcmask 261120   ;;  %vm448_vm6 = vcmask 785408   ;;  %vm7603_vm7 = vmmov 0   ;;  %vm456_vm8 = vcmask 64512  }
   0x2   :  { %s6500_s9 = sld [smem:[%s8368_s0 + %s7597_s6]]   ;;  %v161_v14 = vand.u32 127, %v160_v13  ;;  %s7601_s18 = smov 3   ;;  %vm2289_vm9 = vcmask 523264  }
   0x3   :  { %s6502_s13 = sld [smem:[%s8368_s0 + %s7598_s10]]   ;;  %s7602_s22 = smov 5  }
   0x4   :  { %s6499_s17 = sld [smem:[%s8368_s0 + %s7600_s14]]   ;;  %s7604_s26 = smov 96  }
   0x5   :  { %s6501_s21 = sld [smem:[%s8368_s0 + %s7601_s18]]   ;;  %s7605_s27 = smov 64  }
   0x6   :  { %s6503_s25 = sld [smem:[%s8368_s0 + %s7602_s22]]   ;;  %s7606_s28 = smov 120  }
   0x7   :  { %v158_v1 = vld [vmem:[%s1_s5] sm:$0xff]  ;;  %v159_v4 = vld [vmem:[%s1_s5 + $0x8] sm:$0xff]  ;;  %s7607_s29 = smov 88   ;;  %s7608_s30 = smov 80  }
   0x8   :  { %v174_v2 = vld [vmem:[%s6500_s9] sm:$0xff]  ;;  %163 = vperm.xlu0 %7478, %v158_v1   ;;  %v175_v3 = vld [vmem:[%s6500_s9 + $0x8] sm:$0xff]  ;;  %s7609_s1 = smov 56   ;;  %s7610_s2 = smov 112  }
   0x9   :  { %v7312_v5 = vpack.c.bf16 %v175_v3, %v174_v2  ;;  %v355_v6 = vld [vmem:[%s6502_s13] sm:$0xff]  ;;  %v356_v7 = vld [vmem:[%s6502_s13 + $0x8] sm:$0xff]  ;;  %v357_v8 = vld [vmem:[%s6502_s13 + $0x10] sm:$0xff]  ;;  %s7611_s3 = smov 48   ;;  %s7612_s4 = smov 72  }
   0xa   :  { %v7320_v9 = vpack.c.bf16 %v356_v7, %v355_v6  ;;  %v358_v10 = vld [vmem:[%s6502_s13 + $0x18] sm:$0xff]  ;;  %v258_v19 = vld [vmem:[%s6499_s17] sm:$0xff]  ;;  %v259_v20 = vld [vmem:[%s6499_s17 + $0x8] sm:$0xff]  ;;  %s7613_s5 = smov 104   ;;  %s7614_s6 = smov 6  }
   0xb   :  { %7313 = vmatprep.subr.bf16.mxu1 %v7312_v5  ;;  %v7324_v11 = vpack.c.bf16 %v358_v10, %v357_v8  ;;  %261 = vperm.xlu1 %7479, %v258_v19   ;;  %v272_v26 = vld [vmem:[%s6501_s21] sm:$0xff]  ;;  %v273_v27 = vld [vmem:[%s6501_s21 + $0x8] sm:$0xff]  ;;  %s7802_s9 = sld [smem:[%s8368_s0 + %s7614_s6]]   ;;  %s7615_s10 = smov 40  }
   0xc   :  { %166 = vperm.xlu0 %7478, %v159_v4   ;;  %7315 = vmatpush3.bf16.msra.mxu1 %v7312_v5  ;;  %v7316_v28 = vpack.c.bf16 %v273_v27, %v272_v26  ;;  %v6545_v30 = vld [vmem:[%s6503_s25] ss:$0 sm:$0xff]  ;;  %s7616_s11 = smov 7   ;;  %s7617_s15 = smov 10  }
   0xd   :  { %7321 = vmatprep.subr.bf16.mxu0 %v7320_v9  ;;  %s6505_s14 = sld [smem:[%s8368_s0 + %s7616_s11]]   ;;  %s7618_s19 = smov 16  }
   0xe   :  { %7323 = vmatpush3.bf16.msra.mxu0 %v7320_v9  ;;  %7317 = vmatprep.subr.bf16.mxu1 %v7316_v28  ;;  %s6508_s18 = sld [smem:[%s8368_s0 + %s7617_s15]]   ;;  %s7619_s23 = smov 12  }
   0xf   :  { %7325 = vmatprep.subr.bf16.mxu0 %v7324_v11  ;;  %264 = vperm.xlu1 %7479, %v259_v20   ;;  %s7869_s22 = sld [smem:[%s8368_s0 + %s7618_s19]]   ;;  %s7620_s7 = smov 8  }
  0x10   :  { %s7876_s6 = sld [smem:[%s8368_s0 + %s7619_s23]]   ;;  %s7621_s12 = smov 9  }
  0x11   :  { %s6506_s11 = sld [smem:[%s8368_s0 + %s7620_s7]]   ;;  %s7622_s16 = smov 11  }
  0x12   :  { %7327 = vmatpush3.bf16.msra.mxu0 %v7324_v11  ;;  %s6507_s15 = sld [smem:[%s8368_s0 + %s7621_s12]]   ;;  %s7623_s20 = smov 17  }
  0x13   :  { %6918 = vmatprep.subr.mxu0 %v7599_v12  ;;  %s6509_s19 = sld [smem:[%s8368_s0 + %s7622_s16]]   ;;  %s7624_s24 = smov 13  }
  0x14   :  { %s6515_s23 = sld [smem:[%s8368_s0 + %s7623_s20]]   ;;  %s7627_s13 = smov 24  }
  0x15   :  { %s6511_s7 = sld [smem:[%s8368_s0 + %s7624_s24]]   ;;  %s7628_s17 = smov 14  }
  0x16   :  { %s6522_s16 = sld [smem:[%s8368_s0 + %s7627_s13]]   ;;  %s7629_s21 = smov 15  }
  0x17   :  { %s6512_s20 = sld [smem:[%s8368_s0 + %s7628_s17]]   ;;  %s7630_s25 = smov 22  }
  0x18   :  { %s6513_s24 = sld [smem:[%s8368_s0 + %s7629_s21]]  }
  0x87   :  { %v164_v15 = vpop.permute.xlu0 %163 }
  0x88   :  { %vm168_vm1 = vcmp.eq.s32.totalorder %v164_v15, %v161_v14 }
  0x89   :  { %v6537_v16 = vsel %vm168_vm1, 1.0, %v7599_v12 }
  0x8a   :  { %6887 = vmatprep.mubr.msk.f32.mxu1 %vm176_vm0, %v6537_v16  ;;  %v262_v23 = vpop.permute.xlu1 %261 }
  0x8b   :  { %v167_v17 = vpop.permute.xlu0 %166  ;;  %vm266_vm4 = vcmp.eq.s32.totalorder %v262_v23, %v161_v14 }
  0x8c   :  { %vm169_vm2 = vcmp.eq.s32.totalorder %v167_v17, %v161_v14  ;;  %v6541_v24 = vsel %vm266_vm4, 1.0, %v7599_v12 }
  0x8d   :  { %v6538_v18 = vsel %vm169_vm2, 1.0, %v7599_v12 }
  0x8e   :  { %6888 = vmatmul.mubr.msk.f32.vlgmr.msra.gmra.mrb[0].mxu1 %vm176_vm0, %v6538_v18  ;;  %v265_v25 = vpop.permute.xlu1 %264 }
  0x8f   :  { %6894 = vmatprep.mubr.msk.f32.mxu1 %vm176_vm0, %v6541_v24  ;;  %vm267_vm5 = vcmp.eq.s32.totalorder %v265_v25, %v161_v14  ;;  %7319 = vmatpush3.bf16.msra.mxu1 %v7316_v28 }
  0x90   :  { %v6542_v29 = vsel %vm267_vm5, 1.0, %v7599_v12  ;;  %6908 = vmatprep.subr.mxu1 %v7599_v12 }
  0x92   :  { %6895 = vmatmul.mubr.msk.f32.vlgmr.msra.gmra.mrb[2].mxu1 %vm176_vm0, %v6542_v29 }
  0x93   :  { %6910 = vmatprep.mubr.msk.f32.mxu1 %vm7603_vm7, %v7599_v12 }
 0x161   :  { %v7670_v21 = vpop.f32.mrb[0].mxu1 }
 0x162   :  { %v7672_v22 = vpop.f32.mrb[1].mxu1 }
 0x163   :  { %6905 = vmatprep.mubr.msk.f32.mxu0 %vm366_vm3, %v7672_v22 }
 0x164   :  { %6906 = vmatmul.mubr.msk.f32.vlgmr.msra.gmra.mrb[0].mxu0 %vm366_vm3, %v7670_v21 }
 0x165   :  { %6920 = vmatprep.mubr.msk.f32.mxu0 %vm7603_vm7, %v7599_v12  ;;  %v7703_v37 = vpop.f32.mrb[2].mxu1 }
 0x166   :  { %v7705_v38 = vpop.f32.mrb[3].mxu1 }
 0x237   :  { %v6907_v31 = vpop.f32.mrb[0].mxu0 }
 0x238   :  { %v445_v32 = vadd.f32 %v6907_v31, %v6545_v30  ;;  %v439_v33 = vpop.f32.mrb[1].mxu0 }
 0x239   :  { %v440_v34 = vadd.f32 %v6545_v30, %v439_v33 }
 0x23a   :  { %450 = vst.msk [vmem:[#allocation2 + $0x8] sm:$0xff] %vm448_vm6, %v445_v32 }
 0x23b   :  { %449 = vst.msk [vmem:[#allocation2] sm:$0xff] %vm448_vm6, %v440_v34 }
 0x241   :  { %v7695_v35 = vld [vmem:[#allocation2 + $0x8] sm:$0xff] }
 0x242   :  { %532 = vrot.lane.b32.xlu1 %v7695_v35, %s7604_s26  ;;  %v7699_v36 = vld [vmem:[#allocation2] sm:$0xff] }
 0x243   :  { %454 = vrot.lane.b32.xlu0 %v7699_v36, %s7604_s26 }
 0x2b4   :  { %v533_v40 = vpop.permute.xlu1 %532 }
 0x2b5   :  { %v455_v39 = vpop.permute.xlu0 %454 }
 0x2b6   :  { %6909 = vmatpush3.xpose.msk.msra.mxu1 %vm456_vm8, %v455_v39 }
 0x2b7   :  { %6913 = vmatprep.subr.mxu1 %v7599_v12 }
 0x2b9   :  { %6911 = vmatmul.mubr.msk.f32.vlgmr.msra.gmra.mrb[4].mxu1 %vm456_vm8, %v7699_v36 }
 0x2ba   :  { %6914 = vmatpush3.xpose.msk.msra.mxu1 %vm456_vm8, %v533_v40  ;;  %6915 = vmatprep.mubr.msk.f32.mxu1 %vm7603_vm7, %v7599_v12 }
 0x2bb   :  { %6923 = vmatprep.subr.mxu1 %v7599_v12 }
 0x2bd   :  { %6916 = vmatmul.mubr.msk.f32.vlgmr.msra.gmra.mrb[6].mxu1 %vm456_vm8, %v7695_v35 }
 0x2be   :  { %6925 = vmatprep.mubr.msk.f32.mxu1 %vm7603_vm7, %v7599_v12 }
 0x38c   :  { %v527_v41 = vpop.f32.mrb[4].mxu1 }
 0x38d   :  { %v6912_v42 = vpop.f32.mrb[5].mxu1  ;;  %v608_v53 = vmul.f32 0.35355338, %v527_v41 }
 0x38f   :  { %v610_v54 = vsel %vm456_vm8, %v608_v53, -inf }
 0x390   :  { %v604_v43 = vpop.f32.mrb[6].mxu1 }
 0x391   :  { %v609_v44 = vmul.f32 0.35355338, %v604_v43  ;;  %v6917_v45 = vpop.f32.mrb[7].mxu1 }
 0x393   :  { %v613_v46 = vsel %vm456_vm8, %v609_v44, -inf }
 0x394   :  { %614 = vmax.xlane.f32.xlu0 %v613_v46 }
 0x3aa   :  { %708 = vrot.lane.b32.xlu0 %v7695_v35, %s7605_s27 }
 0x3ae   :  { %867 = vrot.lane.b32.xlu0 %v7695_v35, %s7606_s28 }
 0x421   :  { %v615_v47 = vpop.xlane.xlu0 %614 }
 0x422   :  { %v617_v48 = vsub.f32 %v609_v44, %v615_v47 }
 0x424   :  { %v620_v49 = vmul.f32 1.442695, %v617_v48 }
 0x425   :  { %v709_v50 = vpop.permute.xlu0 %708 }
 0x426   :  { %7480 = vpow2.f32 %v620_v49  ;;  %6924 = vmatpush3.msra.mxu1 %v709_v50 }
 0x427   :  { %6933 = vmatprep.subr.mxu1 %v7599_v12 }
 0x429   :  { %v868_v59 = vpop.permute.xlu0 %867 }
 0x430   :  { %v7481_v51 = vpop.eup %7480 }
 0x431   :  { %v625_v52 = vsel %vm456_vm8, %v7481_v51, 0.0 }
 0x432   :  { %626 = vadd.xlane.f32.xlu1 %v625_v52 }
 0x443   :  { %869 = vrot.lane.b32.xlu1 %v7695_v35, %s7607_s29 }
 0x467   :  { %611 = vmax.xlane.f32.xlu1 %v610_v54 }
 0x478   :  { %790 = vrot.lane.b32.xlu1 %v7699_v36, %s7607_s29 }
 0x47c   :  { %788 = vrot.lane.b32.xlu1 %v7699_v36, %s7606_s28 }
 0x480   :  { %1289 = vrot.lane.b32.xlu1 %v7699_v36, %s7608_s30 }
 0x4bf   :  { %v627_v55 = vpop.xlane.xlu1 %626 }
 0x4c0   :  { %7482 = vrcp.f32 %v627_v55 }
 0x4c3   :  { %v870_v58 = vpop.permute.xlu1 %869 }
 0x4ca   :  { %v7483_v56 = vpop.eup %7482 }
 0x4cb   :  { %v631_v57 = vmul.f32 %v7483_v56, %v7481_v51 }
 0x4cd   :  { %6926 = vmatmul.mubr.msk.f32.vlgmr.msra.gmra.mrb[8].mxu1 %vm456_vm8, %v631_v57 }
 0x4ce   :  { %6934 = vmatpush3.xpose.msk.msra.mxu1 %vm456_vm8, %v870_v58  ;;  %6935 = vmatprep.mubr.msk.f32.mxu1 %vm7603_vm7, %v7599_v12 }
 0x4cf   :  { %6943 = vmatprep.subr.mxu1 %v7599_v12 }
 0x4d1   :  { %6936 = vmatmul.mubr.msk.f32.vlgmr.msra.gmra.mrb[10].mxu1 %vm456_vm8, %v868_v59  ;;  %v1121_v59 = vld [vmem:[%s7802_s9 + $0x8] sm:$0xff] }
 0x4d2   :  { %6945 = vmatprep.mubr.msk.f32.mxu1 %vm7603_vm7, %v7599_v12 }
 0x4f4   :  { %v612_v60 = vpop.xlane.xlu1 %611 }
 0x4f5   :  { %v616_v61 = vsub.f32 %v608_v53, %v612_v60  ;;  %v784_v60 = vld [vmem:[%s7802_s9] sm:$0xff] }
 0x4f7   :  { %v618_v62 = vmul.f32 1.442695, %v616_v61 }
 0x4f8   :  { %v791_v4 = vpop.permute.xlu1 %790 }
 0x4f9   :  { %7484 = vpow2.f32 %v618_v62 }
 0x4fc   :  { %v789_v8 = vpop.permute.xlu1 %788 }
 0x500   :  { %v1290_v28 = vpop.permute.xlu1 %1289 }
 0x503   :  { %v7485_v63 = vpop.eup %7484 }
 0x504   :  { %v622_v0 = vsel %vm456_vm8, %v7485_v63, 0.0 }
 0x505   :  { %623 = vadd.xlane.f32.xlu0 %v622_v0 }
 0x51b   :  { %632 = vrot.lane.b32.xlu0 %v7699_v36, %s7605_s27 }
 0x592   :  { %v624_v1 = vpop.xlane.xlu0 %623 }
 0x593   :  { %7486 = vrcp.f32 %v624_v1 }
 0x596   :  { %v633_v2 = vpop.permute.xlu0 %632 }
 0x597   :  { %6919 = vmatpush3.msra.mxu0 %v633_v2 }
 0x598   :  { %6928 = vmatprep.subr.mxu0 %v7599_v12 }
 0x59d   :  { %v7487_v3 = vpop.eup %7486 }
 0x59e   :  { %v630_v5 = vmul.f32 %v7487_v3, %v7485_v63 }
 0x5a0   :  { %6921 = vmatmul.mubr.msk.f32.vlgmr.msra.gmra.mrb[2].mxu0 %vm456_vm8, %v630_v5  ;;  %v7748_v6 = vpop.f32.mrb[8].mxu1 }
 0x5a1   :  { %6929 = vmatpush3.xpose.msk.msra.mxu0 %vm456_vm8, %v791_v4  ;;  %v6927_v7 = vpop.f32.mrb[9].mxu1  ;;  %6930 = vmatprep.mubr.msk.f32.mxu0 %vm7603_vm7, %v7599_v12 }
 0x5a2   :  { %6938 = vmatprep.subr.mxu0 %v7599_v12 }
 0x5a4   :  { %6931 = vmatmul.mubr.msk.f32.vlgmr.msra.gmra.mrb[4].mxu0 %vm456_vm8, %v789_v8  ;;  %v941_v9 = vpop.f32.mrb[10].mxu1 }
 0x5a5   :  { %v946_v10 = vmul.f32 0.35355338, %v941_v9  ;;  %v6937_v11 = vpop.f32.mrb[11].mxu1  ;;  %6940 = vmatprep.mubr.msk.f32.mxu0 %vm7603_vm7, %v7599_v12 }
 0x5a7   :  { %v950_v13 = vsel %vm456_vm8, %v946_v10, -inf }
 0x5a8   :  { %951 = vmax.xlane.f32.xlu0 %v950_v13  ;;  %v1620_v13 = vld [vmem:[%s7802_s9 + $0x10] sm:$0xff] }
 0x5be   :  { %1045 = vrot.lane.b32.xlu0 %v7695_v35, %s7609_s1 }
 0x5c2   :  { %1287 = vrot.lane.b32.xlu0 %v7699_v36, %s7610_s2 }
 0x5c6   :  { %1366 = vrot.lane.b32.xlu0 %v7695_v35, %s7610_s2 }
 0x635   :  { %v952_v14 = vpop.xlane.xlu0 %951 }
 0x636   :  { %v954_v15 = vsub.f32 %v946_v10, %v952_v14 }
 0x638   :  { %v957_v16 = vmul.f32 1.442695, %v954_v15 }
 0x639   :  { %v1046_v17 = vpop.permute.xlu0 %1045 }
 0x63a   :  { %7488 = vpow2.f32 %v957_v16  ;;  %6944 = vmatpush3.msra.mxu1 %v1046_v17 }
 0x63b   :  { %6958 = vmatprep.subr.mxu1 %v7599_v12 }
 0x63d   :  { %v1288_v32 = vpop.permute.xlu0 %1287 }
 0x641   :  { %v1367_v34 = vpop.permute.xlu0 %1366 }
 0x644   :  { %v7489_v18 = vpop.eup %7488 }
 0x645   :  { %v962_v19 = vsel %vm456_vm8, %v7489_v18, 0.0 }
 0x646   :  { %963 = vadd.xlane.f32.xlu1 %v962_v19 }
 0x657   :  { %1368 = vrot.lane.b32.xlu1 %v7695_v35, %s7608_s30 }
 0x673   :  { %v7768_v20 = vpop.f32.mrb[2].mxu0 }
 0x674   :  { %v6922_v23 = vpop.f32.mrb[3].mxu0 }
 0x677   :  { %v862_v24 = vpop.f32.mrb[4].mxu0 }
 0x678   :  { %v945_v25 = vmul.f32 0.35355338, %v862_v24  ;;  %v6932_v26 = vpop.f32.mrb[5].mxu0 }
 0x67a   :  { %v947_v27 = vsel %vm456_vm8, %v945_v25, -inf }
 0x67b   :  { %948 = vmax.xlane.f32.xlu1 %v947_v27 }
 0x6d3   :  { %v964_v29 = vpop.xlane.xlu1 %963 }
 0x6d4   :  { %7490 = vrcp.f32 %v964_v29 }
 0x6d7   :  { %v1369_v33 = vpop.permute.xlu1 %1368 }
 0x6de   :  { %v7491_v30 = vpop.eup %7490 }
 0x6df   :  { %v968_v31 = vmul.f32 %v7491_v30, %v7489_v18 }
 0x6e1   :  { %6946 = vmatmul.mubr.msk.f32.vlgmr.msra.gmra.mrb[12].mxu1 %vm456_vm8, %v968_v31 }
 0x6e2   :  { %6959 = vmatpush3.xpose.msk.msra.mxu1 %vm456_vm8, %v1290_v28  ;;  %6960 = vmatprep.mubr.msk.f32.mxu1 %vm7603_vm7, %v7599_v12 }
 0x6e3   :  { %6963 = vmatprep.subr.mxu1 %v7599_v12 }
 0x6e5   :  { %6961 = vmatmul.mubr.msk.f32.vlgmr.msra.gmra.mrb[14].mxu1 %vm456_vm8, %v1288_v32 }
 0x6e6   :  { %6964 = vmatpush3.xpose.msk.msra.mxu1 %vm456_vm8, %v1369_v33  ;;  %6965 = vmatprep.mubr.msk.f32.mxu1 %vm7603_vm7, %v7599_v12 }
 0x6e7   :  { %6973 = vmatprep.subr.mxu1 %v7599_v12 }
 0x6e9   :  { %6966 = vmatmul.mubr.msk.f32.vlgmr.msra.gmra.mrb[16].mxu1 %vm456_vm8, %v1367_v34 }
 0x6ea   :  { %6975 = vmatprep.mubr.msk.f32.mxu1 %vm7603_vm7, %v7599_v12 }
 0x708   :  { %v949_v39 = vpop.xlane.xlu1 %948 }
 0x709   :  { %v953_v40 = vsub.f32 %v945_v25, %v949_v39 }
 0x70b   :  { %v955_v41 = vmul.f32 1.442695, %v953_v40 }
 0x70d   :  { %7492 = vpow2.f32 %v955_v41 }
 0x717   :  { %v7493_v42 = vpop.eup %7492 }
 0x718   :  { %v959_v43 = vsel %vm456_vm8, %v7493_v42, 0.0 }
 0x719   :  { %960 = vadd.xlane.f32.xlu0 %v959_v43 }
 0x72f   :  { %969 = vrot.lane.b32.xlu0 %v7699_v36, %s7609_s1 }
 0x733   :  { %1544 = vrot.lane.b32.xlu0 %v7695_v35, %s7611_s3 }
 0x737   :  { %1709 = vrot.lane.b32.xlu0 %v7699_v36, %s7612_s4 }
 0x73b   :  { %1788 = vrot.lane.b32.xlu0 %v7695_v35, %s7612_s4 }
 0x73f   :  { %1707 = vrot.lane.b32.xlu0 %v7699_v36, %s7613_s5 }
 0x7a6   :  { %v961_v44 = vpop.xlane.xlu0 %960 }
 0x7a7   :  { %7494 = vrcp.f32 %v961_v44 }
 0x7aa   :  { %v970_v45 = vpop.permute.xlu0 %969 }
 0x7ab   :  { %6939 = vmatpush3.msra.mxu0 %v970_v45 }
 0x7ac   :  { %6948 = vmatprep.subr.mxu0 %v1121_v59 }
 0x7ae   :  { %v1545_v46 = vpop.permute.xlu0 %1544 }
 0x7af   :  { %6974 = vmatpush3.msra.mxu1 %v1545_v46 }
 0x7b0   :  { %6983 = vmatprep.subr.mxu1 %v7599_v12 }
 0x7b1   :  { %v7495_v47 = vpop.eup %7494 }
 0x7b2   :  { %v967_v48 = vmul.f32 %v7495_v47, %v7493_v42  ;;  %v1710_v15 = vpop.permute.xlu0 %1709 }
 0x7b4   :  { %6941 = vmatmul.mubr.msk.f32.vlgmr.msra.gmra.mrb[6].mxu0 %vm456_vm8, %v967_v48  ;;  %v1117_v49 = vpop.f32.mrb[12].mxu1 }
 0x7b5   :  { %v6947_v50 = vpop.f32.mrb[13].mxu1  ;;  %6949 = vmatpush3.msra.mxu0 %v1121_v59 }
 0x7b6   :  { %6953 = vmatprep.subr.mxu0 %v784_v60  ;;  %v1789_v19 = vpop.permute.xlu0 %1788 }
 0x7b8   :  { %v1361_v51 = vpop.f32.mrb[14].mxu1 }
 0x7b9   :  { %v1444_v52 = vmul.f32 0.35355338, %v1361_v51  ;;  %v6962_v53 = vpop.f32.mrb[15].mxu1 }
 0x7bb   :  { %v1446_v54 = vsel %vm456_vm8, %v1444_v52, -inf }
 0x7bc   :  { %1447 = vmax.xlane.f32.xlu1 %v1446_v54  ;;  %v1440_v55 = vpop.f32.mrb[16].mxu1  ;;  %v2040_v54 = vld [vmem:[%s7802_s9 + $0x18] sm:$0xff] }
 0x7bd   :  { %v1445_v56 = vmul.f32 0.35355338, %v1440_v55  ;;  %v6967_v57 = vpop.f32.mrb[17].mxu1 }
 0x7bf   :  { %v1449_v58 = vsel %vm456_vm8, %v1445_v56, -inf }
 0x7c0   :  { %1450 = vmax.xlane.f32.xlu1 %v1449_v58 }
 0x849   :  { %v1448_v61 = vpop.xlane.xlu1 %1447 }
 0x84a   :  { %v1452_v62 = vsub.f32 %v1444_v52, %v1448_v61 }
 0x84c   :  { %v1454_v63 = vmul.f32 1.442695, %v1452_v62 }
 0x84d   :  { %v1451_v0 = vpop.xlane.xlu1 %1450 }
 0x84e   :  { %7496 = vpow2.f32 %v1454_v63  ;;  %v1453_v1 = vsub.f32 %v1445_v56, %v1451_v0 }
 0x850   :  { %v1456_v2 = vmul.f32 1.442695, %v1453_v1 }
 0x852   :  { %7498 = vpow2.f32 %v1456_v2 }
 0x858   :  { %v7497_v3 = vpop.eup %7496 }
 0x859   :  { %v1458_v4 = vsel %vm456_vm8, %v7497_v3, 0.0 }
 0x85a   :  { %1459 = vadd.xlane.f32.xlu1 %v1458_v4 }
 0x85c   :  { %v7499_v5 = vpop.eup %7498 }
 0x85d   :  { %v1461_v7 = vsel %vm456_vm8, %v7499_v5, 0.0 }
 0x85e   :  { %1462 = vadd.xlane.f32.xlu1 %v1461_v7 }
 0x86f   :  { %1468 = vrot.lane.b32.xlu1 %v7699_v36, %s7611_s3 }
 0x873   :  { %1786 = vrot.lane.b32.xlu1 %v7695_v35, %s7613_s5 }
 0x887   :  { %v1041_v8 = vpop.f32.mrb[6].mxu0 }
 0x888   :  { %v6942_v9 = vpop.f32.mrb[7].mxu0  ;;  %6950 = vmatprep.mubr.msk.f32.mxu0 %vm456_vm8, %v1041_v8 }
 0x889   :  { %6951 = vmatmul.mubr.msk.f32.vlgmr.msra.gmra.mrb[8].mxu0 %vm456_vm8, %v1117_v49 }
 0x88a   :  { %6955 = vmatprep.mubr.msk.f32.mxu0 %vm456_vm8, %v7768_v20  ;;  %6954 = vmatpush3.msra.mxu0 %v784_v60  ;;  %v1708_v20 = vpop.permute.xlu0 %1707 }
 0x88b   :  { %6968 = vmatprep.subr.mxu0 %v7599_v12 }
 0x891   :  { %6956 = vmatmul.mubr.msk.f32.vlgmr.msra.gmra.mrb[8].mxu0 %vm456_vm8, %v7748_v6 }
 0x892   :  { %6970 = vmatprep.mubr.msk.f32.mxu0 %vm7603_vm7, %v7599_v12 }
 0x8e7   :  { %v1460_v10 = vpop.xlane.xlu1 %1459 }
 0x8e8   :  { %7500 = vrcp.f32 %v1460_v10 }
 0x8eb   :  { %v1463_v11 = vpop.xlane.xlu1 %1462 }
 0x8ec   :  { %7502 = vrcp.f32 %v1463_v11 }
 0x8ef   :  { %v1469_v14 = vpop.permute.xlu1 %1468 }
 0x8f0   :  { %6969 = vmatpush3.msra.mxu0 %v1469_v14 }
 0x8f1   :  { %6978 = vmatprep.subr.mxu0 %v1620_v13 }
 0x8f2   :  { %v7501_v16 = vpop.eup %7500 }
 0x8f3   :  { %v1466_v17 = vmul.f32 %v7501_v16, %v7497_v3  ;;  %v1787_v27 = vpop.permute.xlu1 %1786 }
 0x8f5   :  { %6971 = vmatmul.mubr.msk.f32.vlgmr.msra.gmra.mrb[10].mxu0 %vm456_vm8, %v1466_v17  ;;  %v2181_v17 = vld [vmem:[%s6508_s18 + $0x8] sm:$0xff] }
 0x8f6   :  { %v7503_v18 = vpop.eup %7502  ;;  %6979 = vmatpush3.msra.mxu0 %v1620_v13 }
 0x8f7   :  { %v1467_v6 = vmul.f32 %v7503_v18, %v7499_v5  ;;  %6988 = vmatprep.subr.mxu0 %v7599_v12 }
 0x8f9   :  { %6976 = vmatmul.mubr.msk.f32.vlgmr.msra.gmra.mrb[18].mxu1 %vm456_vm8, %v1467_v6  ;;  %v2183_v6 = vld [vmem:[%s6508_s18 + $0x18] sm:$0xff] }
 0x8fa   :  { %6984 = vmatpush3.xpose.msk.msra.mxu1 %vm456_vm8, %v1710_v15  ;;  %6985 = vmatprep.mubr.msk.f32.mxu1 %vm7603_vm7, %v7599_v12 }
 0x8fb   :  { %6993 = vmatprep.subr.mxu1 %v7599_v12 }
 0x8fd   :  { %6986 = vmatmul.mubr.msk.f32.vlgmr.msra.gmra.mrb[20].mxu1 %vm456_vm8, %v1708_v20 }
 0x8fe   :  { %6995 = vmatprep.mubr.msk.f32.mxu1 %vm7603_vm7, %v7599_v12 }
 0x9c8   :  { %v1540_v23 = vpop.f32.mrb[10].mxu0 }
 0x9c9   :  { %v6972_v24 = vpop.f32.mrb[11].mxu0  ;;  %6980 = vmatprep.mubr.msk.f32.mxu0 %vm456_vm8, %v1540_v23  ;;  %v2417_v23 = vld [vmem:[%s7869_s22] sm:$0xff] }
 0x9ca   :  { %v2418_v24 = vld [vmem:[%s7869_s22 + $0x8] sm:$0xff] }
 0x9cc   :  { %v1616_v25 = vpop.f32.mrb[18].mxu1 }
 0x9cd   :  { %v6977_v26 = vpop.f32.mrb[19].mxu1  ;;  %6981 = vmatmul.mubr.msk.f32.vlgmr.msra.gmra.mrb[8].mxu0 %vm456_vm8, %v1616_v25  ;;  %v7352_v25 = vpack.c.bf16 %v2418_v24, %v2417_v23 }
 0x9ce   :  { %6989 = vmatpush3.xpose.msk.msra.mxu0 %vm456_vm8, %v1789_v19  ;;  %6990 = vmatprep.mubr.msk.f32.mxu0 %vm7603_vm7, %v7599_v12  ;;  %v2182_v19 = vld [vmem:[%s6508_s18 + $0x10] sm:$0xff]  ;;  %v2274_v26 = vld [vmem:[%s7876_s6] sm:$0xff] }
 0x9cf   :  { %6998 = vmatprep.subr.mxu0 %v7599_v12  ;;  %v7332_v20 = vpack.c.bf16 %v2183_v6, %v2182_v19 }
 0x9d0   :  { %v1781_v28 = vpop.f32.mrb[20].mxu1 }
 0x9d1   :  { %v1864_v29 = vmul.f32 0.35355338, %v1781_v28  ;;  %v6987_v30 = vpop.f32.mrb[21].mxu1  ;;  %6991 = vmatmul.mubr.msk.f32.vlgmr.msra.gmra.mrb[12].mxu0 %vm456_vm8, %v1787_v27  ;;  %v2275_v27 = vld [vmem:[%s7876_s6 + $0x8] sm:$0xff]  ;;  %v2276_v28 = vld [vmem:[%s7876_s6 + $0x10] sm:$0xff] }
 0x9d2   :  { %7000 = vmatprep.mubr.msk.f32.mxu0 %vm7603_vm7, %v7599_v12  ;;  %v2277_v30 = vld [vmem:[%s7876_s6 + $0x18] sm:$0xff] }
 0x9d3   :  { %v1866_v31 = vsel %vm456_vm8, %v1864_v29, -inf }
 0x9d4   :  { %1867 = vmax.xlane.f32.xlu0 %v1866_v31  ;;  %v7340_v31 = vpack.c.bf16 %v2277_v30, %v2276_v28 }
 0xa61   :  { %v1868_v32 = vpop.xlane.xlu0 %1867 }
 0xa62   :  { %v1872_v33 = vsub.f32 %v1864_v29, %v1868_v32  ;;  %v7336_v29 = vpack.c.bf16 %v2275_v27, %v2274_v26  ;;  %v2278_v32 = vld [vmem:[%s7876_s6 + $0x20] sm:$0xff] }
 0xa64   :  { %v1874_v34 = vmul.f32 1.442695, %v1872_v33  ;;  %v2279_v33 = vld [vmem:[%s7876_s6 + $0x28] sm:$0xff] }
 0xa66   :  { %7504 = vpow2.f32 %v1874_v34  ;;  %v7344_v34 = vpack.c.bf16 %v2279_v33, %v2278_v32 }
 0xa70   :  { %v7505_v39 = vpop.eup %7504 }
 0xa71   :  { %v1878_v40 = vsel %vm456_vm8, %v7505_v39, 0.0 }
 0xa72   :  { %1879 = vadd.xlane.f32.xlu0 %v1878_v40 }
 0xaa4   :  { %v1860_v41 = vpop.f32.mrb[12].mxu0 }
 0xaa5   :  { %v1865_v42 = vmul.f32 0.35355338, %v1860_v41  ;;  %v6992_v43 = vpop.f32.mrb[13].mxu0 }
 0xaa7   :  { %v1869_v44 = vsel %vm456_vm8, %v1865_v42, -inf }
 0xaa8   :  { %1870 = vmax.xlane.f32.xlu1 %v1869_v44 }
 0xab9   :  { %1888 = vrot.lane.b32.xlu1 %v7699_v36, %s7615_s10 }
 0xaff   :  { %v1880_v45 = vpop.xlane.xlu0 %1879 }
 0xb00   :  { %7506 = vrcp.f32 %v1880_v45 }
 0xb0a   :  { %v7507_v47 = vpop.eup %7506 }
 0xb0b   :  { %v1886_v51 = vmul.f32 %v7507_v47, %v7505_v39 }
 0xb35   :  { %v1871_v46 = vpop.xlane.xlu1 %1870 }
 0xb36   :  { %v1873_v48 = vsub.f32 %v1865_v42, %v1871_v46  ;;  %v6581_v46 = vld [vmem:[%s6506_s11] ss:$0 sm:$0xff] }
 0xb38   :  { %v1876_v49 = vmul.f32 1.442695, %v1873_v48 }
 0xb39   :  { %v1889_v50 = vpop.permute.xlu1 %1888 }
 0xb3a   :  { %7508 = vpow2.f32 %v1876_v49  ;;  %6994 = vmatpush3.msra.mxu1 %v1889_v50  ;;  %v6582_v50 = vld [vmem:[%s6507_s15] ss:$0 sm:$0xff] }
 0xb3b   :  { %6996 = vmatmul.mubr.msk.f32.vlgmr.msra.gmra.mrb[22].mxu1 %vm456_vm8, %v1886_v51 }
 0xb44   :  { %v7509_v52 = vpop.eup %7508 }
 0xb45   :  { %v1881_v53 = vsel %vm456_vm8, %v7509_v52, 0.0 }
 0xb46   :  { %1882 = vadd.xlane.f32.xlu0 %v1881_v53  ;;  %v2419_v53 = vld [vmem:[%s7869_s22 + $0x10] sm:$0xff] }
 0xb5c   :  { %1964 = vrot.lane.b32.xlu0 %v7695_v35, %s7615_s10  ;;  %v6580_v35 = vld [vmem:[%s6505_s14] ss:$0 sm:$0xff]  ;;  %s7633_s14 = smov 25  }
 0xb5d   :  { %s6523_s17 = sld [smem:[%s8368_s0 + %s7633_s14]]  }
 0xbd3   :  { %v1883_v36 = vpop.xlane.xlu0 %1882 }
 0xbd4   :  { %7510 = vrcp.f32 %v1883_v36  ;;  %v2420_v36 = vld [vmem:[%s7869_s22 + $0x18] sm:$0xff] }
 0xbd7   :  { %v1965_v55 = vpop.permute.xlu0 %1964 }
 0xbd8   :  { %6999 = vmatpush3.msra.mxu0 %v1965_v55 }
 0xbd9   :  { %7003 = vmatprep.subr.mxu0 %v2040_v54 }
 0xbde   :  { %v7511_v56 = vpop.eup %7510 }
 0xbdf   :  { %v1887_v57 = vmul.f32 %v7511_v56, %v7509_v52  ;;  %v7356_v56 = vpack.c.bf16 %v2420_v36, %v2419_v53 }
 0xbe1   :  { %7001 = vmatmul.mubr.msk.f32.vlgmr.msra.gmra.mrb[14].mxu0 %vm456_vm8, %v1887_v57  ;;  %v2280_v57 = vld [vmem:[%s7876_s6 + $0x30] sm:$0xff] }
 0xbe2   :  { %7004 = vmatpush3.msra.mxu0 %v2040_v54 }
 0xbe3   :  { %7337 = vmatprep.subr.bf16.mxu0 %v7336_v29 }
 0xc0e   :  { %v1960_v58 = vpop.f32.mrb[22].mxu1 }
 0xc0f   :  { %v6997_v59 = vpop.f32.mrb[23].mxu1  ;;  %7005 = vmatprep.mubr.msk.f32.mxu0 %vm456_vm8, %v1960_v58  ;;  %v2281_v58 = vld [vmem:[%s7876_s6 + $0x38] sm:$0xff] }
 0xc10   :  { %v7348_v59 = vpack.c.bf16 %v2281_v58, %v2280_v57 }
 0xcb4   :  { %v2036_v60 = vpop.f32.mrb[14].mxu0 }
 0xcb5   :  { %v7002_v61 = vpop.f32.mrb[15].mxu0  ;;  %7006 = vmatmul.mubr.msk.f32.vlgmr.msra.gmra.mrb[8].mxu0 %vm456_vm8, %v2036_v60  ;;  %v6583_v60 = vld [vmem:[%s6509_s19] ss:$0 sm:$0xff] }
 0xcb6   :  { %7339 = vmatpush3.bf16.msra.mxu0 %v7336_v29 }
 0xcb7   :  { %7341 = vmatprep.subr.bf16.mxu0 %v7340_v31 }
 0xcba   :  { %7343 = vmatpush3.bf16.msra.mxu0 %v7340_v31 }
 0xcbb   :  { %7345 = vmatprep.subr.bf16.mxu0 %v7344_v34 }
 0xcbe   :  { %7347 = vmatpush3.bf16.msra.mxu0 %v7344_v34 }
 0xcbf   :  { %7349 = vmatprep.subr.bf16.mxu0 %v7348_v59 }
 0xcc2   :  { %7351 = vmatpush3.bf16.msra.mxu0 %v7348_v59 }
 0xcc3   :  { %7059 = vmatprep.subr.mxu0 %v7599_v12 }
 0xd88   :  { %v7007_v62 = vpop.f32.mrb[8].mxu0 }
 0xd89   :  { %v2132_v63 = vadd.f32 %v7007_v62, %v6580_v35  ;;  %v2113_v0 = vpop.f32.mrb[9].mxu0 }
 0xd8a   :  { %v2131_v1 = vadd.f32 %v6580_v35, %v2113_v0 }
 0xd8b   :  { %v2134_v2 = vadd.f32 %v7670_v21, %v2132_v63 }
 0xd8c   :  { %v2133_v3 = vadd.f32 %v2131_v1, %v7672_v22  ;;  %v2180_v22 = vld [vmem:[%s6508_s18] sm:$0xff]  ;;  %s7634_s18 = smov 23  }
 0xd8d   :  { %v2140_v4 = vsel %vm366_vm3, %v2134_v2, 0.0  ;;  %v7328_v18 = vpack.c.bf16 %v2181_v17, %v2180_v22  ;;  %s6521_s21 = sld [smem:[%s8368_s0 + %s7634_s18]]  }
 0xd8e   :  { %2141 = vadd.xlane.f32.xlu0 %v2140_v4  ;;  %v2137_v5 = vsel %vm366_vm3, %v2133_v3, 0.0 }
 0xd8f   :  { %2138 = vadd.xlane.f32.xlu1 %v2137_v5  ;;  %7329 = vmatprep.subr.bf16.mxu1 %v7328_v18 }
 0xd90   :  { %7331 = vmatpush3.bf16.msra.mxu1 %v7328_v18 }
 0xd91   :  { %7333 = vmatprep.subr.bf16.mxu1 %v7332_v20 }
 0xd94   :  { %7335 = vmatpush3.bf16.msra.mxu1 %v7332_v20 }
 0xd95   :  { %7353 = vmatprep.subr.bf16.mxu1 %v7352_v25 }
 0xe1b   :  { %v2142_v7 = vpop.xlane.xlu0 %2141 }
 0xe1c   :  { %v2145_v8 = vmul.f32 0.03125, %v2142_v7  ;;  %v2139_v9 = vpop.xlane.xlu1 %2138 }
 0xe1d   :  { %v2144_v10 = vmul.f32 0.03125, %v2139_v9 }
 0xe1e   :  { %v2147_v11 = vsub.f32 %v2134_v2, %v2145_v8  ;;  %v6591_v2 = vld [vmem:[%s6515_s23] ss:$0 sm:$0xff]  ;;  %s7637_s23 = smov 30  }
 0xe1f   :  { %v2146_v13 = vsub.f32 %v2133_v3, %v2144_v10  ;;  %s6528_s6 = sld [smem:[%s8368_s0 + %s7637_s23]]  }
 0xe20   :  { %v2149_v14 = vmul.f32 %v2147_v11, %v2147_v11 }
 0xe21   :  { %v2148_v15 = vmul.f32 %v2146_v13, %v2146_v13 }
 0xe22   :  { %v2153_v16 = vsel %vm366_vm3, %v2149_v14, 0.0 }
 0xe23   :  { %2154 = vadd.xlane.f32.xlu0 %v2153_v16  ;;  %v2150_v21 = vsel %vm366_vm3, %v2148_v15, 0.0 }
 0xe24   :  { %2151 = vadd.xlane.f32.xlu1 %v2150_v21 }
 0xeb0   :  { %v2155_v39 = vpop.xlane.xlu0 %2154 }
 0xeb1   :  { %v2157_v40 = vmul.f32 0.03125, %v2155_v39  ;;  %v2152_v41 = vpop.xlane.xlu1 %2151 }
 0xeb2   :  { %v2156_v42 = vmul.f32 0.03125, %v2152_v41 }
 0xeb3   :  { %v2159_v43 = vadd.f32 1e-05, %v2157_v40 }
 0xeb4   :  { %v2158_v44 = vadd.f32 1e-05, %v2156_v42 }
 0xeb5   :  { %7512 = vrsqrt.f32 %v2159_v43 }
 0xeb6   :  { %7514 = vrsqrt.f32 %v2158_v44 }
 0xebf   :  { %v7513_v45 = vpop.eup %7512 }
 0xec0   :  { %v7515_v47 = vpop.eup %7514  ;;  %v2163_v48 = vmul.f32 %v7513_v45, %v2147_v11 }
 0xec1   :  { %v2162_v49 = vmul.f32 %v7515_v47, %v2146_v13  ;;  %v7945_v13 = vld [vmem:[%s6511_s7] ss:$0 sm:$0xff]  ;;  %s7638_s7 = smov 32  }
 0xec2   :  { %v2171_v51 = vmul.f32 %v6581_v46, %v2163_v48  ;;  %s8321_s8 = sld [smem:[%s8368_s0 + %s7638_s7]]  }
 0xec3   :  { %v2170_v52 = vmul.f32 %v6581_v46, %v2162_v49 }
 0xec4   :  { %v7894_v55 = vadd.f32 %v6582_v50, %v2171_v51 }
 0xec5   :  { %v7892_v54 = vadd.f32 %v6582_v50, %v2170_v52 }
 0xec7   :  { %7016 = vmatprep.mubr.msk.f32.mxu1 %vm366_vm3, %v7892_v54 }
 0xec8   :  { %7017 = vmatmul.mubr.msk.f32.vlgmr.msra.gmra.mrb[24].mxu1 %vm366_vm3, %v7894_v55 }
 0xec9   :  { %7355 = vmatpush3.bf16.msra.mxu1 %v7352_v25  ;;  %7046 = vmatprep.mubr.msk.f32.mxu1 %vm366_vm3, %v7705_v38 }
 0xeca   :  { %7357 = vmatprep.subr.bf16.mxu1 %v7356_v56 }
 0xecd   :  { %7359 = vmatpush3.bf16.msra.mxu1 %v7356_v56 }
 0xece   :  { %7049 = vmatprep.subr.mxu1 %v7599_v12 }
 0xed0   :  { %7047 = vmatmul.mubr.msk.f32.vlgmr.msra.gmra.mrb[26].mxu1 %vm366_vm3, %v7703_v37 }
 0xed1   :  { %7051 = vmatprep.mubr.msk.f32.mxu1 %vm7603_vm7, %v7599_v12 }
 0xf9b   :  { %v7018_v61 = vpop.f32.mrb[24].mxu1 }
 0xf9c   :  { %v2269_v35 = vadd.f32 %v7018_v61, %v6583_v60  ;;  %v2263_v62 = vpop.f32.mrb[25].mxu1 }
 0xf9d   :  { %v2264_v63 = vadd.f32 %v6583_v60, %v2263_v62 }
 0xf9e   :  { %v2273_v1 = vmax.f32 %v2269_v35, 0.0 }
 0xf9f   :  { %v2272_v0 = vmax.f32 %v2264_v63, 0.0 }
 0xfa1   :  { %7035 = vmatprep.mubr.msk.f32.mxu0 %vm2289_vm9, %v2272_v0 }
 0xfa2   :  { %7036 = vmatmul.mubr.msk.f32.vlgmr.msra.gmra.mrb[16].mxu0 %vm2289_vm9, %v2273_v1 }
 0xfa3   :  { %v7048_v3 = vpop.f32.mrb[26].mxu1  ;;  %7061 = vmatprep.mubr.msk.f32.mxu0 %vm7603_vm7, %v7599_v12 }
 0xfa4   :  { %v2506_v4 = vadd.f32 %v7048_v3, %v6591_v2  ;;  %v2500_v5 = vpop.f32.mrb[27].mxu1 }
 0xfa5   :  { %v2501_v7 = vadd.f32 %v6591_v2, %v2500_v5 }
 0xfa6   :  { %2510 = vst.msk [vmem:[#allocation3 + $0x8] sm:$0xff] %vm448_vm6, %v2506_v4 }
 0xfa7   :  { %2509 = vst.msk [vmem:[#allocation3] sm:$0xff] %vm448_vm6, %v2501_v7 }
 0xfad   :  { %v7922_v8 = vld [vmem:[#allocation3 + $0x8] sm:$0xff] }
 0xfae   :  { %2591 = vrot.lane.b32.xlu0 %v7922_v8, %s7604_s26  ;;  %v7926_v9 = vld [vmem:[#allocation3] sm:$0xff] }
 0xfaf   :  { %2514 = vrot.lane.b32.xlu1 %v7926_v9, %s7604_s26 }
0x1020   :  { %v2592_v11 = vpop.permute.xlu0 %2591 }
0x1021   :  { %v2515_v10 = vpop.permute.xlu1 %2514 }
0x1022   :  { %7050 = vmatpush3.xpose.msk.msra.mxu1 %vm456_vm8, %v2515_v10 }
0x1023   :  { %7054 = vmatprep.subr.mxu1 %v7599_v12 }
0x1025   :  { %7052 = vmatmul.mubr.msk.f32.vlgmr.msra.gmra.mrb[28].mxu1 %vm456_vm8, %v7926_v9 }
0x1026   :  { %7055 = vmatpush3.xpose.msk.msra.mxu1 %vm456_vm8, %v2592_v11  ;;  %7056 = vmatprep.mubr.msk.f32.mxu1 %vm7603_vm7, %v7599_v12 }
0x1027   :  { %7064 = vmatprep.subr.mxu1 %v7599_v12 }
0x1029   :  { %7057 = vmatmul.mubr.msk.f32.vlgmr.msra.gmra.mrb[30].mxu1 %vm456_vm8, %v7922_v8 }
0x102a   :  { %7066 = vmatprep.mubr.msk.f32.mxu1 %vm7603_vm7, %v7599_v12 }
0x1075   :  { %v7037_v14 = vpop.f32.mrb[16].mxu0 }
0x1076   :  { %v7948_v15 = vadd.f32 %v7037_v14, %v7945_v13  ;;  %v7950_v16 = vpop.f32.mrb[17].mxu0 }
0x10f8   :  { %v2586_v21 = vpop.f32.mrb[28].mxu1 }
0x10f9   :  { %v7053_v22 = vpop.f32.mrb[29].mxu1  ;;  %v2667_v20 = vmul.f32 0.35355338, %v2586_v21 }
0x10fb   :  { %v2669_v23 = vsel %vm456_vm8, %v2667_v20, -inf }
0x10fc   :  { %v2663_v17 = vpop.f32.mrb[30].mxu1 }
0x10fd   :  { %v2668_v18 = vmul.f32 0.35355338, %v2663_v17  ;;  %v7058_v19 = vpop.f32.mrb[31].mxu1 }
0x10ff   :  { %v2672_v6 = vsel %vm456_vm8, %v2668_v18, -inf }
0x1100   :  { %2673 = vmax.xlane.f32.xlu1 %v2672_v6 }
0x1111   :  { %2767 = vrot.lane.b32.xlu1 %v7922_v8, %s7605_s27 }
0x1115   :  { %2926 = vrot.lane.b32.xlu1 %v7922_v8, %s7606_s28 }
0x1139   :  { %2670 = vmax.xlane.f32.xlu1 %v2669_v23 }
0x114a   :  { %2849 = vrot.lane.b32.xlu1 %v7926_v9, %s7607_s29 }
0x114e   :  { %2847 = vrot.lane.b32.xlu1 %v7926_v9, %s7606_s28 }
0x1152   :  { %3348 = vrot.lane.b32.xlu1 %v7926_v9, %s7608_s30 }
0x118d   :  { %v2674_v24 = vpop.xlane.xlu1 %2673 }
0x118e   :  { %v2676_v25 = vsub.f32 %v2668_v18, %v2674_v24 }
0x1190   :  { %v2679_v26 = vmul.f32 1.442695, %v2676_v25 }
0x1191   :  { %v2768_v27 = vpop.permute.xlu1 %2767 }
0x1192   :  { %7516 = vpow2.f32 %v2679_v26  ;;  %7065 = vmatpush3.msra.mxu1 %v2768_v27 }
0x1193   :  { %7074 = vmatprep.subr.mxu1 %v7599_v12 }
0x1195   :  { %v2927_v30 = vpop.permute.xlu1 %2926 }
0x119c   :  { %v7517_v28 = vpop.eup %7516 }
0x119d   :  { %v2684_v29 = vsel %vm456_vm8, %v7517_v28, 0.0 }
0x119e   :  { %2685 = vadd.xlane.f32.xlu0 %v2684_v29 }
0x11b4   :  { %2928 = vrot.lane.b32.xlu0 %v7922_v8, %s7607_s29 }
0x11c6   :  { %v2671_v31 = vpop.xlane.xlu1 %2670 }
0x11c7   :  { %v2675_v32 = vsub.f32 %v2667_v20, %v2671_v31 }
0x11c9   :  { %v2677_v33 = vmul.f32 1.442695, %v2675_v32 }
0x11ca   :  { %v2850_v47 = vpop.permute.xlu1 %2849 }
0x11cb   :  { %7518 = vpow2.f32 %v2677_v33 }
0x11ce   :  { %v2848_v49 = vpop.permute.xlu1 %2847 }
0x11d2   :  { %v3349_v4 = vpop.permute.xlu1 %3348 }
0x11d5   :  { %v7519_v34 = vpop.eup %7518 }
0x11d6   :  { %v2681_v39 = vsel %vm456_vm8, %v7519_v34, 0.0 }
0x11d7   :  { %2682 = vadd.xlane.f32.xlu0 %v2681_v39 }
0x11ed   :  { %2691 = vrot.lane.b32.xlu0 %v7926_v9, %s7605_s27  ;;  %s7625_s27 = smov 18  }
0x11ee   :  { %s8035_s9 = sld [smem:[%s8368_s0 + %s7625_s27]]  }
0x11ef   :  { %s6520_s27 = sld [smem:[%s8368_s0 + %s7630_s25]]   ;;  %s7645_s25 = smov 35  }
0x122b   :  { %v2686_v40 = vpop.xlane.xlu0 %2685 }
0x122c   :  { %7520 = vrcp.f32 %v2686_v40 }
0x122f   :  { %v2929_v43 = vpop.permute.xlu0 %2928 }
0x1236   :  { %v7521_v41 = vpop.eup %7520 }
0x1237   :  { %v2690_v42 = vmul.f32 %v7521_v41, %v7517_v28  ;;  %v3180_v41 = vld [vmem:[%s8035_s9 + $0x8] sm:$0xff] }
0x1239   :  { %7067 = vmatmul.mubr.msk.f32.vlgmr.msra.gmra.mrb[32].mxu1 %vm456_vm8, %v2690_v42  ;;  %v2843_v42 = vld [vmem:[%s8035_s9] sm:$0xff] }
0x123a   :  { %7075 = vmatpush3.xpose.msk.msra.mxu1 %vm456_vm8, %v2929_v43  ;;  %7076 = vmatprep.mubr.msk.f32.mxu1 %vm7603_vm7, %v7599_v12 }
0x123b   :  { %7084 = vmatprep.subr.mxu1 %v7599_v12 }
0x123d   :  { %7077 = vmatmul.mubr.msk.f32.vlgmr.msra.gmra.mrb[34].mxu1 %vm456_vm8, %v2927_v30 }
0x123e   :  { %7086 = vmatprep.mubr.msk.f32.mxu1 %vm7603_vm7, %v7599_v12 }
0x1264   :  { %v2683_v44 = vpop.xlane.xlu0 %2682 }
0x1265   :  { %7522 = vrcp.f32 %v2683_v44 }
0x1268   :  { %v2692_v45 = vpop.permute.xlu0 %2691 }
0x1269   :  { %7060 = vmatpush3.msra.mxu0 %v2692_v45 }
0x126a   :  { %7069 = vmatprep.subr.mxu0 %v7599_v12 }
0x126f   :  { %v7523_v46 = vpop.eup %7522 }
0x1270   :  { %v2689_v48 = vmul.f32 %v7523_v46, %v7519_v34 }
0x1272   :  { %7062 = vmatmul.mubr.msk.f32.vlgmr.msra.gmra.mrb[18].mxu0 %vm456_vm8, %v2689_v48 }
0x1273   :  { %7070 = vmatpush3.xpose.msk.msra.mxu0 %vm456_vm8, %v2850_v47  ;;  %7071 = vmatprep.mubr.msk.f32.mxu0 %vm7603_vm7, %v7599_v12 }
0x1274   :  { %7079 = vmatprep.subr.mxu0 %v7599_v12 }
0x1276   :  { %7072 = vmatmul.mubr.msk.f32.vlgmr.msra.gmra.mrb[20].mxu0 %vm456_vm8, %v2848_v49 }
0x1277   :  { %7081 = vmatprep.mubr.msk.f32.mxu0 %vm7603_vm7, %v7599_v12 }
0x130c   :  { %v7988_v50 = vpop.f32.mrb[32].mxu1 }
0x130d   :  { %v7068_v51 = vpop.f32.mrb[33].mxu1 }
0x1310   :  { %v3000_v52 = vpop.f32.mrb[34].mxu1 }
0x1311   :  { %v3005_v53 = vmul.f32 0.35355338, %v3000_v52  ;;  %v7078_v36 = vpop.f32.mrb[35].mxu1 }
0x1313   :  { %v3009_v56 = vsel %vm456_vm8, %v3005_v53, -inf }
0x1314   :  { %3010 = vmax.xlane.f32.xlu0 %v3009_v56 }
0x132a   :  { %3104 = vrot.lane.b32.xlu0 %v7922_v8, %s7609_s1 }
0x132e   :  { %3346 = vrot.lane.b32.xlu0 %v7926_v9, %s7610_s2 }
0x1332   :  { %3425 = vrot.lane.b32.xlu0 %v7922_v8, %s7610_s2 }
0x1345   :  { %v7997_v57 = vpop.f32.mrb[18].mxu0 }
0x1346   :  { %v7063_v58 = vpop.f32.mrb[19].mxu0 }
0x1349   :  { %v2921_v59 = vpop.f32.mrb[20].mxu0 }
0x134a   :  { %v7073_v60 = vpop.f32.mrb[21].mxu0  ;;  %v3004_v2 = vmul.f32 0.35355338, %v2921_v59 }
0x134b   :  { %v3679_v60 = vld [vmem:[%s8035_s9 + $0x10] sm:$0xff] }
0x134c   :  { %v3006_v3 = vsel %vm456_vm8, %v3004_v2, -inf }
0x13a1   :  { %v3011_v61 = vpop.xlane.xlu0 %3010 }
0x13a2   :  { %v3013_v35 = vsub.f32 %v3005_v53, %v3011_v61 }
0x13a4   :  { %v3016_v62 = vmul.f32 1.442695, %v3013_v35 }
0x13a5   :  { %v3105_v63 = vpop.permute.xlu0 %3104 }
0x13a6   :  { %7524 = vpow2.f32 %v3016_v62  ;;  %7085 = vmatpush3.msra.mxu1 %v3105_v63 }
0x13a7   :  { %7099 = vmatprep.subr.mxu1 %v7599_v12 }
0x13a9   :  { %v3347_v11 = vpop.permute.xlu0 %3346 }
0x13ad   :  { %v3426_v21 = vpop.permute.xlu0 %3425 }
0x13b0   :  { %v7525_v0 = vpop.eup %7524 }
0x13b1   :  { %v3021_v1 = vsel %vm456_vm8, %v7525_v0, 0.0 }
0x13b2   :  { %3022 = vadd.xlane.f32.xlu1 %v3021_v1 }
0x13c3   :  { %3427 = vrot.lane.b32.xlu1 %v7922_v8, %s7608_s30 }
0x13e7   :  { %3007 = vmax.xlane.f32.xlu1 %v3006_v3 }
0x143f   :  { %v3023_v5 = vpop.xlane.xlu1 %3022 }
0x1440   :  { %7526 = vrcp.f32 %v3023_v5 }
0x1443   :  { %v3428_v14 = vpop.permute.xlu1 %3427 }
0x144a   :  { %v7527_v7 = vpop.eup %7526 }
0x144b   :  { %v3027_v10 = vmul.f32 %v7527_v7, %v7525_v0 }
0x144d   :  { %7087 = vmatmul.mubr.msk.f32.vlgmr.msra.gmra.mrb[36].mxu1 %vm456_vm8, %v3027_v10 }
0x144e   :  { %7100 = vmatpush3.xpose.msk.msra.mxu1 %vm456_vm8, %v3349_v4  ;;  %7101 = vmatprep.mubr.msk.f32.mxu1 %vm7603_vm7, %v7599_v12 }
0x144f   :  { %7104 = vmatprep.subr.mxu1 %v7599_v12 }
0x1451   :  { %7102 = vmatmul.mubr.msk.f32.vlgmr.msra.gmra.mrb[38].mxu1 %vm456_vm8, %v3347_v11 }
0x1452   :  { %7105 = vmatpush3.xpose.msk.msra.mxu1 %vm456_vm8, %v3428_v14  ;;  %7106 = vmatprep.mubr.msk.f32.mxu1 %vm7603_vm7, %v7599_v12 }
0x1453   :  { %7114 = vmatprep.subr.mxu1 %v7599_v12 }
0x1455   :  { %7107 = vmatmul.mubr.msk.f32.vlgmr.msra.gmra.mrb[40].mxu1 %vm456_vm8, %v3426_v21 }
0x1456   :  { %7116 = vmatprep.mubr.msk.f32.mxu1 %vm7603_vm7, %v7599_v12 }
0x1474   :  { %v3008_v22 = vpop.xlane.xlu1 %3007 }
0x1475   :  { %v3012_v17 = vsub.f32 %v3004_v2, %v3008_v22 }
0x1477   :  { %v3014_v18 = vmul.f32 1.442695, %v3012_v17 }
0x1479   :  { %7528 = vpow2.f32 %v3014_v18 }
0x1483   :  { %v7529_v19 = vpop.eup %7528 }
0x1484   :  { %v3018_v6 = vsel %vm456_vm8, %v7529_v19, 0.0 }
0x1485   :  { %3019 = vadd.xlane.f32.xlu0 %v3018_v6 }
0x149b   :  { %3028 = vrot.lane.b32.xlu0 %v7926_v9, %s7609_s1  ;;  %s7631_s1 = smov 20  }
0x149f   :  { %3603 = vrot.lane.b32.xlu0 %v7922_v8, %s7611_s3 }
0x14a3   :  { %3768 = vrot.lane.b32.xlu0 %v7926_v9, %s7612_s4 }
0x14a7   :  { %3847 = vrot.lane.b32.xlu0 %v7922_v8, %s7612_s4 }
0x14ab   :  { %3766 = vrot.lane.b32.xlu0 %v7926_v9, %s7613_s5 }
0x1512   :  { %v3020_v20 = vpop.xlane.xlu0 %3019 }
0x1513   :  { %7530 = vrcp.f32 %v3020_v20 }
0x1516   :  { %v3029_v23 = vpop.permute.xlu0 %3028 }
0x1517   :  { %7080 = vmatpush3.msra.mxu0 %v3029_v23 }
0x1518   :  { %7089 = vmatprep.subr.mxu0 %v3180_v41 }
0x151a   :  { %v3604_v24 = vpop.permute.xlu0 %3603 }
0x151b   :  { %7115 = vmatpush3.msra.mxu1 %v3604_v24 }
0x151c   :  { %7124 = vmatprep.subr.mxu1 %v7599_v12 }
0x151d   :  { %v7531_v25 = vpop.eup %7530 }
0x151e   :  { %v3026_v26 = vmul.f32 %v7531_v25, %v7529_v19  ;;  %v3769_v35 = vpop.permute.xlu0 %3768 }
0x1520   :  { %7082 = vmatmul.mubr.msk.f32.vlgmr.msra.gmra.mrb[22].mxu0 %vm456_vm8, %v3026_v26  ;;  %v3176_v27 = vpop.f32.mrb[36].mxu1  ;;  %v2363_v26 = vadd.f32 %v7945_v13, %v7950_v16 }
0x1521   :  { %v7088_v28 = vpop.f32.mrb[37].mxu1  ;;  %7090 = vmatpush3.msra.mxu0 %v3180_v41  ;;  %v4099_v41 = vld [vmem:[%s8035_s9 + $0x18] sm:$0xff]  ;;  %s7639_s9 = smov 28  }
0x1522   :  { %7094 = vmatprep.subr.mxu0 %v2843_v42  ;;  %v3848_v0 = vpop.permute.xlu0 %3847  ;;  %s6526_s11 = sld [smem:[%s8368_s0 + %s7639_s9]]  }
0x1524   :  { %v3420_v29 = vpop.f32.mrb[38].mxu1 }
0x1525   :  { %v3503_v30 = vmul.f32 0.35355338, %v3420_v29  ;;  %v7103_v31 = vpop.f32.mrb[39].mxu1 }
0x1526   :  { %v3767_v1 = vpop.permute.xlu0 %3766 }
0x1527   :  { %v3505_v32 = vsel %vm456_vm8, %v3503_v30, -inf }
0x1528   :  { %v3499_v33 = vpop.f32.mrb[40].mxu1  ;;  %3506 = vmax.xlane.f32.xlu1 %v3505_v32 }
0x1529   :  { %v3504_v34 = vmul.f32 0.35355338, %v3499_v33  ;;  %v7108_v39 = vpop.f32.mrb[41].mxu1 }
0x152b   :  { %v3508_v40 = vsel %vm456_vm8, %v3504_v34, -inf }
0x152c   :  { %3509 = vmax.xlane.f32.xlu1 %v3508_v40 }
0x15b5   :  { %v3507_v43 = vpop.xlane.xlu1 %3506 }
0x15b6   :  { %v3511_v44 = vsub.f32 %v3503_v30, %v3507_v43 }
0x15b8   :  { %v3513_v45 = vmul.f32 1.442695, %v3511_v44 }
0x15b9   :  { %v3510_v46 = vpop.xlane.xlu1 %3509 }
0x15ba   :  { %7532 = vpow2.f32 %v3513_v45  ;;  %v3512_v47 = vsub.f32 %v3504_v34, %v3510_v46 }
0x15bc   :  { %v3515_v48 = vmul.f32 1.442695, %v3512_v47 }
0x15be   :  { %7534 = vpow2.f32 %v3515_v48 }
0x15c4   :  { %v7533_v49 = vpop.eup %7532 }
0x15c5   :  { %v3517_v51 = vsel %vm456_vm8, %v7533_v49, 0.0 }
0x15c6   :  { %3518 = vadd.xlane.f32.xlu1 %v3517_v51 }
0x15c8   :  { %v7535_v52 = vpop.eup %7534 }
0x15c9   :  { %v3520_v53 = vsel %vm456_vm8, %v7535_v52, 0.0 }
0x15ca   :  { %3521 = vadd.xlane.f32.xlu1 %v3520_v53 }
0x15db   :  { %3527 = vrot.lane.b32.xlu1 %v7926_v9, %s7611_s3  ;;  %s7626_s3 = smov 19  }
0x15dc   :  { %s6517_s12 = sld [smem:[%s8368_s0 + %s7626_s3]]  }
0x15dd   :  { %s6518_s3 = sld [smem:[%s8368_s0 + %s7631_s1]]   ;;  %s7646_s1 = smov 37  }
0x15df   :  { %3845 = vrot.lane.b32.xlu1 %v7922_v8, %s7613_s5 }
0x15e2   :  { %v6626_v51 = vld [vmem:[%s6517_s12] ss:$0 sm:$0xff]  ;;  %s7640_s12 = smov 29  }
0x15e3   :  { %s6527_s15 = sld [smem:[%s8368_s0 + %s7640_s12]]  }
0x15f3   :  { %v3100_v36 = vpop.f32.mrb[22].mxu0 }
0x15f4   :  { %v7083_v56 = vpop.f32.mrb[23].mxu0  ;;  %7091 = vmatprep.mubr.msk.f32.mxu0 %vm456_vm8, %v3100_v36 }
0x15f5   :  { %7092 = vmatmul.mubr.msk.f32.vlgmr.msra.gmra.mrb[24].mxu0 %vm456_vm8, %v3176_v27  ;;  %v2371_v27 = vadd.f32 %v2363_v26, %v7892_v54  ;;  %v2372_v54 = vadd.f32 %v7948_v15, %v7894_v55 }
0x15f6   :  { %7096 = vmatprep.mubr.msk.f32.mxu0 %vm456_vm8, %v7997_v57  ;;  %7095 = vmatpush3.msra.mxu0 %v2843_v42 }
0x15f7   :  { %7109 = vmatprep.subr.mxu0 %v7599_v12  ;;  %v2375_v28 = vsel %vm366_vm3, %v2371_v27, 0.0  ;;  %v2378_v16 = vsel %vm366_vm3, %v2372_v54, 0.0 }
0x15fd   :  { %7097 = vmatmul.mubr.msk.f32.vlgmr.msra.gmra.mrb[24].mxu0 %vm456_vm8, %v7988_v50 }
0x15fe   :  { %7111 = vmatprep.mubr.msk.f32.mxu0 %vm7603_vm7, %v7599_v12 }
0x1653   :  { %v3519_v58 = vpop.xlane.xlu1 %3518 }
0x1654   :  { %7536 = vrcp.f32 %v3519_v58 }
0x1657   :  { %v3522_v59 = vpop.xlane.xlu1 %3521 }
0x1658   :  { %7538 = vrcp.f32 %v3522_v59 }
0x165b   :  { %v3528_v61 = vpop.permute.xlu1 %3527 }
0x165c   :  { %7110 = vmatpush3.msra.mxu0 %v3528_v61 }
0x165d   :  { %7119 = vmatprep.subr.mxu0 %v3679_v60 }
0x165e   :  { %v7537_v62 = vpop.eup %7536 }
0x165f   :  { %v3525_v57 = vmul.f32 %v7537_v62, %v7533_v49  ;;  %v3846_v7 = vpop.permute.xlu1 %3845 }
0x1661   :  { %7112 = vmatmul.mubr.msk.f32.vlgmr.msra.gmra.mrb[26].mxu0 %vm456_vm8, %v3525_v57 }
0x1662   :  { %v7539_v63 = vpop.eup %7538  ;;  %7120 = vmatpush3.msra.mxu0 %v3679_v60 }
0x1663   :  { %v3526_v50 = vmul.f32 %v7539_v63, %v7535_v52  ;;  %7129 = vmatprep.subr.mxu0 %v7599_v12 }
0x1665   :  { %7117 = vmatmul.mubr.msk.f32.vlgmr.msra.gmra.mrb[42].mxu1 %vm456_vm8, %v3526_v50 }
0x1666   :  { %7125 = vmatpush3.xpose.msk.msra.mxu1 %vm456_vm8, %v3769_v35  ;;  %7126 = vmatprep.mubr.msk.f32.mxu1 %vm7603_vm7, %v7599_v12 }
0x1667   :  { %7134 = vmatprep.subr.mxu1 %v7599_v12 }
0x1669   :  { %7127 = vmatmul.mubr.msk.f32.vlgmr.msra.gmra.mrb[44].mxu1 %vm456_vm8, %v3767_v1 }
0x166a   :  { %7136 = vmatprep.mubr.msk.f32.mxu1 %vm7603_vm7, %v7599_v12 }
0x1734   :  { %v3599_v2 = vpop.f32.mrb[26].mxu0 }
0x1735   :  { %v7113_v3 = vpop.f32.mrb[27].mxu0  ;;  %7121 = vmatprep.mubr.msk.f32.mxu0 %vm456_vm8, %v3599_v2  ;;  %v4334_v2 = vld [vmem:[%s6522_s16 + $0x10] sm:$0xff] }
0x1736   :  { %v4335_v3 = vld [vmem:[%s6522_s16 + $0x18] sm:$0xff] }
0x1738   :  { %v3675_v4 = vpop.f32.mrb[42].mxu1 }
0x1739   :  { %v7118_v5 = vpop.f32.mrb[43].mxu1  ;;  %7122 = vmatmul.mubr.msk.f32.vlgmr.msra.gmra.mrb[24].mxu0 %vm456_vm8, %v3675_v4  ;;  %v7372_v4 = vpack.c.bf16 %v4335_v3, %v4334_v2 }
0x173a   :  { %7130 = vmatpush3.xpose.msk.msra.mxu0 %vm456_vm8, %v3848_v0  ;;  %7131 = vmatprep.mubr.msk.f32.mxu0 %vm7603_vm7, %v7599_v12 }
0x173b   :  { %7139 = vmatprep.subr.mxu0 %v7599_v12 }
0x173c   :  { %v3840_v10 = vpop.f32.mrb[44].mxu1 }
0x173d   :  { %v3923_v11 = vmul.f32 0.35355338, %v3840_v10  ;;  %v7128_v14 = vpop.f32.mrb[45].mxu1  ;;  %7132 = vmatmul.mubr.msk.f32.vlgmr.msra.gmra.mrb[28].mxu0 %vm456_vm8, %v3846_v7 }
0x173e   :  { %7141 = vmatprep.mubr.msk.f32.mxu0 %vm7603_vm7, %v7599_v12 }
0x173f   :  { %v3925_v21 = vsel %vm456_vm8, %v3923_v11, -inf }
0x1740   :  { %3926 = vmax.xlane.f32.xlu0 %v3925_v21 }
0x17cd   :  { %v3927_v22 = vpop.xlane.xlu0 %3926 }
0x17ce   :  { %v3931_v17 = vsub.f32 %v3923_v11, %v3927_v22 }
0x17d0   :  { %v3933_v18 = vmul.f32 1.442695, %v3931_v17 }
0x17d2   :  { %7540 = vpow2.f32 %v3933_v18 }
0x17dc   :  { %v7541_v19 = vpop.eup %7540 }
0x17dd   :  { %v3937_v6 = vsel %vm456_vm8, %v7541_v19, 0.0 }
0x17de   :  { %3938 = vadd.xlane.f32.xlu0 %v3937_v6 }
0x1810   :  { %v3919_v20 = vpop.f32.mrb[28].mxu0 }
0x1811   :  { %v3924_v23 = vmul.f32 0.35355338, %v3919_v20  ;;  %v7133_v24 = vpop.f32.mrb[29].mxu0 }
0x1813   :  { %v3928_v25 = vsel %vm456_vm8, %v3924_v23, -inf }
0x1814   :  { %3929 = vmax.xlane.f32.xlu1 %v3928_v25 }
0x1825   :  { %3947 = vrot.lane.b32.xlu1 %v7926_v9, %s7615_s10 }
0x1849   :  { %2376 = vadd.xlane.f32.xlu1 %v2375_v28  ;;  %v6589_v28 = vld [vmem:[%s6512_s20] ss:$0 sm:$0xff]  ;;  %s7642_s20 = smov 33  }
0x186b   :  { %v3939_v29 = vpop.xlane.xlu0 %3938 }
0x186c   :  { %7542 = vrcp.f32 %v3939_v29 }
0x1876   :  { %v7543_v31 = vpop.eup %7542 }
0x1877   :  { %v3945_v34 = vmul.f32 %v7543_v31, %v7541_v19 }
0x18a1   :  { %v3930_v30 = vpop.xlane.xlu1 %3929 }
0x18a2   :  { %v3932_v32 = vsub.f32 %v3924_v23, %v3930_v30 }
0x18a4   :  { %v3935_v33 = vmul.f32 1.442695, %v3932_v32  ;;  %v6590_v32 = vld [vmem:[%s6513_s24] ss:$0 sm:$0xff] }
0x18a5   :  { %v3948_v39 = vpop.permute.xlu1 %3947 }
0x18a6   :  { %7544 = vpow2.f32 %v3935_v33  ;;  %7135 = vmatpush3.msra.mxu1 %v3948_v39 }
0x18a7   :  { %7137 = vmatmul.mubr.msk.f32.vlgmr.msra.gmra.mrb[46].mxu1 %vm456_vm8, %v3945_v34 }
0x18b0   :  { %v7545_v9 = vpop.eup %7544 }
0x18b1   :  { %v3940_v13 = vsel %vm456_vm8, %v7545_v9, 0.0 }
0x18b2   :  { %3941 = vadd.xlane.f32.xlu0 %v3940_v13  ;;  %v4238_v13 = vld [vmem:[%s6520_s27] sm:$0xff] }
0x18c8   :  { %4023 = vrot.lane.b32.xlu0 %v7922_v8, %s7615_s10  ;;  %s7632_s10 = smov 21  }
0x18c9   :  { %s6519_s13 = sld [smem:[%s8368_s0 + %s7632_s10]]   ;;  %s7647_s10 = smov 38  }
0x18d6   :  { %v2377_v47 = vpop.xlane.xlu1 %2376 }
0x18d7   :  { %v2381_v49 = vmul.f32 0.03125, %v2377_v47  ;;  %v6627_v47 = vld [vmem:[%s6518_s3] ss:$0 sm:$0xff]  ;;  %s6535_s3 = sld [smem:[%s8368_s0 + %s7646_s1]]  }
0x18d9   :  { %v2383_v58 = vsub.f32 %v2371_v27, %v2381_v49 }
0x18db   :  { %v2385_v63 = vmul.f32 %v2383_v58, %v2383_v58 }
0x18dd   :  { %v2387_v50 = vsel %vm366_vm3, %v2385_v63, 0.0  ;;  %v6629_v63 = vld [vmem:[%s6521_s21] ss:$0 sm:$0xff] }
0x18e7   :  { %2379 = vadd.xlane.f32.xlu0 %v2378_v16 }
0x193f   :  { %v3942_v40 = vpop.xlane.xlu0 %3941 }
0x1940   :  { %7546 = vrcp.f32 %v3942_v40  ;;  %v4240_v40 = vld [vmem:[%s6520_s27 + $0x10] sm:$0xff] }
0x1943   :  { %v4024_v42 = vpop.permute.xlu0 %4023 }
0x1944   :  { %7140 = vmatpush3.msra.mxu0 %v4024_v42 }
0x1945   :  { %7144 = vmatprep.subr.mxu0 %v4099_v41 }
0x194a   :  { %v7547_v43 = vpop.eup %7546 }
0x194b   :  { %v3946_v44 = vmul.f32 %v7547_v43, %v7545_v9 }
0x194d   :  { %7142 = vmatmul.mubr.msk.f32.vlgmr.msra.gmra.mrb[30].mxu0 %vm456_vm8, %v3946_v44 }
0x194e   :  { %7145 = vmatpush3.msra.mxu0 %v4099_v41  ;;  %v4241_v41 = vld [vmem:[%s6520_s27 + $0x18] sm:$0xff] }
0x194f   :  { %v7364_v42 = vpack.c.bf16 %v4241_v41, %v4240_v40 }
0x1974   :  { %v2380_v15 = vpop.xlane.xlu0 %2379 }
0x1975   :  { %v2382_v48 = vmul.f32 0.03125, %v2380_v15 }
0x1977   :  { %v2384_v53 = vsub.f32 %v2372_v54, %v2382_v48  ;;  %v4239_v54 = vld [vmem:[%s6520_s27 + $0x8] sm:$0xff]  ;;  %s6533_s27 = sld [smem:[%s8368_s0 + %s7645_s25]]  }
0x1978   :  { %v7360_v16 = vpack.c.bf16 %v4239_v54, %v4238_v13 }
0x1979   :  { %v2386_v62 = vmul.f32 %v2384_v53, %v2384_v53 }
0x197a   :  { %v4019_v45 = vpop.f32.mrb[46].mxu1  ;;  %7361 = vmatprep.subr.bf16.mxu1 %v7360_v16 }
0x197b   :  { %v7138_v46 = vpop.f32.mrb[47].mxu1  ;;  %7146 = vmatprep.mubr.msk.f32.mxu0 %vm456_vm8, %v4019_v45  ;;  %v2390_v0 = vsel %vm366_vm3, %v2386_v62, 0.0  ;;  %7363 = vmatpush3.bf16.msra.mxu1 %v7360_v16 }
0x197c   :  { %7365 = vmatprep.subr.bf16.mxu1 %v7364_v42 }
0x197f   :  { %7367 = vmatpush3.bf16.msra.mxu1 %v7364_v42 }
0x1980   :  { %7171 = vmatprep.subr.mxu1 %v7599_v12 }
0x1a20   :  { %v4095_v8 = vpop.f32.mrb[30].mxu0 }
0x1a21   :  { %v7143_v55 = vpop.f32.mrb[31].mxu0  ;;  %7147 = vmatmul.mubr.msk.f32.vlgmr.msra.gmra.mrb[24].mxu0 %vm456_vm8, %v4095_v8 }
0x1af4   :  { %v7148_v52 = vpop.f32.mrb[24].mxu0 }
0x1af5   :  { %v4191_v36 = vadd.f32 %v7148_v52, %v6626_v51  ;;  %v4172_v56 = vpop.f32.mrb[25].mxu0  ;;  %v6628_v52 = vld [vmem:[%s6519_s13] ss:$0 sm:$0xff]  ;;  %s6536_s13 = sld [smem:[%s8368_s0 + %s7647_s10]]  }
0x1af6   :  { %v4190_v59 = vadd.f32 %v6626_v51, %v4172_v56 }
0x1af7   :  { %v4193_v60 = vadd.f32 %v7703_v37, %v4191_v36  ;;  %v4332_v37 = vld [vmem:[%s6522_s16] sm:$0xff] }
0x1af8   :  { %v4192_v61 = vadd.f32 %v4190_v59, %v7705_v38  ;;  %v4333_v38 = vld [vmem:[%s6522_s16 + $0x8] sm:$0xff]  ;;  %v6632_v59 = vld [vmem:[%s6523_s17] ss:$0 sm:$0xff]  ;;  %s7641_s16 = smov 31  }
0x1af9   :  { %v4199_v35 = vsel %vm366_vm3, %v4193_v60, 0.0  ;;  %v7368_v1 = vpack.c.bf16 %v4333_v38, %v4332_v37  ;;  %s6529_s19 = sld [smem:[%s8368_s0 + %s7641_s16]]  }
0x1afa   :  { %4200 = vadd.xlane.f32.xlu0 %v4199_v35  ;;  %v4196_v57 = vsel %vm366_vm3, %v4192_v61, 0.0 }
0x1afb   :  { %4197 = vadd.xlane.f32.xlu1 %v4196_v57  ;;  %7369 = vmatprep.subr.bf16.mxu0 %v7368_v1 }
0x1afc   :  { %7371 = vmatpush3.bf16.msra.mxu0 %v7368_v1 }
0x1afd   :  { %7373 = vmatprep.subr.bf16.mxu0 %v7372_v4 }
0x1afe   :  { %2391 = vadd.xlane.f32.xlu0 %v2390_v0 }
0x1aff   :  { %2388 = vadd.xlane.f32.xlu1 %v2387_v50 }
0x1b00   :  { %7375 = vmatpush3.bf16.msra.mxu0 %v7372_v4 }
0x1b01   :  { %7181 = vmatprep.subr.mxu0 %v7599_v12 }
0x1b87   :  { %v4201_v5 = vpop.xlane.xlu0 %4200 }
0x1b88   :  { %v4203_v7 = vmul.f32 0.03125, %v4201_v5  ;;  %v4198_v10 = vpop.xlane.xlu1 %4197 }
0x1b89   :  { %v4202_v11 = vmul.f32 0.03125, %v4198_v10 }
0x1b8a   :  { %v4205_v14 = vsub.f32 %v4193_v60, %v4203_v7 }
0x1b8b   :  { %v4204_v21 = vsub.f32 %v4192_v61, %v4202_v11  ;;  %v2392_v22 = vpop.xlane.xlu0 %2391 }
0x1b8c   :  { %v2394_v17 = vmul.f32 0.03125, %v2392_v22  ;;  %v2389_v18 = vpop.xlane.xlu1 %2388  ;;  %v4207_v19 = vmul.f32 %v4205_v14, %v4205_v14 }
0x1b8d   :  { %v2393_v6 = vmul.f32 0.03125, %v2389_v18  ;;  %v4206_v20 = vmul.f32 %v4204_v21, %v4204_v21 }
0x1b8e   :  { %v2396_v23 = vadd.f32 1e-05, %v2394_v17  ;;  %v4211_v24 = vsel %vm366_vm3, %v4207_v19, 0.0 }
0x1b8f   :  { %v2395_v25 = vadd.f32 1e-05, %v2393_v6  ;;  %4212 = vadd.xlane.f32.xlu0 %v4211_v24  ;;  %v4208_v26 = vsel %vm366_vm3, %v4206_v20, 0.0 }
0x1b90   :  { %7548 = vrsqrt.f32 %v2396_v23  ;;  %4209 = vadd.xlane.f32.xlu1 %v4208_v26 }
0x1b91   :  { %7550 = vrsqrt.f32 %v2395_v25 }
0x1b9a   :  { %v7549_v27 = vpop.eup %7548 }
0x1b9b   :  { %v7551_v29 = vpop.eup %7550  ;;  %v2400_v30 = vmul.f32 %v7549_v27, %v2384_v53 }
0x1b9c   :  { %v2399_v31 = vmul.f32 %v7551_v29, %v2383_v58 }
0x1b9d   :  { %v2408_v33 = vmul.f32 %v6589_v28, %v2400_v30 }
0x1b9e   :  { %v2407_v34 = vmul.f32 %v6589_v28, %v2399_v31 }
0x1b9f   :  { %v2416_v9 = vadd.f32 %v6590_v32, %v2408_v33 }
0x1ba0   :  { %v2415_v39 = vadd.f32 %v6590_v32, %v2407_v34 }
0x1ba2   :  { %7168 = vmatprep.mubr.msk.f32.mxu0 %vm366_vm3, %v2415_v39 }
0x1ba3   :  { %7169 = vmatmul.mubr.msk.f32.vlgmr.msra.gmra.mrb[32].mxu0 %vm366_vm3, %v2416_v9 }
0x1ba4   :  { %7183 = vmatprep.mubr.msk.f32.mxu0 %vm7603_vm7, %v7599_v12 }
0x1c1c   :  { %v4213_v43 = vpop.xlane.xlu0 %4212 }
0x1c1d   :  { %v4215_v44 = vmul.f32 0.03125, %v4213_v43  ;;  %v4210_v45 = vpop.xlane.xlu1 %4209 }
0x1c1e   :  { %v4214_v46 = vmul.f32 0.03125, %v4210_v45 }
0x1c1f   :  { %v4217_v8 = vadd.f32 1e-05, %v4215_v44 }
0x1c20   :  { %v4216_v55 = vadd.f32 1e-05, %v4214_v46 }
0x1c21   :  { %7552 = vrsqrt.f32 %v4217_v8 }
0x1c22   :  { %7554 = vrsqrt.f32 %v4216_v55 }
0x1c2b   :  { %v7553_v15 = vpop.eup %7552 }
0x1c2c   :  { %v7555_v48 = vpop.eup %7554  ;;  %v4221_v49 = vmul.f32 %v7553_v15, %v4205_v14 }
0x1c2d   :  { %v4220_v51 = vmul.f32 %v7555_v48, %v4204_v21 }
0x1c2e   :  { %v4229_v53 = vmul.f32 %v6627_v47, %v4221_v49 }
0x1c2f   :  { %v4228_v36 = vmul.f32 %v6627_v47, %v4220_v51 }
0x1c30   :  { %v8131_v58 = vadd.f32 %v6628_v52, %v4229_v53 }
0x1c31   :  { %v8129_v56 = vadd.f32 %v6628_v52, %v4228_v36 }
0x1c33   :  { %7157 = vmatprep.mubr.msk.f32.mxu1 %vm366_vm3, %v8129_v56 }
0x1c34   :  { %7158 = vmatmul.mubr.msk.f32.vlgmr.msra.gmra.mrb[48].mxu1 %vm366_vm3, %v8131_v58 }
0x1c35   :  { %7173 = vmatprep.mubr.msk.f32.mxu1 %vm7603_vm7, %v7599_v12 }
0x1c76   :  { %v7170_v60 = vpop.f32.mrb[32].mxu0 }
0x1c77   :  { %v4421_v61 = vadd.f32 %v7170_v60, %v6632_v59  ;;  %v4415_v35 = vpop.f32.mrb[33].mxu0 }
0x1c78   :  { %v4416_v62 = vadd.f32 %v6632_v59, %v4415_v35 }
0x1c79   :  { %4425 = vst.msk [vmem:[#allocation5 + $0x8] sm:$0xff] %vm2289_vm9, %v4421_v61 }
0x1c7a   :  { %4424 = vst.msk [vmem:[#allocation5] sm:$0xff] %vm2289_vm9, %v4416_v62 }
0x1c80   :  { %v8158_v2 = vld [vmem:[#allocation5 + $0x8] sm:$0xff] }
0x1c81   :  { %v8144_v57 = vld [vmem:[#allocation5] sm:$0xff] }
0x1c82   :  { %7172 = vmatpush3.xpose.msk.msra.mxu1 %vm456_vm8, %v8144_v57 }
0x1c83   :  { %7176 = vmatprep.subr.mxu1 %v7599_v12 }
0x1d07   :  { %v7159_v0 = vpop.f32.mrb[48].mxu1 }
0x1d08   :  { %v4327_v50 = vadd.f32 %v7159_v0, %v6629_v63  ;;  %v4321_v37 = vpop.f32.mrb[49].mxu1 }
0x1d09   :  { %v4322_v38 = vadd.f32 %v6629_v63, %v4321_v37 }
0x1d0a   :  { %4331 = vst.msk [vmem:[#allocation4 + $0x8] sm:$0xff] %vm366_vm3, %v4327_v50 }
0x1d0b   :  { %4330 = vst.msk [vmem:[#allocation4] sm:$0xff] %vm366_vm3, %v4322_v38 }
0x1d11   :  { %v8165_v3 = vld [vmem:[#allocation4 + $0x8] sm:$0xff] }
0x1d12   :  { %v8154_v1 = vld [vmem:[#allocation4] sm:$0xff] }
0x1d13   :  { %7174 = vmatmul.mubr.msk.f32.vlgmr.msra.gmra.mrb[50].mxu1 %vm456_vm8, %v8154_v1 }
0x1d14   :  { %7177 = vmatpush3.xpose.msk.msra.mxu1 %vm456_vm8, %v8158_v2  ;;  %7178 = vmatprep.mubr.msk.f32.mxu1 %vm7603_vm7, %v7599_v12 }
0x1d15   :  { %7186 = vmatprep.subr.mxu1 %v7599_v12 }
0x1d17   :  { %7179 = vmatmul.mubr.msk.f32.vlgmr.msra.gmra.mrb[52].mxu1 %vm456_vm8, %v8165_v3 }
0x1d18   :  { %7188 = vmatprep.mubr.msk.f32.mxu1 %vm7603_vm7, %v7599_v12 }
0x1de6   :  { %v4502_v4 = vpop.f32.mrb[50].mxu1 }
0x1de7   :  { %v7175_v5 = vpop.f32.mrb[51].mxu1  ;;  %v4582_v21 = vmul.f32 0.35355338, %v4502_v4 }
0x1de9   :  { %v4584_v22 = vsel %vm456_vm8, %v4582_v21, -inf }
0x1dea   :  { %v4578_v7 = vpop.f32.mrb[52].mxu1 }
0x1deb   :  { %v4583_v10 = vmul.f32 0.35355338, %v4578_v7  ;;  %v7180_v11 = vpop.f32.mrb[53].mxu1 }
0x1ded   :  { %v4587_v14 = vsel %vm456_vm8, %v4583_v10, -inf }
0x1dee   :  { %4588 = vmax.xlane.f32.xlu1 %v4587_v14 }
0x1dff   :  { %4682 = vrot.lane.b32.xlu1 %v8158_v2, %s7604_s26 }
0x1e03   :  { %4844 = vrot.lane.b32.xlu1 %v8165_v3, %s7606_s28 }
0x1e27   :  { %4585 = vmax.xlane.f32.xlu1 %v4584_v22 }
0x1e38   :  { %4767 = vrot.lane.b32.xlu1 %v8144_v57, %s7606_s28 }
0x1e3c   :  { %4764 = vrot.lane.b32.xlu1 %v8154_v1, %s7606_s28 }
0x1e40   :  { %5270 = vrot.lane.b32.xlu1 %v8144_v57, %s7610_s2 }
0x1e7b   :  { %v4589_v17 = vpop.xlane.xlu1 %4588 }
0x1e7c   :  { %v4591_v18 = vsub.f32 %v4583_v10, %v4589_v17 }
0x1e7e   :  { %v4594_v19 = vmul.f32 1.442695, %v4591_v18 }
0x1e7f   :  { %v4683_v6 = vpop.permute.xlu1 %4682 }
0x1e80   :  { %7556 = vpow2.f32 %v4594_v19  ;;  %7187 = vmatpush3.msra.mxu1 %v4683_v6 }
0x1e81   :  { %7196 = vmatprep.subr.mxu1 %v7599_v12 }
0x1e83   :  { %v4845_v24 = vpop.permute.xlu1 %4844 }
0x1e8a   :  { %v7557_v20 = vpop.eup %7556 }
0x1e8b   :  { %v4599_v23 = vsel %vm456_vm8, %v7557_v20, 0.0 }
0x1e8c   :  { %4600 = vadd.xlane.f32.xlu0 %v4599_v23 }
0x1ea2   :  { %4847 = vrot.lane.b32.xlu0 %v8158_v2, %s7606_s28  ;;  %s6531_s28 = sld [smem:[%s8368_s0 + %s7642_s20]]  }
0x1eb4   :  { %v4586_v25 = vpop.xlane.xlu1 %4585 }
0x1eb5   :  { %v4590_v26 = vsub.f32 %v4582_v21, %v4586_v25 }
0x1eb7   :  { %v4592_v27 = vmul.f32 1.442695, %v4590_v26 }
0x1eb8   :  { %v4768_v13 = vpop.permute.xlu1 %4767 }
0x1eb9   :  { %7558 = vpow2.f32 %v4592_v27 }
0x1ebc   :  { %v4765_v16 = vpop.permute.xlu1 %4764 }
0x1ec0   :  { %v5271_v60 = vpop.permute.xlu1 %5270 }
0x1ec3   :  { %v7559_v28 = vpop.eup %7558 }
0x1ec4   :  { %v4596_v29 = vsel %vm456_vm8, %v7559_v28, 0.0 }
0x1ec5   :  { %4597 = vadd.xlane.f32.xlu0 %v4596_v29 }
0x1edb   :  { %4606 = vrot.lane.b32.xlu0 %v8144_v57, %s7604_s26  ;;  %s7635_s26 = smov 26  }
0x1f19   :  { %v4601_v30 = vpop.xlane.xlu0 %4600 }
0x1f1a   :  { %7560 = vrcp.f32 %v4601_v30 }
0x1f1d   :  { %v4848_v33 = vpop.permute.xlu0 %4847 }
0x1f24   :  { %v7561_v31 = vpop.eup %7560 }
0x1f25   :  { %v4605_v32 = vmul.f32 %v7561_v31, %v7557_v20 }
0x1f27   :  { %7189 = vmatmul.mubr.msk.f32.vlgmr.msra.gmra.mrb[54].mxu1 %vm456_vm8, %v4605_v32 }
0x1f28   :  { %7197 = vmatpush3.xpose.msk.msra.mxu1 %vm456_vm8, %v4848_v33  ;;  %7198 = vmatprep.mubr.msk.f32.mxu1 %vm7603_vm7, %v7599_v12 }
0x1f29   :  { %7206 = vmatprep.subr.mxu1 %v7599_v12 }
0x1f2b   :  { %7199 = vmatmul.mubr.msk.f32.vlgmr.msra.gmra.mrb[56].mxu1 %vm456_vm8, %v4845_v24 }
0x1f2c   :  { %7208 = vmatprep.mubr.msk.f32.mxu1 %vm7603_vm7, %v7599_v12 }
0x1f52   :  { %v4598_v34 = vpop.xlane.xlu0 %4597 }
0x1f53   :  { %7562 = vrcp.f32 %v4598_v34 }
0x1f56   :  { %v4607_v39 = vpop.permute.xlu0 %4606 }
0x1f57   :  { %7182 = vmatpush3.msra.mxu0 %v4607_v39 }
0x1f58   :  { %7191 = vmatprep.subr.mxu0 %v7599_v12 }
0x1f5d   :  { %v7563_v9 = vpop.eup %7562 }
0x1f5e   :  { %v4604_v54 = vmul.f32 %v7563_v9, %v7559_v28 }
0x1f60   :  { %7184 = vmatmul.mubr.msk.f32.vlgmr.msra.gmra.mrb[34].mxu0 %vm456_vm8, %v4604_v54 }
0x1f61   :  { %7192 = vmatpush3.xpose.msk.msra.mxu0 %vm456_vm8, %v4768_v13  ;;  %7193 = vmatprep.mubr.msk.f32.mxu0 %vm7603_vm7, %v7599_v12 }
0x1f62   :  { %7201 = vmatprep.subr.mxu0 %v7599_v12 }
0x1f64   :  { %7194 = vmatmul.mubr.msk.f32.vlgmr.msra.gmra.mrb[36].mxu0 %vm456_vm8, %v4765_v16 }
0x1f65   :  { %7203 = vmatprep.mubr.msk.f32.mxu0 %vm7603_vm7, %v7599_v12 }
0x1ffa   :  { %v8207_v40 = vpop.f32.mrb[54].mxu1 }
0x1ffb   :  { %v7190_v41 = vpop.f32.mrb[55].mxu1 }
0x1ffe   :  { %v4919_v42 = vpop.f32.mrb[56].mxu1 }
0x1fff   :  { %v4924_v43 = vmul.f32 0.35355338, %v4919_v42  ;;  %v7200_v44 = vpop.f32.mrb[57].mxu1 }
0x2001   :  { %v4928_v45 = vsel %vm456_vm8, %v4924_v43, -inf }
0x2002   :  { %4929 = vmax.xlane.f32.xlu0 %v4928_v45 }
0x2018   :  { %5023 = vrot.lane.b32.xlu0 %v8158_v2, %s7607_s29 }
0x201c   :  { %5267 = vrot.lane.b32.xlu0 %v8154_v1, %s7610_s2 }
0x2020   :  { %5347 = vrot.lane.b32.xlu0 %v8165_v3, %s7610_s2 }
0x2033   :  { %v8216_v46 = vpop.f32.mrb[34].mxu0 }
0x2034   :  { %v7185_v8 = vpop.f32.mrb[35].mxu0 }
0x2037   :  { %v4839_v55 = vpop.f32.mrb[36].mxu0 }
0x2038   :  { %v7195_v15 = vpop.f32.mrb[37].mxu0  ;;  %v4923_v36 = vmul.f32 0.35355338, %v4839_v55 }
0x203a   :  { %v4925_v59 = vsel %vm456_vm8, %v4923_v36, -inf }
0x208f   :  { %v4930_v47 = vpop.xlane.xlu0 %4929 }
0x2090   :  { %v4932_v48 = vsub.f32 %v4924_v43, %v4930_v47 }
0x2092   :  { %v4935_v49 = vmul.f32 1.442695, %v4932_v48 }
0x2093   :  { %v5024_v51 = vpop.permute.xlu0 %5023 }
0x2094   :  { %7564 = vpow2.f32 %v4935_v49  ;;  %7207 = vmatpush3.msra.mxu1 %v5024_v51 }
0x2095   :  { %7221 = vmatprep.subr.mxu1 %v7599_v12 }
0x2097   :  { %v5268_v63 = vpop.permute.xlu0 %5267 }
0x209b   :  { %v5348_v50 = vpop.permute.xlu0 %5347 }
0x209e   :  { %v7565_v52 = vpop.eup %7564 }
0x209f   :  { %v4940_v53 = vsel %vm456_vm8, %v7565_v52, 0.0 }
0x20a0   :  { %4941 = vadd.xlane.f32.xlu1 %v4940_v53 }
0x20b1   :  { %5350 = vrot.lane.b32.xlu1 %v8158_v2, %s7610_s2  ;;  %s8254_s2 = sld [smem:[%s8368_s0 + %s7635_s26]]  }
0x20b7   :  { %v5099_v27 = vld [vmem:[%s8254_s2 + $0x8] sm:$0xff]  ;;  %v4758_v28 = vld [vmem:[%s8254_s2] sm:$0xff]  ;;  %v5602_v43 = vld [vmem:[%s8254_s2 + $0x10] sm:$0xff] }
0x20d5   :  { %4926 = vmax.xlane.f32.xlu1 %v4925_v59 }
0x212d   :  { %v4942_v61 = vpop.xlane.xlu1 %4941 }
0x212e   :  { %7566 = vrcp.f32 %v4942_v61 }
0x2131   :  { %v5351_v0 = vpop.permute.xlu1 %5350 }
0x2138   :  { %v7567_v35 = vpop.eup %7566 }
0x2139   :  { %v4946_v62 = vmul.f32 %v7567_v35, %v7565_v52 }
0x213b   :  { %7209 = vmatmul.mubr.msk.f32.vlgmr.msra.gmra.mrb[58].mxu1 %vm456_vm8, %v4946_v62 }
0x213c   :  { %7222 = vmatpush3.xpose.msk.msra.mxu1 %vm456_vm8, %v5271_v60  ;;  %7223 = vmatprep.mubr.msk.f32.mxu1 %vm7603_vm7, %v7599_v12 }
0x213d   :  { %7226 = vmatprep.subr.mxu1 %v7599_v12 }
0x213f   :  { %7224 = vmatmul.mubr.msk.f32.vlgmr.msra.gmra.mrb[60].mxu1 %vm456_vm8, %v5268_v63 }
0x2140   :  { %7227 = vmatpush3.xpose.msk.msra.mxu1 %vm456_vm8, %v5351_v0  ;;  %7228 = vmatprep.mubr.msk.f32.mxu1 %vm7603_vm7, %v7599_v12 }
0x2141   :  { %7236 = vmatprep.subr.mxu1 %v7599_v12 }
0x2143   :  { %7229 = vmatmul.mubr.msk.f32.vlgmr.msra.gmra.mrb[62].mxu1 %vm456_vm8, %v5348_v50 }
0x2144   :  { %7238 = vmatprep.mubr.msk.f32.mxu1 %vm7603_vm7, %v7599_v12 }
0x2162   :  { %v4927_v37 = vpop.xlane.xlu1 %4926 }
0x2163   :  { %v4931_v38 = vsub.f32 %v4923_v36, %v4927_v37 }
0x2165   :  { %v4933_v4 = vmul.f32 1.442695, %v4931_v38 }
0x2167   :  { %7568 = vpow2.f32 %v4933_v4 }
0x2171   :  { %v7569_v5 = vpop.eup %7568 }
0x2172   :  { %v4937_v7 = vsel %vm456_vm8, %v7569_v5, 0.0 }
0x2173   :  { %4938 = vadd.xlane.f32.xlu0 %v4937_v7 }
0x2189   :  { %4947 = vrot.lane.b32.xlu0 %v8144_v57, %s7607_s29  ;;  %s7643_s29 = smov 36  }
0x218d   :  { %5526 = vrot.lane.b32.xlu0 %v8158_v2, %s7608_s30 }
0x2191   :  { %5694 = vrot.lane.b32.xlu0 %v8144_v57, %s7613_s5 }
0x2195   :  { %5774 = vrot.lane.b32.xlu0 %v8158_v2, %s7613_s5 }
0x2199   :  { %5691 = vrot.lane.b32.xlu0 %v8154_v1, %s7613_s5 }
0x2200   :  { %v4939_v10 = vpop.xlane.xlu0 %4938 }
0x2201   :  { %7570 = vrcp.f32 %v4939_v10 }
0x2204   :  { %v4948_v11 = vpop.permute.xlu0 %4947 }
0x2205   :  { %7202 = vmatpush3.msra.mxu0 %v4948_v11 }
0x2206   :  { %7211 = vmatprep.subr.mxu0 %v5099_v27 }
0x2208   :  { %v5527_v14 = vpop.permute.xlu0 %5526 }
0x2209   :  { %7237 = vmatpush3.msra.mxu1 %v5527_v14 }
0x220a   :  { %7246 = vmatprep.subr.mxu1 %v7599_v12 }
0x220b   :  { %v7571_v21 = vpop.eup %7570 }
0x220c   :  { %v4945_v22 = vmul.f32 %v7571_v21, %v7569_v5  ;;  %v5695_v45 = vpop.permute.xlu0 %5694 }
0x220e   :  { %7204 = vmatmul.mubr.msk.f32.vlgmr.msra.gmra.mrb[38].mxu0 %vm456_vm8, %v4945_v22  ;;  %v5095_v17 = vpop.f32.mrb[58].mxu1 }
0x220f   :  { %v7210_v18 = vpop.f32.mrb[59].mxu1  ;;  %7212 = vmatpush3.msra.mxu0 %v5099_v27 }
0x2210   :  { %7216 = vmatprep.subr.mxu0 %v4758_v28  ;;  %v5775_v15 = vpop.permute.xlu0 %5774 }
0x2212   :  { %v5342_v19 = vpop.f32.mrb[60].mxu1 }
0x2213   :  { %v5426_v6 = vmul.f32 0.35355338, %v5342_v19  ;;  %v7225_v20 = vpop.f32.mrb[61].mxu1  ;;  %v6026_v19 = vld [vmem:[%s8254_s2 + $0x18] sm:$0xff] }
0x2214   :  { %v5692_v47 = vpop.permute.xlu0 %5691 }
0x2215   :  { %v5428_v23 = vsel %vm456_vm8, %v5426_v6, -inf }
0x2216   :  { %5429 = vmax.xlane.f32.xlu1 %v5428_v23  ;;  %v5422_v1 = vpop.f32.mrb[62].mxu1 }
0x2217   :  { %v5427_v24 = vmul.f32 0.35355338, %v5422_v1  ;;  %v7230_v25 = vpop.f32.mrb[63].mxu1 }
0x2219   :  { %v5431_v26 = vsel %vm456_vm8, %v5427_v24, -inf }
0x221a   :  { %5432 = vmax.xlane.f32.xlu1 %v5431_v26 }
0x22a3   :  { %v5430_v29 = vpop.xlane.xlu1 %5429 }
0x22a4   :  { %v5434_v30 = vsub.f32 %v5426_v6, %v5430_v29 }
0x22a6   :  { %v5436_v31 = vmul.f32 1.442695, %v5434_v30 }
0x22a7   :  { %v5433_v32 = vpop.xlane.xlu1 %5432 }
0x22a8   :  { %7572 = vpow2.f32 %v5436_v31  ;;  %v5435_v33 = vsub.f32 %v5427_v24, %v5433_v32 }
0x22aa   :  { %v5438_v34 = vmul.f32 1.442695, %v5435_v33 }
0x22ac   :  { %7574 = vpow2.f32 %v5438_v34 }
0x22b2   :  { %v7573_v39 = vpop.eup %7572 }
0x22b3   :  { %v5440_v9 = vsel %vm456_vm8, %v7573_v39, 0.0 }
0x22b4   :  { %5441 = vadd.xlane.f32.xlu1 %v5440_v9 }
0x22b6   :  { %v7575_v13 = vpop.eup %7574 }
0x22b7   :  { %v5443_v54 = vsel %vm456_vm8, %v7575_v13, 0.0 }
0x22b8   :  { %5444 = vadd.xlane.f32.xlu1 %v5443_v54 }
0x22c9   :  { %5450 = vrot.lane.b32.xlu1 %v8144_v57, %s7608_s30  ;;  %s7636_s30 = smov 27  }
0x22ca   :  { %s6525_s22 = sld [smem:[%s8368_s0 + %s7636_s30]]  }
0x22cd   :  { %5771 = vrot.lane.b32.xlu1 %v8165_v3, %s7613_s5  ;;  %s7644_s5 = smov 34  }
0x22ce   :  { %s6532_s24 = sld [smem:[%s8368_s0 + %s7644_s5]]  }
0x22e1   :  { %v5019_v16 = vpop.f32.mrb[38].mxu0 }
0x22e2   :  { %v7205_v41 = vpop.f32.mrb[39].mxu0  ;;  %7213 = vmatprep.mubr.msk.f32.mxu0 %vm456_vm8, %v5019_v16 }
0x22e3   :  { %7214 = vmatmul.mubr.msk.f32.vlgmr.msra.gmra.mrb[40].mxu0 %vm456_vm8, %v5095_v17 }
0x22e4   :  { %7218 = vmatprep.mubr.msk.f32.mxu0 %vm456_vm8, %v8216_v46  ;;  %7217 = vmatpush3.msra.mxu0 %v4758_v28 }
0x22e5   :  { %7231 = vmatprep.subr.mxu0 %v7599_v12 }
0x22eb   :  { %7219 = vmatmul.mubr.msk.f32.vlgmr.msra.gmra.mrb[40].mxu0 %vm456_vm8, %v8207_v40 }
0x22ec   :  { %7233 = vmatprep.mubr.msk.f32.mxu0 %vm7603_vm7, %v7599_v12 }
0x2341   :  { %v5442_v42 = vpop.xlane.xlu1 %5441 }
0x2342   :  { %7576 = vrcp.f32 %v5442_v42 }
0x2345   :  { %v5445_v3 = vpop.xlane.xlu1 %5444 }
0x2346   :  { %7578 = vrcp.f32 %v5445_v3 }
0x2349   :  { %v5451_v44 = vpop.permute.xlu1 %5450 }
0x234a   :  { %7232 = vmatpush3.msra.mxu0 %v5451_v44  ;;  %v6166_v44 = vld [vmem:[%s6528_s6 + $0x8] sm:$0xff] }
0x234b   :  { %7241 = vmatprep.subr.mxu0 %v5602_v43 }
0x234c   :  { %v7577_v8 = vpop.eup %7576 }
0x234d   :  { %v5448_v46 = vmul.f32 %v7577_v8, %v7573_v39  ;;  %v5772_v53 = vpop.permute.xlu1 %5771  ;;  %v6167_v8 = vld [vmem:[%s6528_s6 + $0x10] sm:$0xff] }
0x234f   :  { %7234 = vmatmul.mubr.msk.f32.vlgmr.msra.gmra.mrb[42].mxu0 %vm456_vm8, %v5448_v46  ;;  %v6168_v46 = vld [vmem:[%s6528_s6 + $0x18] sm:$0xff] }
0x2350   :  { %v7579_v55 = vpop.eup %7578  ;;  %7242 = vmatpush3.msra.mxu0 %v5602_v43 }
0x2351   :  { %v5449_v40 = vmul.f32 %v7579_v55, %v7575_v13  ;;  %7251 = vmatprep.subr.mxu0 %v7599_v12  ;;  %v7380_v55 = vpack.c.bf16 %v6168_v46, %v6167_v8 }
0x2353   :  { %7239 = vmatmul.mubr.msk.f32.vlgmr.msra.gmra.mrb[64].mxu1 %vm456_vm8, %v5449_v40  ;;  %v6260_v40 = vld [vmem:[%s8321_s8 + $0x8] sm:$0xff] }
0x2354   :  { %7247 = vmatpush3.xpose.msk.msra.mxu1 %vm456_vm8, %v5695_v45  ;;  %7248 = vmatprep.mubr.msk.f32.mxu1 %vm7603_vm7, %v7599_v12 }
0x2355   :  { %7256 = vmatprep.subr.mxu1 %v7599_v12 }
0x2357   :  { %7249 = vmatmul.mubr.msk.f32.vlgmr.msra.gmra.mrb[66].mxu1 %vm456_vm8, %v5692_v47  ;;  %v6261_v47 = vld [vmem:[%s8321_s8 + $0x10] sm:$0xff] }
0x2358   :  { %7258 = vmatprep.mubr.msk.f32.mxu1 %vm7603_vm7, %v7599_v12 }
0x2422   :  { %v5522_v48 = vpop.f32.mrb[42].mxu0 }
0x2423   :  { %v7235_v49 = vpop.f32.mrb[43].mxu0  ;;  %7243 = vmatprep.mubr.msk.f32.mxu0 %vm456_vm8, %v5522_v48 }
0x2424   :  { %v6262_v49 = vld [vmem:[%s8321_s8 + $0x18] sm:$0xff] }
0x2426   :  { %v5598_v51 = vpop.f32.mrb[64].mxu1 }
0x2427   :  { %v7240_v52 = vpop.f32.mrb[65].mxu1  ;;  %7244 = vmatmul.mubr.msk.f32.vlgmr.msra.gmra.mrb[40].mxu0 %vm456_vm8, %v5598_v51  ;;  %v7388_v51 = vpack.c.bf16 %v6262_v49, %v6261_v47 }
0x2428   :  { %7252 = vmatpush3.xpose.msk.msra.mxu0 %vm456_vm8, %v5775_v15  ;;  %7253 = vmatprep.mubr.msk.f32.mxu0 %vm7603_vm7, %v7599_v12  ;;  %v6259_v15 = vld [vmem:[%s8321_s8] sm:$0xff] }
0x2429   :  { %7261 = vmatprep.subr.mxu0 %v7599_v12  ;;  %v7384_v48 = vpack.c.bf16 %v6260_v40, %v6259_v15  ;;  %v6263_v52 = vld [vmem:[%s8321_s8 + $0x20] sm:$0xff] }
0x242a   :  { %v5766_v36 = vpop.f32.mrb[66].mxu1 }
0x242b   :  { %v5850_v59 = vmul.f32 0.35355338, %v5766_v36  ;;  %v7250_v60 = vpop.f32.mrb[67].mxu1  ;;  %7254 = vmatmul.mubr.msk.f32.vlgmr.msra.gmra.mrb[44].mxu0 %vm456_vm8, %v5772_v53  ;;  %v6264_v53 = vld [vmem:[%s8321_s8 + $0x28] sm:$0xff] }
0x242c   :  { %7263 = vmatprep.mubr.msk.f32.mxu0 %vm7603_vm7, %v7599_v12  ;;  %v7392_v36 = vpack.c.bf16 %v6264_v53, %v6263_v52  ;;  %v6677_v53 = vld [vmem:[%s6533_s27] ss:$0 sm:$0xff] }
0x242d   :  { %v5852_v61 = vsel %vm456_vm8, %v5850_v59, -inf }
0x242e   :  { %5853 = vmax.xlane.f32.xlu0 %v5852_v61 }
0x24bb   :  { %v5854_v35 = vpop.xlane.xlu0 %5853 }
0x24bc   :  { %v5858_v62 = vsub.f32 %v5850_v59, %v5854_v35 }
0x24be   :  { %v5860_v63 = vmul.f32 1.442695, %v5858_v62 }
0x24c0   :  { %7580 = vpow2.f32 %v5860_v63 }
0x24ca   :  { %v7581_v0 = vpop.eup %7580 }
0x24cb   :  { %v5864_v50 = vsel %vm456_vm8, %v7581_v0, 0.0 }
0x24cc   :  { %5865 = vadd.xlane.f32.xlu0 %v5864_v50  ;;  %v6668_v50 = vld [vmem:[%s6526_s11] ss:$0 sm:$0xff] }
0x24fe   :  { %v5846_v37 = vpop.f32.mrb[44].mxu0 }
0x24ff   :  { %v5851_v38 = vmul.f32 0.35355338, %v5846_v37  ;;  %v7255_v4 = vpop.f32.mrb[45].mxu0 }
0x2501   :  { %v5855_v5 = vsel %vm456_vm8, %v5851_v38, -inf }
0x2502   :  { %5856 = vmax.xlane.f32.xlu1 %v5855_v5  ;;  %v6669_v5 = vld [vmem:[%s6527_s15] ss:$0 sm:$0xff] }
0x2513   :  { %5874 = vrot.lane.b32.xlu1 %v8144_v57, %s7612_s4 }
0x2559   :  { %v5866_v12 = vpop.xlane.xlu0 %5865 }
0x255a   :  { %7582 = vrcp.f32 %v5866_v12 }
0x2564   :  { %v7583_v10 = vpop.eup %7582 }
0x2565   :  { %v5872_v21 = vmul.f32 %v7583_v10, %v7581_v0 }
0x258f   :  { %v5857_v7 = vpop.xlane.xlu1 %5856 }
0x2590   :  { %v5859_v11 = vsub.f32 %v5851_v38, %v5857_v7 }
0x2592   :  { %v5862_v14 = vmul.f32 1.442695, %v5859_v11 }
0x2593   :  { %v5875_v22 = vpop.permute.xlu1 %5874 }
0x2594   :  { %7584 = vpow2.f32 %v5862_v14  ;;  %7257 = vmatpush3.msra.mxu1 %v5875_v22  ;;  %v6265_v14 = vld [vmem:[%s8321_s8 + $0x30] sm:$0xff] }
0x2595   :  { %7259 = vmatmul.mubr.msk.f32.vlgmr.msra.gmra.mrb[68].mxu1 %vm456_vm8, %v5872_v21  ;;  %v6266_v21 = vld [vmem:[%s8321_s8 + $0x38] sm:$0xff] }
0x2596   :  { %v7396_v22 = vpack.c.bf16 %v6266_v21, %v6265_v14 }
0x259e   :  { %v7585_v17 = vpop.eup %7584 }
0x259f   :  { %v5867_v18 = vsel %vm456_vm8, %v7585_v17, 0.0 }
0x25a0   :  { %5868 = vadd.xlane.f32.xlu0 %v5867_v18 }
0x25b6   :  { %5950 = vrot.lane.b32.xlu0 %v8158_v2, %s7612_s4  ;;  %v6667_v2 = vld [vmem:[%s6525_s22] ss:$0 sm:$0xff]  ;;  %s6534_s4 = sld [smem:[%s8368_s0 + %s7643_s29]]  }
0x262d   :  { %v5869_v57 = vpop.xlane.xlu0 %5868 }
0x262e   :  { %7586 = vrcp.f32 %v5869_v57 }
0x2631   :  { %v5951_v6 = vpop.permute.xlu0 %5950 }
0x2632   :  { %7262 = vmatpush3.msra.mxu0 %v5951_v6 }
0x2633   :  { %7266 = vmatprep.subr.mxu0 %v6026_v19 }
0x2638   :  { %v7587_v20 = vpop.eup %7586 }
0x2639   :  { %v5873_v23 = vmul.f32 %v7587_v20, %v7585_v17  ;;  %v6670_v17 = vld [vmem:[%s6529_s19] ss:$0 sm:$0xff] }
0x263b   :  { %7264 = vmatmul.mubr.msk.f32.vlgmr.msra.gmra.mrb[46].mxu0 %vm456_vm8, %v5873_v23 }
0x263c   :  { %7267 = vmatpush3.msra.mxu0 %v6026_v19 }
0x263d   :  { %7385 = vmatprep.subr.bf16.mxu0 %v7384_v48 }
0x2668   :  { %v5946_v1 = vpop.f32.mrb[68].mxu1 }
0x2669   :  { %v7260_v24 = vpop.f32.mrb[69].mxu1  ;;  %7268 = vmatprep.mubr.msk.f32.mxu0 %vm456_vm8, %v5946_v1  ;;  %v6673_v1 = vld [vmem:[%s6531_s28] ss:$0 sm:$0xff] }
0x270e   :  { %v6022_v25 = vpop.f32.mrb[46].mxu0 }
0x270f   :  { %v7265_v26 = vpop.f32.mrb[47].mxu0  ;;  %7269 = vmatmul.mubr.msk.f32.vlgmr.msra.gmra.mrb[40].mxu0 %vm456_vm8, %v6022_v25 }
0x2710   :  { %7387 = vmatpush3.bf16.msra.mxu0 %v7384_v48  ;;  %v6676_v48 = vld [vmem:[%s6532_s24] ss:$0 sm:$0xff] }
0x2711   :  { %7389 = vmatprep.subr.bf16.mxu0 %v7388_v51 }
0x2714   :  { %7391 = vmatpush3.bf16.msra.mxu0 %v7388_v51 }
0x2715   :  { %7393 = vmatprep.subr.bf16.mxu0 %v7392_v36 }
0x2718   :  { %7395 = vmatpush3.bf16.msra.mxu0 %v7392_v36 }
0x2719   :  { %7397 = vmatprep.subr.bf16.mxu0 %v7396_v22 }
0x271c   :  { %7399 = vmatpush3.bf16.msra.mxu0 %v7396_v22 }
0x27e2   :  { %v7270_v27 = vpop.f32.mrb[40].mxu0 }
0x27e3   :  { %v6118_v28 = vadd.f32 %v7270_v27, %v6667_v2  ;;  %v6099_v29 = vpop.f32.mrb[41].mxu0 }
0x27e4   :  { %v6117_v30 = vadd.f32 %v6667_v2, %v6099_v29 }
0x27e5   :  { %v6120_v31 = vadd.f32 %v6118_v28, %v8131_v58 }
0x27e6   :  { %v6119_v32 = vadd.f32 %v6117_v30, %v8129_v56  ;;  %v6165_v56 = vld [vmem:[%s6528_s6] sm:$0xff] }
0x27e7   :  { %v6126_v33 = vsel %vm366_vm3, %v6120_v31, 0.0  ;;  %v7376_v45 = vpack.c.bf16 %v6166_v44, %v6165_v56  ;;  %v6404_v56 = vld [vmem:[%s6534_s4 + $0x18] sm:$0xff] }
0x27e8   :  { %6127 = vadd.xlane.f32.xlu0 %v6126_v33  ;;  %v6123_v34 = vsel %vm366_vm3, %v6119_v32, 0.0 }
0x27e9   :  { %6124 = vadd.xlane.f32.xlu1 %v6123_v34  ;;  %7377 = vmatprep.subr.bf16.mxu1 %v7376_v45 }
0x27ea   :  { %7379 = vmatpush3.bf16.msra.mxu1 %v7376_v45 }
0x27eb   :  { %7381 = vmatprep.subr.bf16.mxu1 %v7380_v55 }
0x27ee   :  { %7383 = vmatpush3.bf16.msra.mxu1 %v7380_v55 }
0x2875   :  { %v6128_v39 = vpop.xlane.xlu0 %6127 }
0x2876   :  { %v6130_v9 = vmul.f32 0.03125, %v6128_v39  ;;  %v6125_v13 = vpop.xlane.xlu1 %6124 }
0x2877   :  { %v6129_v54 = vmul.f32 0.03125, %v6125_v13 }
0x2878   :  { %v6132_v16 = vsub.f32 %v6120_v31, %v6130_v9 }
0x2879   :  { %v6131_v41 = vsub.f32 %v6119_v32, %v6129_v54 }
0x287a   :  { %v6134_v42 = vmul.f32 %v6132_v16, %v6132_v16 }
0x287b   :  { %v6133_v3 = vmul.f32 %v6131_v41, %v6131_v41 }
0x287c   :  { %v6138_v43 = vsel %vm366_vm3, %v6134_v42, 0.0  ;;  %v6401_v42 = vld [vmem:[%s6534_s4] sm:$0xff] }
0x287d   :  { %6139 = vadd.xlane.f32.xlu0 %v6138_v43  ;;  %v6135_v58 = vsel %vm366_vm3, %v6133_v3, 0.0  ;;  %v6402_v3 = vld [vmem:[%s6534_s4 + $0x8] sm:$0xff] }
0x287e   :  { %6136 = vadd.xlane.f32.xlu1 %v6135_v58  ;;  %v7400_v43 = vpack.c.bf16 %v6402_v3, %v6401_v42  ;;  %v6403_v58 = vld [vmem:[%s6534_s4 + $0x10] sm:$0xff] }
0x287f   :  { %v7404_v44 = vpack.c.bf16 %v6404_v56, %v6403_v58 }
0x2880   :  { %7401 = vmatprep.subr.bf16.mxu1 %v7400_v43 }
0x290a   :  { %v6140_v59 = vpop.xlane.xlu0 %6139 }
0x290b   :  { %v6142_v60 = vmul.f32 0.03125, %v6140_v59  ;;  %v6137_v61 = vpop.xlane.xlu1 %6136 }
0x290c   :  { %v6141_v35 = vmul.f32 0.03125, %v6137_v61 }
0x290d   :  { %v6144_v62 = vadd.f32 1e-05, %v6142_v60 }
0x290e   :  { %v6143_v63 = vadd.f32 1e-05, %v6141_v35  ;;  %v6678_v35 = vld [vmem:[%s6535_s3] ss:$0 sm:$0xff] }
0x290f   :  { %7588 = vrsqrt.f32 %v6144_v62 }
0x2910   :  { %7590 = vrsqrt.f32 %v6143_v63 }
0x2919   :  { %v7589_v0 = vpop.eup %7588 }
0x291a   :  { %v7591_v37 = vpop.eup %7590  ;;  %v6148_v38 = vmul.f32 %v7589_v0, %v6132_v16 }
0x291b   :  { %v6147_v4 = vmul.f32 %v7591_v37, %v6131_v41 }
0x291c   :  { %v6156_v12 = vmul.f32 %v6668_v50, %v6148_v38 }
0x291d   :  { %v6155_v7 = vmul.f32 %v6668_v50, %v6147_v4 }
0x291e   :  { %v6164_v11 = vadd.f32 %v6669_v5, %v6156_v12 }
0x291f   :  { %v6163_v10 = vadd.f32 %v6669_v5, %v6155_v7 }
0x2921   :  { %7279 = vmatprep.mubr.msk.f32.mxu1 %vm366_vm3, %v6163_v10 }
0x2922   :  { %7280 = vmatmul.mubr.msk.f32.vlgmr.msra.gmra.mrb[70].mxu1 %vm366_vm3, %v6164_v11 }
0x2923   :  { %7403 = vmatpush3.bf16.msra.mxu1 %v7400_v43 }
0x2924   :  { %7405 = vmatprep.subr.bf16.mxu1 %v7404_v44 }
0x2927   :  { %7407 = vmatpush3.bf16.msra.mxu1 %v7404_v44 }
0x29f5   :  { %v7281_v18 = vpop.f32.mrb[70].mxu1 }
0x29f6   :  { %v6254_v57 = vadd.f32 %v7281_v18, %v6670_v17  ;;  %v6248_v19 = vpop.f32.mrb[71].mxu1 }
0x29f7   :  { %v6249_v6 = vadd.f32 %v6670_v17, %v6248_v19 }
0x29f8   :  { %v6258_v23 = vmax.f32 %v6254_v57, 0.0 }
0x29f9   :  { %v6257_v20 = vmax.f32 %v6249_v6, 0.0 }
0x29fb   :  { %7298 = vmatprep.mubr.msk.f32.mxu0 %vm2289_vm9, %v6257_v20 }
0x29fc   :  { %7299 = vmatmul.mubr.msk.f32.vlgmr.msra.gmra.mrb[48].mxu0 %vm2289_vm9, %v6258_v23 }
0x2acf   :  { %v7300_v24 = vpop.f32.mrb[48].mxu0 }
0x2ad0   :  { %v6352_v25 = vadd.f32 %v7300_v24, %v6673_v1  ;;  %v6346_v26 = vpop.f32.mrb[49].mxu0 }
0x2ad1   :  { %v6347_v2 = vadd.f32 %v6673_v1, %v6346_v26 }
0x2ad2   :  { %v6356_v27 = vadd.f32 %v6352_v25, %v6164_v11 }
0x2ad3   :  { %v6355_v28 = vadd.f32 %v6347_v2, %v6163_v10 }
0x2ad4   :  { %v6362_v29 = vsel %vm366_vm3, %v6356_v27, 0.0 }
0x2ad5   :  { %6363 = vadd.xlane.f32.xlu0 %v6362_v29  ;;  %v6359_v30 = vsel %vm366_vm3, %v6355_v28, 0.0 }
0x2ad6   :  { %6360 = vadd.xlane.f32.xlu1 %v6359_v30 }
0x2b62   :  { %v6364_v31 = vpop.xlane.xlu0 %6363 }
0x2b63   :  { %v6366_v32 = vmul.f32 0.03125, %v6364_v31  ;;  %v6361_v33 = vpop.xlane.xlu1 %6360 }
0x2b64   :  { %v6365_v34 = vmul.f32 0.03125, %v6361_v33 }
0x2b65   :  { %v6368_v39 = vsub.f32 %v6356_v27, %v6366_v32 }
0x2b66   :  { %v6367_v9 = vsub.f32 %v6355_v28, %v6365_v34 }
0x2b67   :  { %v6370_v13 = vmul.f32 %v6368_v39, %v6368_v39 }
0x2b68   :  { %v6369_v54 = vmul.f32 %v6367_v9, %v6367_v9 }
0x2b69   :  { %v6374_v16 = vsel %vm366_vm3, %v6370_v13, 0.0 }
0x2b6a   :  { %6375 = vadd.xlane.f32.xlu0 %v6374_v16  ;;  %v6371_v41 = vsel %vm366_vm3, %v6369_v54, 0.0 }
0x2b6b   :  { %6372 = vadd.xlane.f32.xlu1 %v6371_v41 }
0x2bf7   :  { %v6376_v45 = vpop.xlane.xlu0 %6375 }
0x2bf8   :  { %v6378_v8 = vmul.f32 0.03125, %v6376_v45  ;;  %v6373_v46 = vpop.xlane.xlu1 %6372 }
0x2bf9   :  { %v6377_v55 = vmul.f32 0.03125, %v6373_v46 }
0x2bfa   :  { %v6380_v15 = vadd.f32 1e-05, %v6378_v8 }
0x2bfb   :  { %v6379_v40 = vadd.f32 1e-05, %v6377_v55 }
0x2bfc   :  { %7592 = vrsqrt.f32 %v6380_v15 }
0x2bfd   :  { %7594 = vrsqrt.f32 %v6379_v40 }
0x2c06   :  { %v7593_v47 = vpop.eup %7592 }
0x2c07   :  { %v7595_v49 = vpop.eup %7594  ;;  %v6384_v51 = vmul.f32 %v7593_v47, %v6368_v39 }
0x2c08   :  { %v6383_v52 = vmul.f32 %v7595_v49, %v6367_v9 }
0x2c09   :  { %v6392_v36 = vmul.f32 %v6676_v48, %v6384_v51 }
0x2c0a   :  { %v6391_v59 = vmul.f32 %v6676_v48, %v6383_v52 }
0x2c0b   :  { %v6400_v61 = vadd.f32 %v6677_v53, %v6392_v36 }
0x2c0c   :  { %v6399_v60 = vadd.f32 %v6677_v53, %v6391_v59 }
0x2c0e   :  { %7309 = vmatprep.mubr.msk.f32.mxu1 %vm366_vm3, %v6399_v60 }
0x2c0f   :  { %7310 = vmatmul.mubr.msk.f32.vlgmr.msra.gmra.mrb[72].mxu1 %vm366_vm3, %v6400_v61 }
0x2ce2   :  { %v7311_v62 = vpop.f32.mrb[72].mxu1 }
0x2ce3   :  { %v6490_v63 = vadd.f32 %v7311_v62, %v6678_v35  ;;  %v6484_v0 = vpop.f32.mrb[73].mxu1 }
0x2ce4   :  { %v6485_v50 = vadd.f32 %v6678_v35, %v6484_v0 }
0x2ce5   :  { %6494 = vst [vmem:[%s6536_s13 + $0x8] sm:$0xff] %v6490_v63 }
0x2ce6   :  { %6493 = vst [vmem:[%s6536_s13] sm:$0xff] %v6485_v50 }

</bundles_post_ra>
